<compile_context>
chip_gen: v7x
topology: tpu7x:2x2x1
jax: 0.10.0
libtpu: 0.0.40
codegen_flags: <defaults>
</compile_context>

<pallas_src>
import functools

import jax
import jax.numpy as jnp
from jax.experimental import pallas as pl
from jax.experimental.pallas import tpu as pltpu

EPS = 1e-5
LANE = 128


def _round_up(v, m):
    return (v + m - 1) // m * m


def _row_tile(m):
    return 256 if m >= 256 else _round_up(max(m, 8), 8)


# ----------------------------- Pallas kernels ------------------------------ #

def _bn_stats_kernel(x_ref, sums_ref):
    """Pass 1: per-channel sum (row 0) and sum of squares (row 1)."""
    @pl.when(pl.program_id(0) == 0)
    def _():
        sums_ref[...] = jnp.zeros_like(sums_ref)

    x = x_ref[...]
    sums_ref[0:1, :] += jnp.sum(x, axis=0, keepdims=True)
    sums_ref[1:2, :] += jnp.sum(x * x, axis=0, keepdims=True)


def _bn_apply_relu_kernel(x_ref, sums_ref, g_ref, b_ref, o_ref, *, inv_count):
    """Pass 2: y = relu((x - mean) * rsqrt(var + eps) * gamma + beta) -> bf16."""
    x = x_ref[...]
    mean = sums_ref[0:1, :] * inv_count
    var = sums_ref[1:2, :] * inv_count - mean * mean
    scale = g_ref[...] * jax.lax.rsqrt(var + EPS)
    shift = b_ref[...] - mean * scale
    o_ref[...] = jnp.maximum(x * scale + shift, 0.0).astype(o_ref.dtype)


def _conv3x3_kernel(x_ref, w_ref, *rest, taps, L, has_residual):
    """Direct 3x3 conv as 9 unit-stride tap matmuls, K-reduced over Cin blocks.

    x_ref: (P, Hq*Wq, tk) bf16 polyphase/flattened padded activation (1 image)
    w_ref: (9, tk, tn)     bf16 weights, tap-major (ky, kx)
    rest : [r_ref (1, L, tn) f32,] o_ref (1, L, tn) f32, acc_ref (L, tn) f32
    """
    if has_residual:
        r_ref, o_ref, acc_ref = rest
    else:
        o_ref, acc_ref = rest

    k = pl.program_id(2)

    @pl.when(k == 0)
    def _():
        acc_ref[...] = jnp.zeros_like(acc_ref)

    acc = acc_ref[...]
    for t, (p, start) in enumerate(taps):
        a = x_ref[p, start:start + L, :]                       # (L, tk) bf16
        acc += jnp.dot(a, w_ref[t], preferred_element_type=jnp.float32)
    acc_ref[...] = acc

    @pl.when(k == pl.num_programs(2) - 1)
    def _():
        out = acc_ref[...]
        if has_residual:
            out = out + r_ref[0]
        o_ref[...] = out[None, :, :].astype(o_ref.dtype)


def _matmul_kernel(a_ref, w_ref, o_ref, acc_ref):
    """Tiled o = a @ w with K-reduction accumulator (1x1 shortcut conv)."""
    k = pl.program_id(2)

    @pl.when(k == 0)
    def _():
        acc_ref[...] = jnp.zeros_like(acc_ref)

    acc_ref[...] += jnp.dot(a_ref[...], w_ref[...],
                            preferred_element_type=jnp.float32)

    @pl.when(k == pl.num_programs(2) - 1)
    def _():
        o_ref[...] = acc_ref[...].astype(o_ref.dtype)


# ------------------------------ Pallas wrappers ----------------------------- #

def bn_relu(x_nhwc, gamma, beta):
    """Training-mode BatchNorm2d + ReLU, tiled two-pass, bf16 output."""
    N, H, W, C = x_nhwc.shape
    M = N * H * W
    tm = _row_tile(M)
    Mp = _round_up(M, tm)
    x2d = x_nhwc.reshape(M, C).astype(jnp.float32)
    if Mp != M:
        x2d = jnp.pad(x2d, ((0, Mp - M), (0, 0)))      # zero rows: no-op for sums
    g2d = gamma.reshape(1, C).astype(jnp.float32)
    b2d = beta.reshape(1, C).astype(jnp.float32)

    sums = pl.pallas_call(
        _bn_stats_kernel,
        out_shape=jax.ShapeDtypeStruct((8, C), jnp.float32),
        grid=(Mp // tm,),
        in_specs=[pl.BlockSpec((tm, C), lambda i: (i, 0))],
        out_specs=pl.BlockSpec((8, C), lambda i: (0, 0)),
        compiler_params=pltpu.CompilerParams(
            dimension_semantics=("arbitrary",)),
    )(x2d)

    y2d = pl.pallas_call(
        functools.partial(_bn_apply_relu_kernel, inv_count=1.0 / float(M)),
        out_shape=jax.ShapeDtypeStruct((Mp, C), jnp.bfloat16),
        grid=(Mp // tm,),
        in_specs=[
            pl.BlockSpec((tm, C), lambda i: (i, 0)),
            pl.BlockSpec((8, C), lambda i: (0, 0)),
            pl.BlockSpec((1, C), lambda i: (0, 0)),
            pl.BlockSpec((1, C), lambda i: (0, 0)),
        ],
        out_specs=pl.BlockSpec((tm, C), lambda i: (i, 0)),
        compiler_params=pltpu.CompilerParams(
            dimension_semantics=("parallel",)),
    )(x2d, sums, g2d, b2d)

    return y2d[:M].reshape(N, H, W, C)


def _phase_pack(a_nhwc, stride):
    """Polyphase-decomposed, spatially-flattened conv input (no 9x im2col).

    Returns (N*stride^2, Hq*Wq, C) bf16: phase (py, px) holds the zero-padded
    input subsampled at rows py::stride / cols px::stride, so every 3x3 tap is
    a unit-stride, statically-offset row slice inside the kernel.
    """
    N, H, W, C = a_nhwc.shape
    ap = jnp.pad(a_nhwc, ((0, 0), (1, 1), (1, 1), (0, 0)))
    Ho = (H - 1) // stride + 1
    Wo = (W - 1) // stride + 1
    q = 2 // stride
    Hq, Wq = Ho + q, Wo + q
    phases = []
    for py in range(stride):
        for px in range(stride):
            ph = ap[:, py::stride, px::stride, :][:, :Hq, :Wq, :]
            ph = jnp.pad(ph, ((0, 0), (0, Hq - ph.shape[1]),
                              (0, Wq - ph.shape[2]), (0, 0)))
            phases.append(ph)
    x = jnp.stack(phases, axis=1).reshape(N * stride * stride, Hq * Wq, C)
    return x.astype(jnp.bfloat16), Ho, Wo, Hq, Wq


def conv3x3(a_nhwc, w9, *, stride, residual=None):
    """3x3 / pad-1 / stride-s conv (optional fused residual add), NHWC.

    Channels are pre-padded to multiples of 128.  Assumes Wo % 8 == 0 (true for
    Wide-ResNet spatial sizes) so the flattened layout stays vreg-aligned.
    """
    N, H, W, Cin = a_nhwc.shape
    _, _, Cout = w9.shape
    x_flat, Ho, Wo, Hq, Wq = _phase_pack(a_nhwc, stride)
    P = stride * stride
    Lq = Hq * Wq
    L = (Ho - 1) * Wq + Wo     # flat output rows (last Wq-Wo cols/row are junk)
    taps = tuple(((ky % stride) * stride + (kx % stride),
                  (ky // stride) * Wq + (kx // stride))
                 for ky in range(3) for kx in range(3))

    tk = 256 if Cin % 256 == 0 else 128
    tn = 256 if Cout % 256 == 0 else 128

    in_specs = [pl.BlockSpec((P, Lq, tk), lambda n, j, k: (n, 0, k)),
                pl.BlockSpec((9, tk, tn), lambda n, j, k: (0, k, j))]
    args = [x_flat, w9]
    has_res = residual is not None
    if has_res:
        r = jnp.pad(residual.astype(jnp.float32),
                    ((0, 0), (0, 0), (0, Wq - Wo), (0, 0)))
        r = r.reshape(N, Ho * Wq, Cout)[:, :L, :]
        in_specs.append(pl.BlockSpec((1, L, tn), lambda n, j, k: (n, 0, j)))
        args.append(r)

    out_flat = pl.pallas_call(
        functools.partial(_conv3x3_kernel, taps=taps, L=L, has_residual=has_res),
        out_shape=jax.ShapeDtypeStruct((N, L, Cout), jnp.float32),
        grid=(N, Cout // tn, Cin // tk),
        in_specs=in_specs,
        out_specs=pl.BlockSpec((1, L, tn), lambda n, j, k: (n, 0, j)),
        scratch_shapes=[pltpu.VMEM((L, tn), jnp.float32)],
        compiler_params=pltpu.CompilerParams(
            dimension_semantics=("parallel", "parallel", "arbitrary"),
            vmem_limit_bytes=32 * 1024 * 1024),
    )(*args)

    out = jnp.pad(out_flat, ((0, 0), (0, Ho * Wq - L), (0, 0)))
    return out.reshape(N, Ho, Wq, Cout)[:, :, :Wo, :]


def matmul_bf16(a, w):
    """Tiled (M,K)@(K,N) -> f32 with bf16 operands (1x1 shortcut conv)."""
    M, K = a.shape
    _, Nc = w.shape
    tm = _row_tile(M)
    Mp = _round_up(M, tm)
    if Mp != M:
        a = jnp.pad(a, ((0, Mp - M), (0, 0)))
    tk = 256 if K % 256 == 0 else 128
    tn = 256 if Nc % 256 == 0 else 128

    out = pl.pallas_call(
        _matmul_kernel,
        out_shape=jax.ShapeDtypeStruct((Mp, Nc), jnp.float32),
        grid=(Mp // tm, Nc // tn, K // tk),
        in_specs=[pl.BlockSpec((tm, tk), lambda i, j, k: (i, k)),
                  pl.BlockSpec((tk, tn), lambda i, j, k: (k, j))],
        out_specs=pl.BlockSpec((tm, tn), lambda i, j, k: (i, j)),
        scratch_shapes=[pltpu.VMEM((tm, tn), jnp.float32)],
        compiler_params=pltpu.CompilerParams(
            dimension_semantics=("parallel", "parallel", "arbitrary"),
            vmem_limit_bytes=32 * 1024 * 1024),
    )(a.astype(jnp.bfloat16), w.astype(jnp.bfloat16))
    return out[:M]


# ------------------------------- JAX glue ---------------------------------- #

def _pad_vec(v, c_pad):
    return jnp.pad(v.astype(jnp.float32), (0, c_pad - v.shape[0]))


def _pack_conv3x3_weight(w_oihw, cin_pad, cout_pad):
    """(Cout, Cin, 3, 3) -> (9, cin_pad, cout_pad) bf16, tap-major (ky, kx)."""
    cout, cin, _, _ = w_oihw.shape
    w = jnp.transpose(w_oihw, (2, 3, 1, 0))
    w = jnp.pad(w, ((0, 0), (0, 0), (0, cin_pad - cin), (0, cout_pad - cout)))
    return w.reshape(9, cin_pad, cout_pad).astype(jnp.bfloat16)


def preact_block_forward(x_nchw, params, stride):
    planes, in_planes = params["conv1_w"].shape[0], params["conv1_w"].shape[1]
    N, _, H, W = x_nchw.shape
    Cp = _round_up(in_planes, LANE)
    Cop = _round_up(planes, LANE)

    x = jnp.transpose(x_nchw, (0, 2, 3, 1)).astype(jnp.float32)   # NCHW -> NHWC
    x = jnp.pad(x, ((0, 0), (0, 0), (0, 0), (0, Cp - in_planes)))

    g1 = _pad_vec(params["bn1_gamma"], Cp)
    b1 = _pad_vec(params["bn1_beta"], Cp)
    g2 = _pad_vec(params["bn2_gamma"], Cop)
    b2 = _pad_vec(params["bn2_beta"], Cop)
    w1 = _pack_conv3x3_weight(params["conv1_w"], Cp, Cop)
    w2 = _pack_conv3x3_weight(params["conv2_w"], Cop, Cop)

    # out = relu(bn1(x))   (bf16 activation for the MXU)
    a1 = bn_relu(x, g1, b1)                                        # (N,H,W,Cp)

    # shortcut
    if stride != 1 or in_planes != planes:
        w_sc = jnp.transpose(params["sc_w"][:, :, 0, 0], (1, 0))   # (Cin, planes)
        w_sc = jnp.pad(w_sc, ((0, Cp - in_planes), (0, Cop - planes)))
        sc_in = a1[:, ::stride, ::stride, :]                       # 1x1/stride window
        Ns, Hs, Ws, _ = sc_in.shape
        shortcut = matmul_bf16(sc_in.reshape(Ns * Hs * Ws, Cp), w_sc)
        shortcut = shortcut.reshape(Ns, Hs, Ws, Cop)
    else:
        shortcut = x                                               # Cp == Cop here

    # conv1 (3x3, stride, pad=1)
    c1 = conv3x3(a1, w1, stride=stride)                            # (N,Ho,Wo,Cop) f32

    # relu(bn2(conv1_out))
    a2 = bn_relu(c1, g2, b2)

    # conv2 (3x3, stride 1, pad=1) with fused residual add of the shortcut
    y = conv3x3(a2, w2, stride=1, residual=shortcut)

    y = y[..., :planes]
    return jnp.transpose(y, (0, 3, 1, 2))                          # NHWC -> NCHW


# ---------------------------- pure-JAX reference ---------------------------- #

def reference_forward(x, params, stride):
    def bn(x, gamma, beta):
        mean = jnp.mean(x, axis=(0, 2, 3), keepdims=True)
        var = jnp.mean((x - mean) ** 2, axis=(0, 2, 3), keepdims=True)
        return ((x - mean) * jax.lax.rsqrt(var + EPS)
                * gamma.reshape(1, -1, 1, 1) + beta.reshape(1, -1, 1, 1))

    def conv(x, w, s, p):
        return jax.lax.conv_general_dilated(
            x, w, (s, s), [(p, p), (p, p)],
            dimension_numbers=("NCHW", "OIHW", "NCHW"))

    out = jax.nn.relu(bn(x, params["bn1_gamma"], params["bn1_beta"]))
    if stride != 1 or x.shape[1] != params["conv1_w"].shape[0]:
        shortcut = conv(out, params["sc_w"], stride, 0)
    else:
        shortcut = x
    o = conv(out, params["conv1_w"], stride, 1)
    o = conv(jax.nn.relu(bn(o, params["bn2_gamma"], params["bn2_beta"])),
             params["conv2_w"], 1, 1)
    return o + shortcut


# ---------------------------------- main ------------------------------------ #

if __name__ == "__main__":
    key = jax.random.PRNGKey(0)
    N, in_planes, H, W = 2, 4, 16, 16
    planes, stride = 8, 2

    ks = jax.random.split(key, 8)
    params = {
        "bn1_gamma": 1.0 + 0.1 * jax.random.normal(ks[0], (in_planes,), jnp.float32),
        "bn1_beta": 0.1 * jax.random.normal(ks[1], (in_planes,), jnp.float32),
        "conv1_w": jax.random.normal(ks[2], (planes, in_planes, 3, 3), jnp.float32)
        * (2.0 / (9 * in_planes)) ** 0.5,
        "bn2_gamma": 1.0 + 0.1 * jax.random.normal(ks[3], (planes,), jnp.float32),
        "bn2_beta": 0.1 * jax.random.normal(ks[4], (planes,), jnp.float32),
        "conv2_w": jax.random.normal(ks[5], (planes, planes, 3, 3), jnp.float32)
        * (2.0 / (9 * planes)) ** 0.5,
        "sc_w": jax.random.normal(ks[6], (planes, in_planes, 1, 1), jnp.float32)
        * (2.0 / in_planes) ** 0.5,
    }
    x = jax.random.normal(ks[7], (N, in_planes, H, W), jnp.float32)

    fwd = jax.jit(functools.partial(preact_block_forward, stride=stride))
    out = jax.block_until_ready(fwd(x, params))

    ref = reference_forward(x, params, stride)
    assert out.shape == ref.shape == (N, planes, H // stride, W // stride), out.shape
    # bf16 MXU operands (f32 accumulation) -> ~1% relative error vs f32 reference.
    rel = jnp.linalg.norm(out - ref) / jnp.linalg.norm(ref)
    assert jnp.allclose(out, ref, atol=1e-1, rtol=1e-1), float(rel)
    assert rel < 2e-2, float(rel)

    print("KERNEL_OK")
</pallas_src>

<mosaic_0001>
module attributes {stable_mosaic.version = 11 : i64} {
  func.func @_bn_stats_kernel(%arg0: i32, %arg1: memref<256x128xf32, #tpu.memory_space<vmem>>, %arg2: memref<8x128xf32, #tpu.memory_space<vmem>>) attributes {dimension_semantics = [#tpu.dimension_semantics<arbitrary>], iteration_bounds = array<i64: 2>, scalar_prefetch = 0 : i64, scratch_operands = 0 : i64, tpu.core_type = #tpu.core_type<tc>, window_params = [{transform_indices = @transform_0, window_bounds = array<i64: 256, 128>}, {pipeline_mode = #tpu.pipeline_mode<synchronous>, transform_indices = @transform_1, window_bounds = array<i64: 8, 128>}]} {
    %c0_i32 = arith.constant 0 : i32
    %0 = arith.cmpi eq, %arg0, %c0_i32 : i32
    %1 = arith.extui %0 : i1 to i32
    %c0_i32_0 = arith.constant 0 : i32
    %2 = arith.cmpi ne, %1, %c0_i32_0 : i32
    scf.if %2 {
      %cst_10 = arith.constant 0.000000e+00 : f32
      %15 = vector.broadcast %cst_10 : f32 to vector<8x128xf32>
      %c0_11 = arith.constant 0 : index
      %c0_12 = arith.constant 0 : index
      %16 = vector.load %arg2[%c0_11, %c0_12] : memref<8x128xf32, #tpu.memory_space<vmem>>, vector<8x128xf32>
      tpu.vector_store %arg2[%c0_11, %c0_12], %15 {strides = array<i32>} : memref<8x128xf32, #tpu.memory_space<vmem>>, vector<8x128xf32>,
    } else {
    }
    %c0 = arith.constant 0 : index
    %c0_1 = arith.constant 0 : index
    %3 = vector.load %arg1[%c0, %c0_1] : memref<256x128xf32, #tpu.memory_space<vmem>>, vector<256x128xf32>
    %c0_2 = arith.constant 0 : index
    %c0_3 = arith.constant 0 : index
    %4 = vector.load %arg2[%c0_2, %c0_3] : memref<8x128xf32, #tpu.memory_space<vmem>>, vector<1x128xf32>
    %cst = arith.constant dense<0.000000e+00> : vector<128xf32>
    %5 = vector.multi_reduction <add>, %3, %cst [0] : vector<256x128xf32> to vector<128xf32>
    %6 = vector.shape_cast %5 : vector<128xf32> to vector<1x128xf32>
    %7 = arith.addf %4, %6 : vector<1x128xf32>
    %c0_4 = arith.constant 0 : index
    %c0_5 = arith.constant 0 : index
    %8 = vector.load %arg2[%c0_4, %c0_5] : memref<8x128xf32, #tpu.memory_space<vmem>>, vector<1x128xf32>
    tpu.vector_store %arg2[%c0_4, %c0_5], %7 {strides = array<i32>} : memref<8x128xf32, #tpu.memory_space<vmem>>, vector<1x128xf32>,
    %c1 = arith.constant 1 : index
    %c0_6 = arith.constant 0 : index
    %9 = vector.load %arg2[%c1, %c0_6] : memref<8x128xf32, #tpu.memory_space<vmem>>, vector<1x128xf32>
    %10 = arith.mulf %3, %3 : vector<256x128xf32>
    %cst_7 = arith.constant dense<0.000000e+00> : vector<128xf32>
    %11 = vector.multi_reduction <add>, %10, %cst_7 [0] : vector<256x128xf32> to vector<128xf32>
    %12 = vector.shape_cast %11 : vector<128xf32> to vector<1x128xf32>
    %13 = arith.addf %9, %12 : vector<1x128xf32>
    %c1_8 = arith.constant 1 : index
    %c0_9 = arith.constant 0 : index
    %14 = vector.load %arg2[%c1_8, %c0_9] : memref<8x128xf32, #tpu.memory_space<vmem>>, vector<1x128xf32>
    tpu.vector_store %arg2[%c1_8, %c0_9], %13 {strides = array<i32>} : memref<8x128xf32, #tpu.memory_space<vmem>>, vector<1x128xf32>,
    return
  }
  func.func @transform_0(%arg0: i32) -> (i32, i32) {
    %c0_i32 = arith.constant 0 : i32
    %c0_i32_0 = arith.constant 0 : i32
    return %arg0, %c0_i32 : i32, i32
  }
  func.func @transform_1(%arg0: i32) -> (i32, i32) {
    %c0_i32 = arith.constant 0 : i32
    %c0_i32_0 = arith.constant 0 : i32
    %c0_i32_1 = arith.constant 0 : i32
    return %c0_i32, %c0_i32_0 : i32, i32
  }
}

module attributes {stable_mosaic.version = 11 : i64} {
  func.func @_bn_apply_relu_kernel(%arg0: i32, %arg1: memref<256x128xf32, #tpu.memory_space<vmem>>, %arg2: memref<8x128xf32, #tpu.memory_space<vmem>>, %arg3: memref<1x128xf32, #tpu.memory_space<vmem>>, %arg4: memref<1x128xf32, #tpu.memory_space<vmem>>, %arg5: memref<256x128xbf16, #tpu.memory_space<vmem>>) attributes {dimension_semantics = [#tpu.dimension_semantics<parallel>], iteration_bounds = array<i64: 2>, scalar_prefetch = 0 : i64, scratch_operands = 0 : i64, tpu.core_type = #tpu.core_type<tc>, window_params = [{transform_indices = @transform_0, window_bounds = array<i64: 256, 128>}, {pipeline_mode = #tpu.pipeline_mode<synchronous>, transform_indices = @transform_1, window_bounds = array<i64: 8, 128>}, {pipeline_mode = #tpu.pipeline_mode<synchronous>, transform_indices = @transform_2, window_bounds = array<i64: 1, 128>}, {pipeline_mode = #tpu.pipeline_mode<synchronous>, transform_indices = @transform_3, window_bounds = array<i64: 1, 128>}, {transform_indices = @transform_4, window_bounds = array<i64: 256, 128>}]} {
    %c0 = arith.constant 0 : index
    %c0_0 = arith.constant 0 : index
    %0 = vector.load %arg1[%c0, %c0_0] : memref<256x128xf32, #tpu.memory_space<vmem>>, vector<256x128xf32>
    %c0_1 = arith.constant 0 : index
    %c0_2 = arith.constant 0 : index
    %1 = vector.load %arg2[%c0_1, %c0_2] : memref<8x128xf32, #tpu.memory_space<vmem>>, vector<1x128xf32>
    %cst = arith.constant 0.001953125 : f32
    %2 = vector.broadcast %cst : f32 to vector<1x128xf32>
    %3 = arith.mulf %1, %2 : vector<1x128xf32>
    %c1 = arith.constant 1 : index
    %c0_3 = arith.constant 0 : index
    %4 = vector.load %arg2[%c1, %c0_3] : memref<8x128xf32, #tpu.memory_space<vmem>>, vector<1x128xf32>
    %cst_4 = arith.constant 0.001953125 : f32
    %5 = vector.broadcast %cst_4 : f32 to vector<1x128xf32>
    %6 = arith.mulf %4, %5 : vector<1x128xf32>
    %7 = arith.mulf %3, %3 : vector<1x128xf32>
    %8 = arith.subf %6, %7 : vector<1x128xf32>
    %c0_5 = arith.constant 0 : index
    %c0_6 = arith.constant 0 : index
    %9 = vector.load %arg3[%c0_5, %c0_6] : memref<1x128xf32, #tpu.memory_space<vmem>>, vector<1x128xf32>
    %cst_7 = arith.constant 9.99999974E-6 : f32
    %10 = vector.broadcast %cst_7 : f32 to vector<1x128xf32>
    %11 = arith.addf %8, %10 : vector<1x128xf32>
    %12 = math.rsqrt %11 : vector<1x128xf32>
    %13 = arith.mulf %9, %12 : vector<1x128xf32>
    %c0_8 = arith.constant 0 : index
    %c0_9 = arith.constant 0 : index
    %14 = vector.load %arg4[%c0_8, %c0_9] : memref<1x128xf32, #tpu.memory_space<vmem>>, vector<1x128xf32>
    %15 = arith.mulf %3, %13 : vector<1x128xf32>
    %16 = arith.subf %14, %15 : vector<1x128xf32>
    %17 = vector.broadcast %13 : vector<1x128xf32> to vector<256x128xf32>
    %18 = arith.mulf %0, %17 : vector<256x128xf32>
    %19 = vector.broadcast %16 : vector<1x128xf32> to vector<256x128xf32>
    %20 = arith.addf %18, %19 : vector<256x128xf32>
    %cst_10 = arith.constant 0.000000e+00 : f32
    %21 = vector.broadcast %cst_10 : f32 to vector<256x128xf32>
    %22 = arith.maximumf %20, %21 : vector<256x128xf32>
    %23 = arith.truncf %22 : vector<256x128xf32> to vector<256x128xbf16>
    %c0_11 = arith.constant 0 : index
    %c0_12 = arith.constant 0 : index
    %24 = vector.load %arg5[%c0_11, %c0_12] : memref<256x128xbf16, #tpu.memory_space<vmem>>, vector<256x128xbf16>
    tpu.vector_store %arg5[%c0_11, %c0_12], %23 {strides = array<i32>} : memref<256x128xbf16, #tpu.memory_space<vmem>>, vector<256x128xbf16>,
    return
  }
  func.func @transform_0(%arg0: i32) -> (i32, i32) {
    %c0_i32 = arith.constant 0 : i32
    %c0_i32_0 = arith.constant 0 : i32
    return %arg0, %c0_i32 : i32, i32
  }
  func.func @transform_1(%arg0: i32) -> (i32, i32) {
    %c0_i32 = arith.constant 0 : i32
    %c0_i32_0 = arith.constant 0 : i32
    %c0_i32_1 = arith.constant 0 : i32
    return %c0_i32, %c0_i32_0 : i32, i32
  }
  func.func @transform_2(%arg0: i32) -> (i32, i32) {
    %c0_i32 = arith.constant 0 : i32
    %c0_i32_0 = arith.constant 0 : i32
    %c0_i32_1 = arith.constant 0 : i32
    return %c0_i32, %c0_i32_0 : i32, i32
  }
  func.func @transform_3(%arg0: i32) -> (i32, i32) {
    %c0_i32 = arith.constant 0 : i32
    %c0_i32_0 = arith.constant 0 : i32
    %c0_i32_1 = arith.constant 0 : i32
    return %c0_i32, %c0_i32_0 : i32, i32
  }
  func.func @transform_4(%arg0: i32) -> (i32, i32) {
    %c0_i32 = arith.constant 0 : i32
    %c0_i32_0 = arith.constant 0 : i32
    return %arg0, %c0_i32 : i32, i32
  }
}

module attributes {stable_mosaic.version = 11 : i64} {
  func.func @_conv3x3_kernel(%arg0: i32, %arg1: i32, %arg2: i32, %arg3: memref<4x81x128xbf16, #tpu.memory_space<vmem>>, %arg4: memref<9x128x128xbf16, #tpu.memory_space<vmem>>, %arg5: memref<1x71x128xf32, #tpu.memory_space<vmem>>, %arg6: memref<71x128xf32, #tpu.memory_space<vmem>>) attributes {dimension_semantics = [#tpu.dimension_semantics<parallel>, #tpu.dimension_semantics<parallel>, #tpu.dimension_semantics<arbitrary>], iteration_bounds = array<i64: 2, 1, 1>, scalar_prefetch = 0 : i64, scratch_operands = 1 : i64, tpu.core_type = #tpu.core_type<tc>, window_params = [{transform_indices = @transform_0, window_bounds = array<i64: 4, 81, 128>}, {transform_indices = @transform_1, window_bounds = array<i64: 9, 128, 128>}, {transform_indices = @transform_2, window_bounds = array<i64: 1, 71, 128>}]} {
    %c0_i32 = arith.constant 0 : i32
    %0 = arith.cmpi eq, %arg2, %c0_i32 : i32
    %1 = arith.extui %0 : i1 to i32
    %c0_i32_0 = arith.constant 0 : i32
    %2 = arith.cmpi ne, %1, %c0_i32_0 : i32
    scf.if %2 {
      %cst_58 = arith.constant 0.000000e+00 : f32
      %62 = vector.broadcast %cst_58 : f32 to vector<71x128xf32>
      %c0_59 = arith.constant 0 : index
      %c0_60 = arith.constant 0 : index
      %63 = vector.load %arg6[%c0_59, %c0_60] : memref<71x128xf32, #tpu.memory_space<vmem>>, vector<71x128xf32>
      tpu.vector_store %arg6[%c0_59, %c0_60], %62 {strides = array<i32>} : memref<71x128xf32, #tpu.memory_space<vmem>>, vector<71x128xf32>,
    } else {
    }
    %c0 = arith.constant 0 : index
    %c0_1 = arith.constant 0 : index
    %3 = vector.load %arg6[%c0, %c0_1] : memref<71x128xf32, #tpu.memory_space<vmem>>, vector<71x128xf32>
    %c0_2 = arith.constant 0 : index
    %c0_3 = arith.constant 0 : index
    %c0_4 = arith.constant 0 : index
    %4 = vector.load %arg3[%c0_2, %c0_3, %c0_4] : memref<4x81x128xbf16, #tpu.memory_space<vmem>>, vector<1x71x128xbf16>
    %5 = vector.shape_cast %4 : vector<1x71x128xbf16> to vector<71x128xbf16>
    %c0_5 = arith.constant 0 : index
    %c0_6 = arith.constant 0 : index
    %c0_7 = arith.constant 0 : index
    %6 = vector.load %arg4[%c0_5, %c0_6, %c0_7] : memref<9x128x128xbf16, #tpu.memory_space<vmem>>, vector<1x128x128xbf16>
    %7 = vector.shape_cast %6 : vector<1x128x128xbf16> to vector<128x128xbf16>
    %cst = arith.constant dense<0.000000e+00> : vector<71x128xf32>
    %8 = tpu.matmul %5, %7, %cst {dimension_numbers = #tpu.dot_dimension_numbers<[1], [0], [0], [1], [0, 0, 1, 1], [], []>} : vector<71x128xbf16>, vector<128x128xbf16>, vector<71x128xf32> -> vector<71x128xf32>
    %9 = arith.addf %3, %8 : vector<71x128xf32>
    %c1 = arith.constant 1 : index
    %c0_8 = arith.constant 0 : index
    %c0_9 = arith.constant 0 : index
    %10 = vector.load %arg3[%c1, %c0_8, %c0_9] : memref<4x81x128xbf16, #tpu.memory_space<vmem>>, vector<1x71x128xbf16>
    %11 = vector.shape_cast %10 : vector<1x71x128xbf16> to vector<71x128xbf16>
    %c1_10 = arith.constant 1 : index
    %c0_11 = arith.constant 0 : index
    %c0_12 = arith.constant 0 : index
    %12 = vector.load %arg4[%c1_10, %c0_11, %c0_12] : memref<9x128x128xbf16, #tpu.memory_space<vmem>>, vector<1x128x128xbf16>
    %13 = vector.shape_cast %12 : vector<1x128x128xbf16> to vector<128x128xbf16>
    %cst_13 = arith.constant dense<0.000000e+00> : vector<71x128xf32>
    %14 = tpu.matmul %11, %13, %cst_13 {dimension_numbers = #tpu.dot_dimension_numbers<[1], [0], [0], [1], [0, 0, 1, 1], [], []>} : vector<71x128xbf16>, vector<128x128xbf16>, vector<71x128xf32> -> vector<71x128xf32>
    %15 = arith.addf %9, %14 : vector<71x128xf32>
    %c0_14 = arith.constant 0 : index
    %c1_15 = arith.constant 1 : index
    %c0_16 = arith.constant 0 : index
    %16 = vector.load %arg3[%c0_14, %c1_15, %c0_16] : memref<4x81x128xbf16, #tpu.memory_space<vmem>>, vector<1x71x128xbf16>
    %17 = vector.shape_cast %16 : vector<1x71x128xbf16> to vector<71x128xbf16>
    %c2 = arith.constant 2 : index
    %c0_17 = arith.constant 0 : index
    %c0_18 = arith.constant 0 : index
    %18 = vector.load %arg4[%c2, %c0_17, %c0_18] : memref<9x128x128xbf16, #tpu.memory_space<vmem>>, vector<1x128x128xbf16>
    %19 = vector.shape_cast %18 : vector<1x128x128xbf16> to vector<128x128xbf16>
    %cst_19 = arith.constant dense<0.000000e+00> : vector<71x128xf32>
    %20 = tpu.matmul %17, %19, %cst_19 {dimension_numbers = #tpu.dot_dimension_numbers<[1], [0], [0], [1], [0, 0, 1, 1], [], []>} : vector<71x128xbf16>, vector<128x128xbf16>, vector<71x128xf32> -> vector<71x128xf32>
    %21 = arith.addf %15, %20 : vector<71x128xf32>
    %c2_20 = arith.constant 2 : index
    %c0_21 = arith.constant 0 : index
    %c0_22 = arith.constant 0 : index
    %22 = vector.load %arg3[%c2_20, %c0_21, %c0_22] : memref<4x81x128xbf16, #tpu.memory_space<vmem>>, vector<1x71x128xbf16>
    %23 = vector.shape_cast %22 : vector<1x71x128xbf16> to vector<71x128xbf16>
    %c3 = arith.constant 3 : index
    %c0_23 = arith.constant 0 : index
    %c0_24 = arith.constant 0 : index
    %24 = vector.load %arg4[%c3, %c0_23, %c0_24] : memref<9x128x128xbf16, #tpu.memory_space<vmem>>, vector<1x128x128xbf16>
    %25 = vector.shape_cast %24 : vector<1x128x128xbf16> to vector<128x128xbf16>
    %cst_25 = arith.constant dense<0.000000e+00> : vector<71x128xf32>
    %26 = tpu.matmul %23, %25, %cst_25 {dimension_numbers = #tpu.dot_dimension_numbers<[1], [0], [0], [1], [0, 0, 1, 1], [], []>} : vector<71x128xbf16>, vector<128x128xbf16>, vector<71x128xf32> -> vector<71x128xf32>
    %27 = arith.addf %21, %26 : vector<71x128xf32>
    %c3_26 = arith.constant 3 : index
    %c0_27 = arith.constant 0 : index
    %c0_28 = arith.constant 0 : index
    %28 = vector.load %arg3[%c3_26, %c0_27, %c0_28] : memref<4x81x128xbf16, #tpu.memory_space<vmem>>, vector<1x71x128xbf16>
    %29 = vector.shape_cast %28 : vector<1x71x128xbf16> to vector<71x128xbf16>
    %c4 = arith.constant 4 : index
    %c0_29 = arith.constant 0 : index
    %c0_30 = arith.constant 0 : index
    %30 = vector.load %arg4[%c4, %c0_29, %c0_30] : memref<9x128x128xbf16, #tpu.memory_space<vmem>>, vector<1x128x128xbf16>
    %31 = vector.shape_cast %30 : vector<1x128x128xbf16> to vector<128x128xbf16>
    %cst_31 = arith.constant dense<0.000000e+00> : vector<71x128xf32>
    %32 = tpu.matmul %29, %31, %cst_31 {dimension_numbers = #tpu.dot_dimension_numbers<[1], [0], [0], [1], [0, 0, 1, 1], [], []>} : vector<71x128xbf16>, vector<128x128xbf16>, vector<71x128xf32> -> vector<71x128xf32>
    %33 = arith.addf %27, %32 : vector<71x128xf32>
    %c2_32 = arith.constant 2 : index
    %c1_33 = arith.constant 1 : index
    %c0_34 = arith.constant 0 : index
    %34 = vector.load %arg3[%c2_32, %c1_33, %c0_34] : memref<4x81x128xbf16, #tpu.memory_space<vmem>>, vector<1x71x128xbf16>
    %35 = vector.shape_cast %34 : vector<1x71x128xbf16> to vector<71x128xbf16>
    %c5 = arith.constant 5 : index
    %c0_35 = arith.constant 0 : index
    %c0_36 = arith.constant 0 : index
    %36 = vector.load %arg4[%c5, %c0_35, %c0_36] : memref<9x128x128xbf16, #tpu.memory_space<vmem>>, vector<1x128x128xbf16>
    %37 = vector.shape_cast %36 : vector<1x128x128xbf16> to vector<128x128xbf16>
    %cst_37 = arith.constant dense<0.000000e+00> : vector<71x128xf32>
    %38 = tpu.matmul %35, %37, %cst_37 {dimension_numbers = #tpu.dot_dimension_numbers<[1], [0], [0], [1], [0, 0, 1, 1], [], []>} : vector<71x128xbf16>, vector<128x128xbf16>, vector<71x128xf32> -> vector<71x128xf32>
    %39 = arith.addf %33, %38 : vector<71x128xf32>
    %c0_38 = arith.constant 0 : index
    %c9 = arith.constant 9 : index
    %c0_39 = arith.constant 0 : index
    %40 = vector.load %arg3[%c0_38, %c9, %c0_39] : memref<4x81x128xbf16, #tpu.memory_space<vmem>>, vector<1x71x128xbf16>
    %41 = vector.shape_cast %40 : vector<1x71x128xbf16> to vector<71x128xbf16>
    %c6 = arith.constant 6 : index
    %c0_40 = arith.constant 0 : index
    %c0_41 = arith.constant 0 : index
    %42 = vector.load %arg4[%c6, %c0_40, %c0_41] : memref<9x128x128xbf16, #tpu.memory_space<vmem>>, vector<1x128x128xbf16>
    %43 = vector.shape_cast %42 : vector<1x128x128xbf16> to vector<128x128xbf16>
    %cst_42 = arith.constant dense<0.000000e+00> : vector<71x128xf32>
    %44 = tpu.matmul %41, %43, %cst_42 {dimension_numbers = #tpu.dot_dimension_numbers<[1], [0], [0], [1], [0, 0, 1, 1], [], []>} : vector<71x128xbf16>, vector<128x128xbf16>, vector<71x128xf32> -> vector<71x128xf32>
    %45 = arith.addf %39, %44 : vector<71x128xf32>
    %c1_43 = arith.constant 1 : index
    %c9_44 = arith.constant 9 : index
    %c0_45 = arith.constant 0 : index
    %46 = vector.load %arg3[%c1_43, %c9_44, %c0_45] : memref<4x81x128xbf16, #tpu.memory_space<vmem>>, vector<1x71x128xbf16>
    %47 = vector.shape_cast %46 : vector<1x71x128xbf16> to vector<71x128xbf16>
    %c7 = arith.constant 7 : index
    %c0_46 = arith.constant 0 : index
    %c0_47 = arith.constant 0 : index
    %48 = vector.load %arg4[%c7, %c0_46, %c0_47] : memref<9x128x128xbf16, #tpu.memory_space<vmem>>, vector<1x128x128xbf16>
    %49 = vector.shape_cast %48 : vector<1x128x128xbf16> to vector<128x128xbf16>
    %cst_48 = arith.constant dense<0.000000e+00> : vector<71x128xf32>
    %50 = tpu.matmul %47, %49, %cst_48 {dimension_numbers = #tpu.dot_dimension_numbers<[1], [0], [0], [1], [0, 0, 1, 1], [], []>} : vector<71x128xbf16>, vector<128x128xbf16>, vector<71x128xf32> -> vector<71x128xf32>
    %51 = arith.addf %45, %50 : vector<71x128xf32>
    %c0_49 = arith.constant 0 : index
    %c10 = arith.constant 10 : index
    %c0_50 = arith.constant 0 : index
    %52 = vector.load %arg3[%c0_49, %c10, %c0_50] : memref<4x81x128xbf16, #tpu.memory_space<vmem>>, vector<1x71x128xbf16>
    %53 = vector.shape_cast %52 : vector<1x71x128xbf16> to vector<71x128xbf16>
    %c8 = arith.constant 8 : index
    %c0_51 = arith.constant 0 : index
    %c0_52 = arith.constant 0 : index
    %54 = vector.load %arg4[%c8, %c0_51, %c0_52] : memref<9x128x128xbf16, #tpu.memory_space<vmem>>, vector<1x128x128xbf16>
    %55 = vector.shape_cast %54 : vector<1x128x128xbf16> to vector<128x128xbf16>
    %cst_53 = arith.constant dense<0.000000e+00> : vector<71x128xf32>
    %56 = tpu.matmul %53, %55, %cst_53 {dimension_numbers = #tpu.dot_dimension_numbers<[1], [0], [0], [1], [0, 0, 1, 1], [], []>} : vector<71x128xbf16>, vector<128x128xbf16>, vector<71x128xf32> -> vector<71x128xf32>
    %57 = arith.addf %51, %56 : vector<71x128xf32>
    %c0_54 = arith.constant 0 : index
    %c0_55 = arith.constant 0 : index
    %58 = vector.load %arg6[%c0_54, %c0_55] : memref<71x128xf32, #tpu.memory_space<vmem>>, vector<71x128xf32>
    tpu.vector_store %arg6[%c0_54, %c0_55], %57 {strides = array<i32>} : memref<71x128xf32, #tpu.memory_space<vmem>>, vector<71x128xf32>,
    %c0_i32_56 = arith.constant 0 : i32
    %59 = arith.cmpi eq, %arg2, %c0_i32_56 : i32
    %60 = arith.extui %59 : i1 to i32
    %c0_i32_57 = arith.constant 0 : i32
    %61 = arith.cmpi ne, %60, %c0_i32_57 : i32
    scf.if %61 {
      %c0_58 = arith.constant 0 : index
      %c0_59 = arith.constant 0 : index
      %62 = vector.load %arg6[%c0_58, %c0_59] : memref<71x128xf32, #tpu.memory_space<vmem>>, vector<71x128xf32>
      %63 = vector.shape_cast %62 : vector<71x128xf32> to vector<1x71x128xf32>
      %c0_60 = arith.constant 0 : index
      %c0_61 = arith.constant 0 : index
      %c0_62 = arith.constant 0 : index
      %64 = vector.load %arg5[%c0_60, %c0_61, %c0_62] : memref<1x71x128xf32, #tpu.memory_space<vmem>>, vector<1x71x128xf32>
      tpu.vector_store %arg5[%c0_60, %c0_61, %c0_62], %63 {strides = array<i32>} : memref<1x71x128xf32, #tpu.memory_space<vmem>>, vector<1x71x128xf32>,
    } else {
    }
    return
  }
  func.func @transform_0(%arg0: i32, %arg1: i32, %arg2: i32) -> (i32, i32, i32) {
    %c0_i32 = arith.constant 0 : i32
    %c0_i32_0 = arith.constant 0 : i32
    return %arg0, %c0_i32, %arg2 : i32, i32, i32
  }
  func.func @transform_1(%arg0: i32, %arg1: i32, %arg2: i32) -> (i32, i32, i32) {
    %c0_i32 = arith.constant 0 : i32
    %c0_i32_0 = arith.constant 0 : i32
    return %c0_i32, %arg2, %arg1 : i32, i32, i32
  }
  func.func @transform_2(%arg0: i32, %arg1: i32, %arg2: i32) -> (i32, i32, i32) {
    %c0_i32 = arith.constant 0 : i32
    %c0_i32_0 = arith.constant 0 : i32
    return %arg0, %c0_i32, %arg1 : i32, i32, i32
  }
}

module attributes {stable_mosaic.version = 11 : i64} {
  func.func @_bn_stats_kernel(%arg0: i32, %arg1: memref<128x128xf32, #tpu.memory_space<vmem>>, %arg2: memref<8x128xf32, #tpu.memory_space<vmem>>) attributes {dimension_semantics = [#tpu.dimension_semantics<arbitrary>], iteration_bounds = array<i64: 1>, scalar_prefetch = 0 : i64, scratch_operands = 0 : i64, tpu.core_type = #tpu.core_type<tc>, window_params = [{transform_indices = @transform_0, window_bounds = array<i64: 128, 128>}, {pipeline_mode = #tpu.pipeline_mode<synchronous>, transform_indices = @transform_1, window_bounds = array<i64: 8, 128>}]} {
    %c0_i32 = arith.constant 0 : i32
    %0 = arith.cmpi eq, %arg0, %c0_i32 : i32
    %1 = arith.extui %0 : i1 to i32
    %c0_i32_0 = arith.constant 0 : i32
    %2 = arith.cmpi ne, %1, %c0_i32_0 : i32
    scf.if %2 {
      %cst_10 = arith.constant 0.000000e+00 : f32
      %15 = vector.broadcast %cst_10 : f32 to vector<8x128xf32>
      %c0_11 = arith.constant 0 : index
      %c0_12 = arith.constant 0 : index
      %16 = vector.load %arg2[%c0_11, %c0_12] : memref<8x128xf32, #tpu.memory_space<vmem>>, vector<8x128xf32>
      tpu.vector_store %arg2[%c0_11, %c0_12], %15 {strides = array<i32>} : memref<8x128xf32, #tpu.memory_space<vmem>>, vector<8x128xf32>,
    } else {
    }
    %c0 = arith.constant 0 : index
    %c0_1 = arith.constant 0 : index
    %3 = vector.load %arg1[%c0, %c0_1] : memref<128x128xf32, #tpu.memory_space<vmem>>, vector<128x128xf32>
    %c0_2 = arith.constant 0 : index
    %c0_3 = arith.constant 0 : index
    %4 = vector.load %arg2[%c0_2, %c0_3] : memref<8x128xf32, #tpu.memory_space<vmem>>, vector<1x128xf32>
    %cst = arith.constant dense<0.000000e+00> : vector<128xf32>
    %5 = vector.multi_reduction <add>, %3, %cst [0] : vector<128x128xf32> to vector<128xf32>
    %6 = vector.shape_cast %5 : vector<128xf32> to vector<1x128xf32>
    %7 = arith.addf %4, %6 : vector<1x128xf32>
    %c0_4 = arith.constant 0 : index
    %c0_5 = arith.constant 0 : index
    %8 = vector.load %arg2[%c0_4, %c0_5] : memref<8x128xf32, #tpu.memory_space<vmem>>, vector<1x128xf32>
    tpu.vector_store %arg2[%c0_4, %c0_5], %7 {strides = array<i32>} : memref<8x128xf32, #tpu.memory_space<vmem>>, vector<1x128xf32>,
    %c1 = arith.constant 1 : index
    %c0_6 = arith.constant 0 : index
    %9 = vector.load %arg2[%c1, %c0_6] : memref<8x128xf32, #tpu.memory_space<vmem>>, vector<1x128xf32>
    %10 = arith.mulf %3, %3 : vector<128x128xf32>
    %cst_7 = arith.constant dense<0.000000e+00> : vector<128xf32>
    %11 = vector.multi_reduction <add>, %10, %cst_7 [0] : vector<128x128xf32> to vector<128xf32>
    %12 = vector.shape_cast %11 : vector<128xf32> to vector<1x128xf32>
    %13 = arith.addf %9, %12 : vector<1x128xf32>
    %c1_8 = arith.constant 1 : index
    %c0_9 = arith.constant 0 : index
    %14 = vector.load %arg2[%c1_8, %c0_9] : memref<8x128xf32, #tpu.memory_space<vmem>>, vector<1x128xf32>
    tpu.vector_store %arg2[%c1_8, %c0_9], %13 {strides = array<i32>} : memref<8x128xf32, #tpu.memory_space<vmem>>, vector<1x128xf32>,
    return
  }
  func.func @transform_0(%arg0: i32) -> (i32, i32) {
    %c0_i32 = arith.constant 0 : i32
    %c0_i32_0 = arith.constant 0 : i32
    return %arg0, %c0_i32 : i32, i32
  }
  func.func @transform_1(%arg0: i32) -> (i32, i32) {
    %c0_i32 = arith.constant 0 : i32
    %c0_i32_0 = arith.constant 0 : i32
    %c0_i32_1 = arith.constant 0 : i32
    return %c0_i32, %c0_i32_0 : i32, i32
  }
}

module attributes {stable_mosaic.version = 11 : i64} {
  func.func @_bn_apply_relu_kernel(%arg0: i32, %arg1: memref<128x128xf32, #tpu.memory_space<vmem>>, %arg2: memref<8x128xf32, #tpu.memory_space<vmem>>, %arg3: memref<1x128xf32, #tpu.memory_space<vmem>>, %arg4: memref<1x128xf32, #tpu.memory_space<vmem>>, %arg5: memref<128x128xbf16, #tpu.memory_space<vmem>>) attributes {dimension_semantics = [#tpu.dimension_semantics<parallel>], iteration_bounds = array<i64: 1>, scalar_prefetch = 0 : i64, scratch_operands = 0 : i64, tpu.core_type = #tpu.core_type<tc>, window_params = [{transform_indices = @transform_0, window_bounds = array<i64: 128, 128>}, {pipeline_mode = #tpu.pipeline_mode<synchronous>, transform_indices = @transform_1, window_bounds = array<i64: 8, 128>}, {pipeline_mode = #tpu.pipeline_mode<synchronous>, transform_indices = @transform_2, window_bounds = array<i64: 1, 128>}, {pipeline_mode = #tpu.pipeline_mode<synchronous>, transform_indices = @transform_3, window_bounds = array<i64: 1, 128>}, {transform_indices = @transform_4, window_bounds = array<i64: 128, 128>}]} {
    %c0 = arith.constant 0 : index
    %c0_0 = arith.constant 0 : index
    %0 = vector.load %arg1[%c0, %c0_0] : memref<128x128xf32, #tpu.memory_space<vmem>>, vector<128x128xf32>
    %c0_1 = arith.constant 0 : index
    %c0_2 = arith.constant 0 : index
    %1 = vector.load %arg2[%c0_1, %c0_2] : memref<8x128xf32, #tpu.memory_space<vmem>>, vector<1x128xf32>
    %cst = arith.constant 7.812500e-03 : f32
    %2 = vector.broadcast %cst : f32 to vector<1x128xf32>
    %3 = arith.mulf %1, %2 : vector<1x128xf32>
    %c1 = arith.constant 1 : index
    %c0_3 = arith.constant 0 : index
    %4 = vector.load %arg2[%c1, %c0_3] : memref<8x128xf32, #tpu.memory_space<vmem>>, vector<1x128xf32>
    %cst_4 = arith.constant 7.812500e-03 : f32
    %5 = vector.broadcast %cst_4 : f32 to vector<1x128xf32>
    %6 = arith.mulf %4, %5 : vector<1x128xf32>
    %7 = arith.mulf %3, %3 : vector<1x128xf32>
    %8 = arith.subf %6, %7 : vector<1x128xf32>
    %c0_5 = arith.constant 0 : index
    %c0_6 = arith.constant 0 : index
    %9 = vector.load %arg3[%c0_5, %c0_6] : memref<1x128xf32, #tpu.memory_space<vmem>>, vector<1x128xf32>
    %cst_7 = arith.constant 9.99999974E-6 : f32
    %10 = vector.broadcast %cst_7 : f32 to vector<1x128xf32>
    %11 = arith.addf %8, %10 : vector<1x128xf32>
    %12 = math.rsqrt %11 : vector<1x128xf32>
    %13 = arith.mulf %9, %12 : vector<1x128xf32>
    %c0_8 = arith.constant 0 : index
    %c0_9 = arith.constant 0 : index
    %14 = vector.load %arg4[%c0_8, %c0_9] : memref<1x128xf32, #tpu.memory_space<vmem>>, vector<1x128xf32>
    %15 = arith.mulf %3, %13 : vector<1x128xf32>
    %16 = arith.subf %14, %15 : vector<1x128xf32>
    %17 = vector.broadcast %13 : vector<1x128xf32> to vector<128x128xf32>
    %18 = arith.mulf %0, %17 : vector<128x128xf32>
    %19 = vector.broadcast %16 : vector<1x128xf32> to vector<128x128xf32>
    %20 = arith.addf %18, %19 : vector<128x128xf32>
    %cst_10 = arith.constant 0.000000e+00 : f32
    %21 = vector.broadcast %cst_10 : f32 to vector<128x128xf32>
    %22 = arith.maximumf %20, %21 : vector<128x128xf32>
    %23 = arith.truncf %22 : vector<128x128xf32> to vector<128x128xbf16>
    %c0_11 = arith.constant 0 : index
    %c0_12 = arith.constant 0 : index
    %24 = vector.load %arg5[%c0_11, %c0_12] : memref<128x128xbf16, #tpu.memory_space<vmem>>, vector<128x128xbf16>
    tpu.vector_store %arg5[%c0_11, %c0_12], %23 {strides = array<i32>} : memref<128x128xbf16, #tpu.memory_space<vmem>>, vector<128x128xbf16>,
    return
  }
  func.func @transform_0(%arg0: i32) -> (i32, i32) {
    %c0_i32 = arith.constant 0 : i32
    %c0_i32_0 = arith.constant 0 : i32
    return %arg0, %c0_i32 : i32, i32
  }
  func.func @transform_1(%arg0: i32) -> (i32, i32) {
    %c0_i32 = arith.constant 0 : i32
    %c0_i32_0 = arith.constant 0 : i32
    %c0_i32_1 = arith.constant 0 : i32
    return %c0_i32, %c0_i32_0 : i32, i32
  }
  func.func @transform_2(%arg0: i32) -> (i32, i32) {
    %c0_i32 = arith.constant 0 : i32
    %c0_i32_0 = arith.constant 0 : i32
    %c0_i32_1 = arith.constant 0 : i32
    return %c0_i32, %c0_i32_0 : i32, i32
  }
  func.func @transform_3(%arg0: i32) -> (i32, i32) {
    %c0_i32 = arith.constant 0 : i32
    %c0_i32_0 = arith.constant 0 : i32
    %c0_i32_1 = arith.constant 0 : i32
    return %c0_i32, %c0_i32_0 : i32, i32
  }
  func.func @transform_4(%arg0: i32) -> (i32, i32) {
    %c0_i32 = arith.constant 0 : i32
    %c0_i32_0 = arith.constant 0 : i32
    return %arg0, %c0_i32 : i32, i32
  }
}

module attributes {stable_mosaic.version = 11 : i64} {
  func.func @_matmul_kernel(%arg0: i32, %arg1: i32, %arg2: i32, %arg3: memref<128x128xbf16, #tpu.memory_space<vmem>>, %arg4: memref<128x128xbf16, #tpu.memory_space<vmem>>, %arg5: memref<128x128xf32, #tpu.memory_space<vmem>>, %arg6: memref<128x128xf32, #tpu.memory_space<vmem>>) attributes {dimension_semantics = [#tpu.dimension_semantics<parallel>, #tpu.dimension_semantics<parallel>, #tpu.dimension_semantics<arbitrary>], iteration_bounds = array<i64: 1, 1, 1>, scalar_prefetch = 0 : i64, scratch_operands = 1 : i64, tpu.core_type = #tpu.core_type<tc>, window_params = [{transform_indices = @transform_0, window_bounds = array<i64: 128, 128>}, {transform_indices = @transform_1, window_bounds = array<i64: 128, 128>}, {transform_indices = @transform_2, window_bounds = array<i64: 128, 128>}]} {
    %c0_i32 = arith.constant 0 : i32
    %0 = arith.cmpi eq, %arg2, %c0_i32 : i32
    %1 = arith.extui %0 : i1 to i32
    %c0_i32_0 = arith.constant 0 : i32
    %2 = arith.cmpi ne, %1, %c0_i32_0 : i32
    scf.if %2 {
      %cst_10 = arith.constant 0.000000e+00 : f32
      %12 = vector.broadcast %cst_10 : f32 to vector<128x128xf32>
      %c0_11 = arith.constant 0 : index
      %c0_12 = arith.constant 0 : index
      %13 = vector.load %arg6[%c0_11, %c0_12] : memref<128x128xf32, #tpu.memory_space<vmem>>, vector<128x128xf32>
      tpu.vector_store %arg6[%c0_11, %c0_12], %12 {strides = array<i32>} : memref<128x128xf32, #tpu.memory_space<vmem>>, vector<128x128xf32>,
    } else {
    }
    %c0 = arith.constant 0 : index
    %c0_1 = arith.constant 0 : index
    %3 = vector.load %arg6[%c0, %c0_1] : memref<128x128xf32, #tpu.memory_space<vmem>>, vector<128x128xf32>
    %c0_2 = arith.constant 0 : index
    %c0_3 = arith.constant 0 : index
    %4 = vector.load %arg3[%c0_2, %c0_3] : memref<128x128xbf16, #tpu.memory_space<vmem>>, vector<128x128xbf16>
    %c0_4 = arith.constant 0 : index
    %c0_5 = arith.constant 0 : index
    %5 = vector.load %arg4[%c0_4, %c0_5] : memref<128x128xbf16, #tpu.memory_space<vmem>>, vector<128x128xbf16>
    %cst = arith.constant dense<0.000000e+00> : vector<128x128xf32>
    %6 = tpu.matmul %4, %5, %cst {dimension_numbers = #tpu.dot_dimension_numbers<[1], [0], [0], [1], [0, 0, 1, 1], [], []>} : vector<128x128xbf16>, vector<128x128xbf16>, vector<128x128xf32> -> vector<128x128xf32>
    %7 = arith.addf %3, %6 : vector<128x128xf32>
    %c0_6 = arith.constant 0 : index
    %c0_7 = arith.constant 0 : index
    %8 = vector.load %arg6[%c0_6, %c0_7] : memref<128x128xf32, #tpu.memory_space<vmem>>, vector<128x128xf32>
    tpu.vector_store %arg6[%c0_6, %c0_7], %7 {strides = array<i32>} : memref<128x128xf32, #tpu.memory_space<vmem>>, vector<128x128xf32>,
    %c0_i32_8 = arith.constant 0 : i32
    %9 = arith.cmpi eq, %arg2, %c0_i32_8 : i32
    %10 = arith.extui %9 : i1 to i32
    %c0_i32_9 = arith.constant 0 : i32
    %11 = arith.cmpi ne, %10, %c0_i32_9 : i32
    scf.if %11 {
      %c0_10 = arith.constant 0 : index
      %c0_11 = arith.constant 0 : index
      %12 = vector.load %arg6[%c0_10, %c0_11] : memref<128x128xf32, #tpu.memory_space<vmem>>, vector<128x128xf32>
      %c0_12 = arith.constant 0 : index
      %c0_13 = arith.constant 0 : index
      %13 = vector.load %arg5[%c0_12, %c0_13] : memref<128x128xf32, #tpu.memory_space<vmem>>, vector<128x128xf32>
      tpu.vector_store %arg5[%c0_12, %c0_13], %12 {strides = array<i32>} : memref<128x128xf32, #tpu.memory_space<vmem>>, vector<128x128xf32>,
    } else {
    }
    return
  }
  func.func @transform_0(%arg0: i32, %arg1: i32, %arg2: i32) -> (i32, i32) {
    %c0_i32 = arith.constant 0 : i32
    return %arg0, %arg2 : i32, i32
  }
  func.func @transform_1(%arg0: i32, %arg1: i32, %arg2: i32) -> (i32, i32) {
    %c0_i32 = arith.constant 0 : i32
    return %arg2, %arg1 : i32, i32
  }
  func.func @transform_2(%arg0: i32, %arg1: i32, %arg2: i32) -> (i32, i32) {
    %c0_i32 = arith.constant 0 : i32
    return %arg0, %arg1 : i32, i32
  }
}

module attributes {stable_mosaic.version = 11 : i64} {
  func.func @_conv3x3_kernel(%arg0: i32, %arg1: i32, %arg2: i32, %arg3: memref<1x100x128xbf16, #tpu.memory_space<vmem>>, %arg4: memref<9x128x128xbf16, #tpu.memory_space<vmem>>, %arg5: memref<1x78x128xf32, #tpu.memory_space<vmem>>, %arg6: memref<1x78x128xf32, #tpu.memory_space<vmem>>, %arg7: memref<78x128xf32, #tpu.memory_space<vmem>>) attributes {dimension_semantics = [#tpu.dimension_semantics<parallel>, #tpu.dimension_semantics<parallel>, #tpu.dimension_semantics<arbitrary>], iteration_bounds = array<i64: 2, 1, 1>, scalar_prefetch = 0 : i64, scratch_operands = 1 : i64, tpu.core_type = #tpu.core_type<tc>, window_params = [{transform_indices = @transform_0, window_bounds = array<i64: 1, 100, 128>}, {transform_indices = @transform_1, window_bounds = array<i64: 9, 128, 128>}, {transform_indices = @transform_2, window_bounds = array<i64: 1, 78, 128>}, {transform_indices = @transform_3, window_bounds = array<i64: 1, 78, 128>}]} {
    %c0_i32 = arith.constant 0 : i32
    %0 = arith.cmpi eq, %arg2, %c0_i32 : i32
    %1 = arith.extui %0 : i1 to i32
    %c0_i32_0 = arith.constant 0 : i32
    %2 = arith.cmpi ne, %1, %c0_i32_0 : i32
    scf.if %2 {
      %cst_54 = arith.constant 0.000000e+00 : f32
      %62 = vector.broadcast %cst_54 : f32 to vector<78x128xf32>
      %c0_55 = arith.constant 0 : index
      %c0_56 = arith.constant 0 : index
      %63 = vector.load %arg7[%c0_55, %c0_56] : memref<78x128xf32, #tpu.memory_space<vmem>>, vector<78x128xf32>
      tpu.vector_store %arg7[%c0_55, %c0_56], %62 {strides = array<i32>} : memref<78x128xf32, #tpu.memory_space<vmem>>, vector<78x128xf32>,
    } else {
    }
    %c0 = arith.constant 0 : index
    %c0_1 = arith.constant 0 : index
    %3 = vector.load %arg7[%c0, %c0_1] : memref<78x128xf32, #tpu.memory_space<vmem>>, vector<78x128xf32>
    %c0_2 = arith.constant 0 : index
    %c0_3 = arith.constant 0 : index
    %c0_4 = arith.constant 0 : index
    %4 = vector.load %arg3[%c0_2, %c0_3, %c0_4] : memref<1x100x128xbf16, #tpu.memory_space<vmem>>, vector<1x78x128xbf16>
    %5 = vector.shape_cast %4 : vector<1x78x128xbf16> to vector<78x128xbf16>
    %c0_5 = arith.constant 0 : index
    %c0_6 = arith.constant 0 : index
    %c0_7 = arith.constant 0 : index
    %6 = vector.load %arg4[%c0_5, %c0_6, %c0_7] : memref<9x128x128xbf16, #tpu.memory_space<vmem>>, vector<1x128x128xbf16>
    %7 = vector.shape_cast %6 : vector<1x128x128xbf16> to vector<128x128xbf16>
    %cst = arith.constant dense<0.000000e+00> : vector<78x128xf32>
    %8 = tpu.matmul %5, %7, %cst {dimension_numbers = #tpu.dot_dimension_numbers<[1], [0], [0], [1], [0, 0, 1, 1], [], []>} : vector<78x128xbf16>, vector<128x128xbf16>, vector<78x128xf32> -> vector<78x128xf32>
    %9 = arith.addf %3, %8 : vector<78x128xf32>
    %c0_8 = arith.constant 0 : index
    %c1 = arith.constant 1 : index
    %c0_9 = arith.constant 0 : index
    %10 = vector.load %arg3[%c0_8, %c1, %c0_9] : memref<1x100x128xbf16, #tpu.memory_space<vmem>>, vector<1x78x128xbf16>
    %11 = vector.shape_cast %10 : vector<1x78x128xbf16> to vector<78x128xbf16>
    %c1_10 = arith.constant 1 : index
    %c0_11 = arith.constant 0 : index
    %c0_12 = arith.constant 0 : index
    %12 = vector.load %arg4[%c1_10, %c0_11, %c0_12] : memref<9x128x128xbf16, #tpu.memory_space<vmem>>, vector<1x128x128xbf16>
    %13 = vector.shape_cast %12 : vector<1x128x128xbf16> to vector<128x128xbf16>
    %cst_13 = arith.constant dense<0.000000e+00> : vector<78x128xf32>
    %14 = tpu.matmul %11, %13, %cst_13 {dimension_numbers = #tpu.dot_dimension_numbers<[1], [0], [0], [1], [0, 0, 1, 1], [], []>} : vector<78x128xbf16>, vector<128x128xbf16>, vector<78x128xf32> -> vector<78x128xf32>
    %15 = arith.addf %9, %14 : vector<78x128xf32>
    %c0_14 = arith.constant 0 : index
    %c2 = arith.constant 2 : index
    %c0_15 = arith.constant 0 : index
    %16 = vector.load %arg3[%c0_14, %c2, %c0_15] : memref<1x100x128xbf16, #tpu.memory_space<vmem>>, vector<1x78x128xbf16>
    %17 = vector.shape_cast %16 : vector<1x78x128xbf16> to vector<78x128xbf16>
    %c2_16 = arith.constant 2 : index
    %c0_17 = arith.constant 0 : index
    %c0_18 = arith.constant 0 : index
    %18 = vector.load %arg4[%c2_16, %c0_17, %c0_18] : memref<9x128x128xbf16, #tpu.memory_space<vmem>>, vector<1x128x128xbf16>
    %19 = vector.shape_cast %18 : vector<1x128x128xbf16> to vector<128x128xbf16>
    %cst_19 = arith.constant dense<0.000000e+00> : vector<78x128xf32>
    %20 = tpu.matmul %17, %19, %cst_19 {dimension_numbers = #tpu.dot_dimension_numbers<[1], [0], [0], [1], [0, 0, 1, 1], [], []>} : vector<78x128xbf16>, vector<128x128xbf16>, vector<78x128xf32> -> vector<78x128xf32>
    %21 = arith.addf %15, %20 : vector<78x128xf32>
    %c0_20 = arith.constant 0 : index
    %c10 = arith.constant 10 : index
    %c0_21 = arith.constant 0 : index
    %22 = vector.load %arg3[%c0_20, %c10, %c0_21] : memref<1x100x128xbf16, #tpu.memory_space<vmem>>, vector<1x78x128xbf16>
    %23 = vector.shape_cast %22 : vector<1x78x128xbf16> to vector<78x128xbf16>
    %c3 = arith.constant 3 : index
    %c0_22 = arith.constant 0 : index
    %c0_23 = arith.constant 0 : index
    %24 = vector.load %arg4[%c3, %c0_22, %c0_23] : memref<9x128x128xbf16, #tpu.memory_space<vmem>>, vector<1x128x128xbf16>
    %25 = vector.shape_cast %24 : vector<1x128x128xbf16> to vector<128x128xbf16>
    %cst_24 = arith.constant dense<0.000000e+00> : vector<78x128xf32>
    %26 = tpu.matmul %23, %25, %cst_24 {dimension_numbers = #tpu.dot_dimension_numbers<[1], [0], [0], [1], [0, 0, 1, 1], [], []>} : vector<78x128xbf16>, vector<128x128xbf16>, vector<78x128xf32> -> vector<78x128xf32>
    %27 = arith.addf %21, %26 : vector<78x128xf32>
    %c0_25 = arith.constant 0 : index
    %c11 = arith.constant 11 : index
    %c0_26 = arith.constant 0 : index
    %28 = vector.load %arg3[%c0_25, %c11, %c0_26] : memref<1x100x128xbf16, #tpu.memory_space<vmem>>, vector<1x78x128xbf16>
    %29 = vector.shape_cast %28 : vector<1x78x128xbf16> to vector<78x128xbf16>
    %c4 = arith.constant 4 : index
    %c0_27 = arith.constant 0 : index
    %c0_28 = arith.constant 0 : index
    %30 = vector.load %arg4[%c4, %c0_27, %c0_28] : memref<9x128x128xbf16, #tpu.memory_space<vmem>>, vector<1x128x128xbf16>
    %31 = vector.shape_cast %30 : vector<1x128x128xbf16> to vector<128x128xbf16>
    %cst_29 = arith.constant dense<0.000000e+00> : vector<78x128xf32>
    %32 = tpu.matmul %29, %31, %cst_29 {dimension_numbers = #tpu.dot_dimension_numbers<[1], [0], [0], [1], [0, 0, 1, 1], [], []>} : vector<78x128xbf16>, vector<128x128xbf16>, vector<78x128xf32> -> vector<78x128xf32>
    %33 = arith.addf %27, %32 : vector<78x128xf32>
    %c0_30 = arith.constant 0 : index
    %c12 = arith.constant 12 : index
    %c0_31 = arith.constant 0 : index
    %34 = vector.load %arg3[%c0_30, %c12, %c0_31] : memref<1x100x128xbf16, #tpu.memory_space<vmem>>, vector<1x78x128xbf16>
    %35 = vector.shape_cast %34 : vector<1x78x128xbf16> to vector<78x128xbf16>
    %c5 = arith.constant 5 : index
    %c0_32 = arith.constant 0 : index
    %c0_33 = arith.constant 0 : index
    %36 = vector.load %arg4[%c5, %c0_32, %c0_33] : memref<9x128x128xbf16, #tpu.memory_space<vmem>>, vector<1x128x128xbf16>
    %37 = vector.shape_cast %36 : vector<1x128x128xbf16> to vector<128x128xbf16>
    %cst_34 = arith.constant dense<0.000000e+00> : vector<78x128xf32>
    %38 = tpu.matmul %35, %37, %cst_34 {dimension_numbers = #tpu.dot_dimension_numbers<[1], [0], [0], [1], [0, 0, 1, 1], [], []>} : vector<78x128xbf16>, vector<128x128xbf16>, vector<78x128xf32> -> vector<78x128xf32>
    %39 = arith.addf %33, %38 : vector<78x128xf32>
    %c0_35 = arith.constant 0 : index
    %c20 = arith.constant 20 : index
    %c0_36 = arith.constant 0 : index
    %40 = vector.load %arg3[%c0_35, %c20, %c0_36] : memref<1x100x128xbf16, #tpu.memory_space<vmem>>, vector<1x78x128xbf16>
    %41 = vector.shape_cast %40 : vector<1x78x128xbf16> to vector<78x128xbf16>
    %c6 = arith.constant 6 : index
    %c0_37 = arith.constant 0 : index
    %c0_38 = arith.constant 0 : index
    %42 = vector.load %arg4[%c6, %c0_37, %c0_38] : memref<9x128x128xbf16, #tpu.memory_space<vmem>>, vector<1x128x128xbf16>
    %43 = vector.shape_cast %42 : vector<1x128x128xbf16> to vector<128x128xbf16>
    %cst_39 = arith.constant dense<0.000000e+00> : vector<78x128xf32>
    %44 = tpu.matmul %41, %43, %cst_39 {dimension_numbers = #tpu.dot_dimension_numbers<[1], [0], [0], [1], [0, 0, 1, 1], [], []>} : vector<78x128xbf16>, vector<128x128xbf16>, vector<78x128xf32> -> vector<78x128xf32>
    %45 = arith.addf %39, %44 : vector<78x128xf32>
    %c0_40 = arith.constant 0 : index
    %c21 = arith.constant 21 : index
    %c0_41 = arith.constant 0 : index
    %46 = vector.load %arg3[%c0_40, %c21, %c0_41] : memref<1x100x128xbf16, #tpu.memory_space<vmem>>, vector<1x78x128xbf16>
    %47 = vector.shape_cast %46 : vector<1x78x128xbf16> to vector<78x128xbf16>
    %c7 = arith.constant 7 : index
    %c0_42 = arith.constant 0 : index
    %c0_43 = arith.constant 0 : index
    %48 = vector.load %arg4[%c7, %c0_42, %c0_43] : memref<9x128x128xbf16, #tpu.memory_space<vmem>>, vector<1x128x128xbf16>
    %49 = vector.shape_cast %48 : vector<1x128x128xbf16> to vector<128x128xbf16>
    %cst_44 = arith.constant dense<0.000000e+00> : vector<78x128xf32>
    %50 = tpu.matmul %47, %49, %cst_44 {dimension_numbers = #tpu.dot_dimension_numbers<[1], [0], [0], [1], [0, 0, 1, 1], [], []>} : vector<78x128xbf16>, vector<128x128xbf16>, vector<78x128xf32> -> vector<78x128xf32>
    %51 = arith.addf %45, %50 : vector<78x128xf32>
    %c0_45 = arith.constant 0 : index
    %c22 = arith.constant 22 : index
    %c0_46 = arith.constant 0 : index
    %52 = vector.load %arg3[%c0_45, %c22, %c0_46] : memref<1x100x128xbf16, #tpu.memory_space<vmem>>, vector<1x78x128xbf16>
    %53 = vector.shape_cast %52 : vector<1x78x128xbf16> to vector<78x128xbf16>
    %c8 = arith.constant 8 : index
    %c0_47 = arith.constant 0 : index
    %c0_48 = arith.constant 0 : index
    %54 = vector.load %arg4[%c8, %c0_47, %c0_48] : memref<9x128x128xbf16, #tpu.memory_space<vmem>>, vector<1x128x128xbf16>
    %55 = vector.shape_cast %54 : vector<1x128x128xbf16> to vector<128x128xbf16>
    %cst_49 = arith.constant dense<0.000000e+00> : vector<78x128xf32>
    %56 = tpu.matmul %53, %55, %cst_49 {dimension_numbers = #tpu.dot_dimension_numbers<[1], [0], [0], [1], [0, 0, 1, 1], [], []>} : vector<78x128xbf16>, vector<128x128xbf16>, vector<78x128xf32> -> vector<78x128xf32>
    %57 = arith.addf %51, %56 : vector<78x128xf32>
    %c0_50 = arith.constant 0 : index
    %c0_51 = arith.constant 0 : index
    %58 = vector.load %arg7[%c0_50, %c0_51] : memref<78x128xf32, #tpu.memory_space<vmem>>, vector<78x128xf32>
    tpu.vector_store %arg7[%c0_50, %c0_51], %57 {strides = array<i32>} : memref<78x128xf32, #tpu.memory_space<vmem>>, vector<78x128xf32>,
    %c0_i32_52 = arith.constant 0 : i32
    %59 = arith.cmpi eq, %arg2, %c0_i32_52 : i32
    %60 = arith.extui %59 : i1 to i32
    %c0_i32_53 = arith.constant 0 : i32
    %61 = arith.cmpi ne, %60, %c0_i32_53 : i32
    scf.if %61 {
      %c0_54 = arith.constant 0 : index
      %c0_55 = arith.constant 0 : index
      %62 = vector.load %arg7[%c0_54, %c0_55] : memref<78x128xf32, #tpu.memory_space<vmem>>, vector<78x128xf32>
      %c0_56 = arith.constant 0 : index
      %c0_57 = arith.constant 0 : index
      %c0_58 = arith.constant 0 : index
      %63 = vector.load %arg5[%c0_56, %c0_57, %c0_58] : memref<1x78x128xf32, #tpu.memory_space<vmem>>, vector<1x78x128xf32>
      %64 = vector.shape_cast %63 : vector<1x78x128xf32> to vector<78x128xf32>
      %65 = arith.addf %62, %64 : vector<78x128xf32>
      %66 = vector.shape_cast %65 : vector<78x128xf32> to vector<1x78x128xf32>
      %c0_59 = arith.constant 0 : index
      %c0_60 = arith.constant 0 : index
      %c0_61 = arith.constant 0 : index
      %67 = vector.load %arg6[%c0_59, %c0_60, %c0_61] : memref<1x78x128xf32, #tpu.memory_space<vmem>>, vector<1x78x128xf32>
      tpu.vector_store %arg6[%c0_59, %c0_60, %c0_61], %66 {strides = array<i32>} : memref<1x78x128xf32, #tpu.memory_space<vmem>>, vector<1x78x128xf32>,
    } else {
    }
    return
  }
  func.func @transform_0(%arg0: i32, %arg1: i32, %arg2: i32) -> (i32, i32, i32) {
    %c0_i32 = arith.constant 0 : i32
    %c0_i32_0 = arith.constant 0 : i32
    return %arg0, %c0_i32, %arg2 : i32, i32, i32
  }
  func.func @transform_1(%arg0: i32, %arg1: i32, %arg2: i32) -> (i32, i32, i32) {
    %c0_i32 = arith.constant 0 : i32
    %c0_i32_0 = arith.constant 0 : i32
    return %c0_i32, %arg2, %arg1 : i32, i32, i32
  }
  func.func @transform_2(%arg0: i32, %arg1: i32, %arg2: i32) -> (i32, i32, i32) {
    %c0_i32 = arith.constant 0 : i32
    %c0_i32_0 = arith.constant 0 : i32
    return %arg0, %c0_i32, %arg1 : i32, i32, i32
  }
  func.func @transform_3(%arg0: i32, %arg1: i32, %arg2: i32) -> (i32, i32, i32) {
    %c0_i32 = arith.constant 0 : i32
    %c0_i32_0 = arith.constant 0 : i32
    return %arg0, %c0_i32, %arg1 : i32, i32, i32
  }
}

</mosaic_0001>

<bundles_post_ra>
// kernel: preact_block_forward.7
= control target key start
LH: loop header
LB: loop body
LE: loop exit
PB: predicated region body
PF: predicated region fallthrough
CT: control target
= control target key end

     0   :  { %s318_s6 = smov 0   ;;  %s381_s0 = inlined_call_operand.vmem [shape: f32[512,128], index: 0, kind: input, shape index: {}]   ;;  %s382_s1 = inlined_call_operand.vmem [shape: f32[8,128], index: 1, kind: output, shape index: {}]  }
   0x1 LB: > { %s281_s7 = sadd.s32 4294967295, %s305_s6   ;;  %p284_p0 = scmp.ge.s32.totalorder %s305_s6, 1  ;;  %s305_s6 = sphi %s318_s6, %s11_s6  }
   0x2   : > { %p83_p1 = scmp.lt.s32.totalorder %s305_s6, 3 }
   0x4   : > { %p84_p2 = pnand %p284_p0, %p83_p1 }
   0x5   : > { %s285_s8 = sshll.u32 (!%p84_p2), %s281_s7, 5  ;;  %p287_p4 = scmp.ne.s32.totalorder (!%p84_p2), %s281_s7, 0 }
   0x6   : > { %87 = sbr.rel (%p84_p2) target bundleno = 100 (0x64), region = 24  ;;  %p99_p3 = scmp.lt.s32.totalorder (!%p84_p2), %s285_s8, 63 }
   0xd   : > { %s384_s8 = smov (!%p99_p3, %s285_s8), 63  ;;  %107 = sbr.rel (%p287_p4) target bundleno = 20 (0x14), region = 28 }
   0xe   : > { %s286_s9 = sshll.u32 %s384_s8, 3  ;;  %v307_v0 = vmov (!%p287_p4), 0.0  }
   0xf   : > { %s329_s12 = scalar_lea.vmem %s381_s0, %s286_s9  ;;  %108 = vst [vmem:[%s382_s1] sm:$0xff] (!%p287_p4), %v307_v0 }
  0x14 PF: > { %v109_v1 = vld [vmem:[%s329_s12] sm:$0xff]  ;;  %v110_v2 = vld [vmem:[%s329_s12 + $0x8] sm:$0xff]  ;;  %v111_v3 = vld [vmem:[%s329_s12 + $0x10] sm:$0xff] }
  0x15   : > { %v112_v4 = vld [vmem:[%s329_s12 + $0x18] sm:$0xff]  ;;  %v142_v5 = vadd.f32 %v110_v2, %v109_v1  ;;  %v182_v6 = vmul.f32 %v109_v1, %v109_v1  ;;  %v183_v7 = vmul.f32 %v110_v2, %v110_v2  ;;  %v184_v8 = vmul.f32 %v111_v3, %v111_v3  ;;  %v113_v9 = vld [vmem:[%s329_s12 + $0x20] sm:$0xff]  ;;  %v114_v13 = vld [vmem:[%s329_s12 + $0x28] sm:$0xff] }
  0x16   : > { %v185_v11 = vmul.f32 %v112_v4, %v112_v4  ;;  %v186_v15 = vmul.f32 %v113_v9, %v113_v9  ;;  %v115_v17 = vld [vmem:[%s329_s12 + $0x30] sm:$0xff]  ;;  %v187_v19 = vmul.f32 %v114_v13, %v114_v13  ;;  %v116_v21 = vld [vmem:[%s329_s12 + $0x38] sm:$0xff]  ;;  %v117_v25 = vld [vmem:[%s329_s12 + $0x40] sm:$0xff] }
  0x17   : > { %v143_v10 = vadd.f32 %v142_v5, %v111_v3  ;;  %v214_v12 = vadd.f32 %v183_v7, %v182_v6  ;;  %v188_v23 = vmul.f32 %v115_v17, %v115_v17  ;;  %v189_v27 = vmul.f32 %v116_v21, %v116_v21  ;;  %v118_v29 = vld [vmem:[%s329_s12 + $0x48] sm:$0xff]  ;;  %v119_v33 = vld [vmem:[%s329_s12 + $0x50] sm:$0xff]  ;;  %v120_v37 = vld [vmem:[%s329_s12 + $0x58] sm:$0xff] }
  0x18   : > { %v190_v31 = vmul.f32 %v117_v25, %v117_v25  ;;  %v191_v35 = vmul.f32 %v118_v29, %v118_v29  ;;  %v192_v39 = vmul.f32 %v119_v33, %v119_v33  ;;  %v121_v41 = vld [vmem:[%s329_s12 + $0x60] sm:$0xff]  ;;  %v193_v43 = vmul.f32 %v120_v37, %v120_v37  ;;  %v122_v45 = vld [vmem:[%s329_s12 + $0x68] sm:$0xff]  ;;  %v123_v49 = vld [vmem:[%s329_s12 + $0x70] sm:$0xff] }
  0x19   : > { %v144_v14 = vadd.f32 %v143_v10, %v112_v4  ;;  %v215_v16 = vadd.f32 %v214_v12, %v184_v8  ;;  %v194_v47 = vmul.f32 %v121_v41, %v121_v41  ;;  %v195_v51 = vmul.f32 %v122_v45, %v122_v45  ;;  %v124_v53 = vld [vmem:[%s329_s12 + $0x78] sm:$0xff]  ;;  %v125_v57 = vld [vmem:[%s329_s12 + $0x80] sm:$0xff]  ;;  %v126_v61 = vld [vmem:[%s329_s12 + $0x88] sm:$0xff] }
  0x1a   : > { %v196_v55 = vmul.f32 %v123_v49, %v123_v49  ;;  %v197_v59 = vmul.f32 %v124_v53, %v124_v53  ;;  %v198_v63 = vmul.f32 %v125_v57, %v125_v57  ;;  %v127_v1 = vld [vmem:[%s329_s12 + $0x90] sm:$0xff]  ;;  %v199_v3 = vmul.f32 %v126_v61, %v126_v61  ;;  %v128_v5 = vld [vmem:[%s329_s12 + $0x98] sm:$0xff] }
  0x1b   : > { %v145_v18 = vadd.f32 %v144_v14, %v113_v9  ;;  %v216_v20 = vadd.f32 %v215_v16, %v185_v11  ;;  %v200_v7 = vmul.f32 %v127_v1, %v127_v1  ;;  %v129_v9 = vld [vmem:[%s329_s12 + $0xa0] sm:$0xff]  ;;  %v201_v11 = vmul.f32 %v128_v5, %v128_v5 }
  0x1d   : > { %v146_v22 = vadd.f32 %v145_v18, %v114_v13  ;;  %v217_v24 = vadd.f32 %v216_v20, %v186_v15  ;;  %v130_v13 = vld [vmem:[%s329_s12 + $0xa8] sm:$0xff]  ;;  %v202_v15 = vmul.f32 %v129_v9, %v129_v9 }
  0x1f   : > { %v147_v26 = vadd.f32 %v146_v22, %v115_v17  ;;  %v218_v28 = vadd.f32 %v217_v24, %v187_v19  ;;  %v131_v17 = vld [vmem:[%s329_s12 + $0xb0] sm:$0xff]  ;;  %v203_v19 = vmul.f32 %v130_v13, %v130_v13 }
  0x21   : > { %v148_v30 = vadd.f32 %v147_v26, %v116_v21  ;;  %v219_v32 = vadd.f32 %v218_v28, %v188_v23  ;;  %v132_v21 = vld [vmem:[%s329_s12 + $0xb8] sm:$0xff]  ;;  %v204_v23 = vmul.f32 %v131_v17, %v131_v17 }
  0x23   : > { %v149_v34 = vadd.f32 %v148_v30, %v117_v25  ;;  %v220_v36 = vadd.f32 %v219_v32, %v189_v27  ;;  %v133_v25 = vld [vmem:[%s329_s12 + $0xc0] sm:$0xff]  ;;  %v205_v27 = vmul.f32 %v132_v21, %v132_v21 }
  0x25   : > { %v150_v38 = vadd.f32 %v149_v34, %v118_v29  ;;  %v221_v40 = vadd.f32 %v220_v36, %v190_v31  ;;  %v134_v29 = vld [vmem:[%s329_s12 + $0xc8] sm:$0xff]  ;;  %v206_v31 = vmul.f32 %v133_v25, %v133_v25 }
  0x27   : > { %v151_v42 = vadd.f32 %v150_v38, %v119_v33  ;;  %v222_v44 = vadd.f32 %v221_v40, %v191_v35  ;;  %v135_v33 = vld [vmem:[%s329_s12 + $0xd0] sm:$0xff]  ;;  %v207_v35 = vmul.f32 %v134_v29, %v134_v29 }
  0x29   : > { %v152_v46 = vadd.f32 %v151_v42, %v120_v37  ;;  %v223_v48 = vadd.f32 %v222_v44, %v192_v39  ;;  %v136_v37 = vld [vmem:[%s329_s12 + $0xd8] sm:$0xff]  ;;  %v208_v39 = vmul.f32 %v135_v33, %v135_v33 }
  0x2b   : > { %v153_v50 = vadd.f32 %v152_v46, %v121_v41  ;;  %v224_v52 = vadd.f32 %v223_v48, %v193_v43  ;;  %v137_v41 = vld [vmem:[%s329_s12 + $0xe0] sm:$0xff]  ;;  %v209_v43 = vmul.f32 %v136_v37, %v136_v37 }
  0x2d   : > { %v154_v54 = vadd.f32 %v153_v50, %v122_v45  ;;  %v225_v56 = vadd.f32 %v224_v52, %v194_v47  ;;  %v138_v45 = vld [vmem:[%s329_s12 + $0xe8] sm:$0xff]  ;;  %v210_v47 = vmul.f32 %v137_v41, %v137_v41 }
  0x2f   : > { %v155_v58 = vadd.f32 %v154_v54, %v123_v49  ;;  %v226_v60 = vadd.f32 %v225_v56, %v195_v51  ;;  %v139_v49 = vld [vmem:[%s329_s12 + $0xf0] sm:$0xff]  ;;  %v211_v51 = vmul.f32 %v138_v45, %v138_v45 }
  0x31   : > { %v156_v62 = vadd.f32 %v155_v58, %v124_v53  ;;  %v227_v0 = vadd.f32 %v226_v60, %v196_v55  ;;  %v140_v53 = vld [vmem:[%s329_s12 + $0xf8] sm:$0xff]  ;;  %v212_v55 = vmul.f32 %v139_v49, %v139_v49 }
  0x32   : > { %v213_v58 = vmul.f32 %v140_v53, %v140_v53 }
  0x33   : > { %v157_v2 = vadd.f32 %v156_v62, %v125_v57  ;;  %v228_v4 = vadd.f32 %v227_v0, %v197_v59 }
  0x35   : > { %v158_v6 = vadd.f32 %v157_v2, %v126_v61  ;;  %v229_v8 = vadd.f32 %v228_v4, %v198_v63 }
  0x37   : > { %v159_v10 = vadd.f32 %v158_v6, %v127_v1  ;;  %v230_v12 = vadd.f32 %v229_v8, %v199_v3 }
  0x39   : > { %v160_v14 = vadd.f32 %v159_v10, %v128_v5  ;;  %v231_v16 = vadd.f32 %v230_v12, %v200_v7  ;;  %v141_v7 = vld [vmem:[%s382_s1] sm:$0x1]  ;;  %v181_v12 = vld [vmem:[%s382_s1 + $0x1] sm:$0x1] }
  0x3b   : > { %v161_v18 = vadd.f32 %v160_v14, %v129_v9  ;;  %v232_v20 = vadd.f32 %v231_v16, %v201_v11 }
  0x3d   : > { %v162_v22 = vadd.f32 %v161_v18, %v130_v13  ;;  %v233_v24 = vadd.f32 %v232_v20, %v202_v15 }
  0x3f   : > { %v163_v26 = vadd.f32 %v162_v22, %v131_v17  ;;  %v234_v28 = vadd.f32 %v233_v24, %v203_v19 }
  0x41   : > { %v164_v30 = vadd.f32 %v163_v26, %v132_v21  ;;  %v235_v32 = vadd.f32 %v234_v28, %v204_v23 }
  0x43   : > { %v165_v34 = vadd.f32 %v164_v30, %v133_v25  ;;  %v236_v36 = vadd.f32 %v235_v32, %v205_v27 }
  0x45   : > { %v166_v38 = vadd.f32 %v165_v34, %v134_v29  ;;  %v237_v40 = vadd.f32 %v236_v36, %v206_v31 }
  0x47   : > { %v167_v42 = vadd.f32 %v166_v38, %v135_v33  ;;  %v238_v44 = vadd.f32 %v237_v40, %v207_v35 }
  0x49   : > { %v168_v46 = vadd.f32 %v167_v42, %v136_v37  ;;  %v239_v48 = vadd.f32 %v238_v44, %v208_v39 }
  0x4b   : > { %v169_v50 = vadd.f32 %v168_v46, %v137_v41  ;;  %v240_v52 = vadd.f32 %v239_v48, %v209_v43 }
  0x4d   : > { %v170_v54 = vadd.f32 %v169_v50, %v138_v45  ;;  %v241_v56 = vadd.f32 %v240_v52, %v210_v47 }
  0x4f   : > { %v171_v57 = vadd.f32 %v170_v54, %v139_v49  ;;  %v242_v59 = vadd.f32 %v241_v56, %v211_v51 }
  0x51   : > { %v172_v60 = vadd.f32 %v171_v57, %v140_v53  ;;  %v243_v61 = vadd.f32 %v242_v59, %v212_v55 }
  0x53   : > { %v173_v62 = vrot.slane %v172_v60, 4  ;;  %v244_v63 = vadd.f32 %v243_v61, %v213_v58 }
  0x55   : > { %v174_v0 = vadd.f32 %v173_v62, %v172_v60  ;;  %v245_v1 = vrot.slane %v244_v63, 4 }
  0x57   : > { %v175_v2 = vrot.slane %v174_v0, 2  ;;  %v246_v3 = vadd.f32 %v245_v1, %v244_v63 }
  0x59   : > { %v176_v4 = vadd.f32 %v175_v2, %v174_v0  ;;  %v247_v5 = vrot.slane %v246_v3, 2 }
  0x5b   : > { %v177_v6 = vrot.slane %v176_v4, 1  ;;  %v248_v8 = vadd.f32 %v247_v5, %v246_v3 }
  0x5d   : > { %v178_v9 = vadd.f32 %v177_v6, %v176_v4  ;;  %v249_v10 = vrot.slane %v248_v8, 1 }
  0x5f   : > { %v179_v11 = vadd.f32 %v178_v9, %v141_v7  ;;  %v250_v13 = vadd.f32 %v249_v10, %v248_v8 }
  0x61   : > { %180 = vst [vmem:[%s382_s1] sm:$0x1] %v179_v11  ;;  %v251_v14 = vadd.f32 %v250_v13, %v181_v12 }
  0x63   : > { %252 = vst [vmem:[%s382_s1 + $0x1] sm:$0x1] %v251_v14 }
  0x64 PF: > { %s11_s6 = sadd.s32 1, %s305_s6  }
  0x65   : > { %p8_p5 = scmp.ge.s32.totalorder %s11_s6, 4  }
  0x67   :  { %10 = sbr.rel (!%p8_p5) target bundleno = 1 (0x1), region = 54 }

// kernel: preact_block_forward.8
= control target key start
LH: loop header
LB: loop body
LE: loop exit
PB: predicated region body
PF: predicated region fallthrough
CT: control target
= control target key end

     0   :  { %s783_s15 = smov 0   ;;  %s936_s0 = inlined_call_operand.vmem [shape: f32[512,128], index: 0, kind: input, shape index: {}]   ;;  %s937_s1 = inlined_call_operand.vmem [shape: f32[8,128], index: 1, kind: input, shape index: {}]   ;;  %s938_s2 = inlined_call_operand.vmem [shape: f32[1,128], index: 2, kind: input, shape index: {}]   ;;  %s939_s3 = inlined_call_operand.vmem [shape: f32[1,128], index: 3, kind: input, shape index: {}]   ;;  %s940_s4 = inlined_call_operand.vmem [shape: bf16[512,128], index: 4, kind: output, shape index: {}]  }
   0x1 LB: > { %s570_s16 = sadd.s32 4294967295, %s756_s15   ;;  %p574_p0 = scmp.ge.s32.totalorder %s756_s15, 1  ;;  %s756_s15 = sphi %s783_s15, %s14_s15  }
   0x2   : > { %p163_p1 = scmp.lt.s32.totalorder %s756_s15, 3 }
   0x4   : > { %p164_p2 = pnand %p574_p0, %p163_p1 }
   0x5   : > { %v233_v0 = vld [vmem:[%s937_s1] sm:$0x1] (!%p164_p2)  ;;  %v235_v1 = vld [vmem:[%s937_s1 + $0x1] sm:$0x1] (!%p164_p2)  ;;  %s575_s21 = sshll.u32 (!%p164_p2), %s570_s16, 5  ;;  %v247_v7 = vlaneseq (!%p164_p2) }
   0x6   : > { %167 = sbr.rel (%p164_p2) target bundleno = 63 (0x3f), region = 36  ;;  %v234_v2 = vmul.f32 (!%p164_p2), 0.001953125, %v233_v0  ;;  %v236_v3 = vmul.f32 (!%p164_p2), 0.001953125, %v235_v1  ;;  %p190_p3 = scmp.lt.s32.totalorder (!%p164_p2), %s575_s21, 63  ;;  %v239_v9 = vld [vmem:[%s938_s2] sm:$0x1] (!%p164_p2) }
   0x7   : > { %v248_v8 = vshrl.u32 (!%p164_p2), %v247_v7, 7  ;;  %v243_v15 = vld [vmem:[%s939_s3] sm:$0x1] (!%p164_p2) }
   0x8   : > { %v237_v4 = vmul.f32 (!%p164_p2), %v234_v2, %v234_v2 }
   0x9   : > { %v249_v10 = vsub.s32 (!%p164_p2), 0, %v248_v8 }
   0xa   : > { %v238_v5 = vsub.f32 (!%p164_p2), %v236_v3, %v237_v4 }
   0xc   : > { %v240_v6 = vadd.f32 (!%p164_p2), 1e-05, %v238_v5 }
   0xd   : > { %s942_s21 = smov (!%p190_p3, %s575_s21), 63 }
   0xe   : > { %748 = vrsqrt.f32 %v240_v6  ;;  %s576_s22 = sshll.u32 %s942_s21, 3  ;;  %s578_s30 = sshll.u32 %s942_s21, 2 }
   0xf   : > { %s803_s25 = scalar_lea.vmem %s936_s0, %s576_s22  ;;  %s855_s7 = scalar_lea.vmem %s940_s4, %s578_s30 }
  0x10   : > { %v201_v12 = vld [vmem:[%s803_s25] sm:$0xff]  ;;  %v202_v13 = vld [vmem:[%s803_s25 + $0x8] sm:$0xff]  ;;  %v203_v16 = vld [vmem:[%s803_s25 + $0x10] sm:$0xff] }
  0x11   : > { %v204_v17 = vld [vmem:[%s803_s25 + $0x18] sm:$0xff]  ;;  %v205_v18 = vld [vmem:[%s803_s25 + $0x20] sm:$0xff]  ;;  %v206_v21 = vld [vmem:[%s803_s25 + $0x28] sm:$0xff] }
  0x12   : > { %v207_v22 = vld [vmem:[%s803_s25 + $0x30] sm:$0xff]  ;;  %v208_v23 = vld [vmem:[%s803_s25 + $0x38] sm:$0xff]  ;;  %v209_v24 = vld [vmem:[%s803_s25 + $0x40] sm:$0xff] }
  0x13   : > { %v210_v25 = vld [vmem:[%s803_s25 + $0x48] sm:$0xff]  ;;  %v211_v26 = vld [vmem:[%s803_s25 + $0x50] sm:$0xff]  ;;  %v212_v31 = vld [vmem:[%s803_s25 + $0x58] sm:$0xff] }
  0x14   : > { %v213_v32 = vld [vmem:[%s803_s25 + $0x60] sm:$0xff]  ;;  %v214_v33 = vld [vmem:[%s803_s25 + $0x68] sm:$0xff]  ;;  %v216_v3 = vld [vmem:[%s803_s25 + $0x78] sm:$0xff] }
  0x15   : > { %v217_v8 = vld [vmem:[%s803_s25 + $0x80] sm:$0xff] }
  0x18   : > { %v749_v11 = vpop.eup %748 }
  0x19   : > { %v242_v14 = vmul.f32 %v749_v11, %v239_v9 }
  0x1b   : > { %v244_v19 = vmul.f32 %v242_v14, %v234_v2  ;;  %v816_v20 = vrot.slane %v242_v14, %v249_v10  ;;  %v215_v2 = vld [vmem:[%s803_s25 + $0x70] sm:$0xff] }
  0x1d   : > { %v245_v27 = vsub.f32 %v243_v15, %v244_v19  ;;  %v252_v28 = vmul.f32 %v816_v20, %v201_v12  ;;  %v253_v29 = vmul.f32 %v816_v20, %v202_v13  ;;  %v254_v30 = vmul.f32 %v816_v20, %v203_v16  ;;  %v218_v13 = vld [vmem:[%s803_s25 + $0x88] sm:$0xff]  ;;  %v220_v19 = vld [vmem:[%s803_s25 + $0x98] sm:$0xff] }
  0x1e   : > { %v255_v34 = vmul.f32 %v816_v20, %v204_v17  ;;  %v256_v35 = vmul.f32 %v816_v20, %v205_v18  ;;  %v257_v36 = vmul.f32 %v816_v20, %v206_v21  ;;  %v258_v37 = vmul.f32 %v816_v20, %v207_v22  ;;  %v219_v18 = vld [vmem:[%s803_s25 + $0x90] sm:$0xff] }
  0x1f   : > { %v834_v38 = vrot.slane %v245_v27, %v249_v10  ;;  %v259_v39 = vmul.f32 %v816_v20, %v208_v23  ;;  %v260_v40 = vmul.f32 %v816_v20, %v209_v24  ;;  %v261_v41 = vmul.f32 %v816_v20, %v210_v25  ;;  %v221_v25 = vld [vmem:[%s803_s25 + $0xa0] sm:$0xff] }
  0x20   : > { %v262_v42 = vmul.f32 %v816_v20, %v211_v26  ;;  %v263_v43 = vmul.f32 %v816_v20, %v212_v31  ;;  %v264_v44 = vmul.f32 %v816_v20, %v213_v32  ;;  %v265_v45 = vmul.f32 %v816_v20, %v214_v33 }
  0x21   : > { %v290_v46 = vadd.f32 %v834_v38, %v252_v28  ;;  %v291_v47 = vadd.f32 %v834_v38, %v253_v29  ;;  %v292_v48 = vadd.f32 %v834_v38, %v254_v30  ;;  %v293_v49 = vadd.f32 %v834_v38, %v255_v34  ;;  %v222_v30 = vld [vmem:[%s803_s25 + $0xa8] sm:$0xff] }
  0x22   : > { %v294_v50 = vadd.f32 %v834_v38, %v256_v35  ;;  %v295_v51 = vadd.f32 %v834_v38, %v257_v36  ;;  %v296_v52 = vadd.f32 %v834_v38, %v258_v37  ;;  %v297_v53 = vadd.f32 %v834_v38, %v259_v39  ;;  %v223_v35 = vld [vmem:[%s803_s25 + $0xb0] sm:$0xff] }
  0x23   : > { %v322_v54 = vmax.f32 %v290_v46, 0.0  ;;  %v323_v55 = vmax.f32 %v291_v47, 0.0  ;;  %v324_v56 = vmax.f32 %v292_v48, 0.0  ;;  %v325_v57 = vmax.f32 %v293_v49, 0.0  ;;  %v225_v46 = vld [vmem:[%s803_s25 + $0xc0] sm:$0xff] }
  0x24   : > { %v326_v58 = vmax.f32 %v294_v50, 0.0  ;;  %v327_v59 = vmax.f32 %v295_v51, 0.0  ;;  %v328_v60 = vmax.f32 %v296_v52, 0.0  ;;  %v329_v61 = vmax.f32 %v297_v53, 0.0  ;;  %v226_v51 = vld [vmem:[%s803_s25 + $0xc8] sm:$0xff] }
  0x25   : > { %v648_v62 = vpack.c.bf16 %v323_v55, %v322_v54  ;;  %v653_v63 = vpack.c.bf16 %v325_v57, %v324_v56  ;;  %v298_v0 = vadd.f32 %v834_v38, %v260_v40  ;;  %v299_v1 = vadd.f32 %v834_v38, %v261_v41  ;;  %v224_v41 = vld [vmem:[%s803_s25 + $0xb8] sm:$0xff]  ;;  %v227_v56 = vld [vmem:[%s803_s25 + $0xd0] sm:$0xff] }
  0x26   : > { %v658_v4 = vpack.c.bf16 %v327_v59, %v326_v58  ;;  %v663_v5 = vpack.c.bf16 %v329_v61, %v328_v60  ;;  %v300_v6 = vadd.f32 %v834_v38, %v262_v42  ;;  %v301_v7 = vadd.f32 %v834_v38, %v263_v43  ;;  %v228_v57 = vld [vmem:[%s803_s25 + $0xd8] sm:$0xff] }
  0x27   : > { %649 = vst [vmem:[%s855_s7] sm:$0xff] %v648_v62   ;;  %725 = vst [vmem:[%s855_s7 + $0x8] sm:$0xff] %v653_v63   ;;  %v330_v9 = vmax.f32 %v298_v0, 0.0  ;;  %v331_v10 = vmax.f32 %v299_v1, 0.0  ;;  %v302_v11 = vadd.f32 %v834_v38, %v264_v44  ;;  %v303_v12 = vadd.f32 %v834_v38, %v265_v45  ;;  %v229_v62 = vld [vmem:[%s803_s25 + $0xe0] sm:$0xff] }
  0x28   : > { %726 = vst [vmem:[%s855_s7 + $0x10] sm:$0xff] %v658_v4   ;;  %727 = vst [vmem:[%s855_s7 + $0x18] sm:$0xff] %v663_v5   ;;  %v332_v14 = vmax.f32 %v300_v6, 0.0  ;;  %v333_v15 = vmax.f32 %v301_v7, 0.0  ;;  %v266_v16 = vmul.f32 %v816_v20, %v215_v2  ;;  %v267_v17 = vmul.f32 %v816_v20, %v216_v3  ;;  %v230_v3 = vld [vmem:[%s803_s25 + $0xe8] sm:$0xff] }
  0x29   : > { %v668_v21 = vpack.c.bf16 %v331_v10, %v330_v9  ;;  %v334_v22 = vmax.f32 %v302_v11, 0.0  ;;  %v335_v23 = vmax.f32 %v303_v12, 0.0  ;;  %v268_v24 = vmul.f32 %v816_v20, %v217_v8  ;;  %v231_v8 = vld [vmem:[%s803_s25 + $0xf0] sm:$0xff] }
  0x2a   : > { %v673_v26 = vpack.c.bf16 %v333_v15, %v332_v14  ;;  %v304_v27 = vadd.f32 %v834_v38, %v266_v16  ;;  %v305_v28 = vadd.f32 %v834_v38, %v267_v17  ;;  %v269_v29 = vmul.f32 %v816_v20, %v218_v13  ;;  %v232_v13 = vld [vmem:[%s803_s25 + $0xf8] sm:$0xff] }
  0x2b   : > { %728 = vst [vmem:[%s855_s7 + $0x20] sm:$0xff] %v668_v21   ;;  %v678_v31 = vpack.c.bf16 %v335_v23, %v334_v22  ;;  %v306_v32 = vadd.f32 %v834_v38, %v268_v24  ;;  %v270_v33 = vmul.f32 %v816_v20, %v219_v18  ;;  %v271_v34 = vmul.f32 %v816_v20, %v220_v19 }
  0x2c   : > { %729 = vst [vmem:[%s855_s7 + $0x28] sm:$0xff] %v673_v26   ;;  %v336_v36 = vmax.f32 %v304_v27, 0.0  ;;  %v337_v37 = vmax.f32 %v305_v28, 0.0  ;;  %v307_v39 = vadd.f32 %v834_v38, %v269_v29  ;;  %v272_v40 = vmul.f32 %v816_v20, %v221_v25 }
  0x2d   : > { %730 = vst [vmem:[%s855_s7 + $0x30] sm:$0xff] %v678_v31   ;;  %v338_v42 = vmax.f32 %v306_v32, 0.0  ;;  %v308_v43 = vadd.f32 %v834_v38, %v270_v33  ;;  %v309_v44 = vadd.f32 %v834_v38, %v271_v34  ;;  %v273_v45 = vmul.f32 %v816_v20, %v222_v30 }
  0x2e   : > { %v683_v47 = vpack.c.bf16 %v337_v37, %v336_v36  ;;  %v339_v48 = vmax.f32 %v307_v39, 0.0  ;;  %v310_v49 = vadd.f32 %v834_v38, %v272_v40  ;;  %v274_v50 = vmul.f32 %v816_v20, %v223_v35 }
  0x2f   : > { %v340_v52 = vmax.f32 %v308_v43, 0.0  ;;  %v341_v53 = vmax.f32 %v309_v44, 0.0  ;;  %v311_v54 = vadd.f32 %v834_v38, %v273_v45  ;;  %v275_v55 = vmul.f32 %v816_v20, %v224_v41 }
  0x30   : > { %731 = vst [vmem:[%s855_s7 + $0x38] sm:$0xff] %v683_v47   ;;  %v688_v58 = vpack.c.bf16 %v339_v48, %v338_v42  ;;  %v342_v59 = vmax.f32 %v310_v49, 0.0  ;;  %v312_v60 = vadd.f32 %v834_v38, %v274_v50  ;;  %v276_v61 = vmul.f32 %v816_v20, %v225_v46 }
  0x31   : > { %v693_v63 = vpack.c.bf16 %v341_v53, %v340_v52  ;;  %v343_v0 = vmax.f32 %v311_v54, 0.0  ;;  %v313_v1 = vadd.f32 %v834_v38, %v275_v55  ;;  %v277_v2 = vmul.f32 %v816_v20, %v226_v51 }
  0x32   : > { %732 = vst [vmem:[%s855_s7 + $0x40] sm:$0xff] %v688_v58   ;;  %v344_v4 = vmax.f32 %v312_v60, 0.0  ;;  %v314_v5 = vadd.f32 %v834_v38, %v276_v61  ;;  %v278_v6 = vmul.f32 %v816_v20, %v227_v56  ;;  %v279_v7 = vmul.f32 %v816_v20, %v228_v57 }
  0x33   : > { %733 = vst [vmem:[%s855_s7 + $0x48] sm:$0xff] %v693_v63   ;;  %v698_v9 = vpack.c.bf16 %v343_v0, %v342_v59  ;;  %v345_v10 = vmax.f32 %v313_v1, 0.0  ;;  %v315_v11 = vadd.f32 %v834_v38, %v277_v2  ;;  %v280_v12 = vmul.f32 %v816_v20, %v229_v62 }
  0x34   : > { %v346_v14 = vmax.f32 %v314_v5, 0.0  ;;  %v316_v15 = vadd.f32 %v834_v38, %v278_v6  ;;  %v317_v16 = vadd.f32 %v834_v38, %v279_v7  ;;  %v281_v17 = vmul.f32 %v816_v20, %v230_v3 }
  0x35   : > { %734 = vst [vmem:[%s855_s7 + $0x50] sm:$0xff] %v698_v9   ;;  %v703_v18 = vpack.c.bf16 %v345_v10, %v344_v4  ;;  %v347_v19 = vmax.f32 %v315_v11, 0.0  ;;  %v318_v21 = vadd.f32 %v834_v38, %v280_v12  ;;  %v282_v22 = vmul.f32 %v816_v20, %v231_v8 }
  0x36   : > { %v348_v23 = vmax.f32 %v316_v15, 0.0  ;;  %v349_v24 = vmax.f32 %v317_v16, 0.0  ;;  %v319_v25 = vadd.f32 %v834_v38, %v281_v17  ;;  %v283_v26 = vmul.f32 %v816_v20, %v232_v13 }
  0x37   : > { %735 = vst [vmem:[%s855_s7 + $0x58] sm:$0xff] %v703_v18   ;;  %v708_v27 = vpack.c.bf16 %v347_v19, %v346_v14  ;;  %v350_v28 = vmax.f32 %v318_v21, 0.0  ;;  %v320_v29 = vadd.f32 %v834_v38, %v282_v22 }
  0x38   : > { %v713_v30 = vpack.c.bf16 %v349_v24, %v348_v23  ;;  %v351_v31 = vmax.f32 %v319_v25, 0.0  ;;  %v321_v32 = vadd.f32 %v834_v38, %v283_v26 }
  0x39   : > { %736 = vst [vmem:[%s855_s7 + $0x60] sm:$0xff] %v708_v27   ;;  %v352_v33 = vmax.f32 %v320_v29, 0.0 }
  0x3a   : > { %737 = vst [vmem:[%s855_s7 + $0x68] sm:$0xff] %v713_v30   ;;  %v718_v34 = vpack.c.bf16 %v351_v31, %v350_v28  ;;  %v353_v35 = vmax.f32 %v321_v32, 0.0 }
  0x3c   : > { %738 = vst [vmem:[%s855_s7 + $0x70] sm:$0xff] %v718_v34   ;;  %v723_v36 = vpack.c.bf16 %v353_v35, %v352_v33 }
  0x3e   : > { %739 = vst [vmem:[%s855_s7 + $0x78] sm:$0xff] %v723_v36  }
  0x3f PF: > { %s14_s15 = sadd.s32 1, %s756_s15  }
  0x40   : > { %p11_p4 = scmp.ge.s32.totalorder %s14_s15, 4  }
  0x42   :  { %13 = sbr.rel (!%p11_p4) target bundleno = 1 (0x1), region = 66 }

// kernel: preact_block_forward.11
= control target key start
LH: loop header
LB: loop body
LE: loop exit
PB: predicated region body
PF: predicated region fallthrough
CT: control target
= control target key end

     0   :  { %v98_v0 = vmov 0.0   ;;  %s172_s1 = inlined_call_operand.vmem [shape: f32[8,128], index: 1, kind: output, shape index: {}]   ;;  %s173_s0 = inlined_call_operand.vmem [shape: f32[128,128], index: 0, kind: input, shape index: {}]  }
   0x1   :  { %12 = vst [vmem:[%s172_s1] sm:$0xff] %v98_v0  ;;  %v13_v1 = vld [vmem:[%s173_s0] sm:$0xff]  ;;  %v14_v2 = vld [vmem:[%s173_s0 + $0x8] sm:$0xff]  ;;  %v15_v3 = vld [vmem:[%s173_s0 + $0x10] sm:$0xff] }
   0x2   :  { %v16_v4 = vld [vmem:[%s173_s0 + $0x18] sm:$0xff]  ;;  %v30_v5 = vadd.f32 %v14_v2, %v13_v1  ;;  %v54_v6 = vmul.f32 %v13_v1, %v13_v1  ;;  %v55_v7 = vmul.f32 %v14_v2, %v14_v2  ;;  %v56_v8 = vmul.f32 %v15_v3, %v15_v3  ;;  %v17_v9 = vld [vmem:[%s173_s0 + $0x20] sm:$0xff]  ;;  %v18_v13 = vld [vmem:[%s173_s0 + $0x28] sm:$0xff] }
   0x3   :  { %v57_v11 = vmul.f32 %v16_v4, %v16_v4  ;;  %v58_v15 = vmul.f32 %v17_v9, %v17_v9  ;;  %v19_v17 = vld [vmem:[%s173_s0 + $0x30] sm:$0xff]  ;;  %v59_v19 = vmul.f32 %v18_v13, %v18_v13  ;;  %v20_v21 = vld [vmem:[%s173_s0 + $0x38] sm:$0xff]  ;;  %v21_v25 = vld [vmem:[%s173_s0 + $0x40] sm:$0xff] }
   0x4   :  { %v31_v10 = vadd.f32 %v30_v5, %v15_v3  ;;  %v70_v12 = vadd.f32 %v55_v7, %v54_v6  ;;  %v60_v23 = vmul.f32 %v19_v17, %v19_v17  ;;  %v61_v27 = vmul.f32 %v20_v21, %v20_v21  ;;  %v22_v29 = vld [vmem:[%s173_s0 + $0x48] sm:$0xff]  ;;  %v23_v33 = vld [vmem:[%s173_s0 + $0x50] sm:$0xff]  ;;  %v24_v37 = vld [vmem:[%s173_s0 + $0x58] sm:$0xff] }
   0x5   :  { %v62_v31 = vmul.f32 %v21_v25, %v21_v25  ;;  %v63_v35 = vmul.f32 %v22_v29, %v22_v29  ;;  %v64_v39 = vmul.f32 %v23_v33, %v23_v33  ;;  %v25_v41 = vld [vmem:[%s173_s0 + $0x60] sm:$0xff]  ;;  %v65_v43 = vmul.f32 %v24_v37, %v24_v37  ;;  %v26_v45 = vld [vmem:[%s173_s0 + $0x68] sm:$0xff]  ;;  %v27_v49 = vld [vmem:[%s173_s0 + $0x70] sm:$0xff] }
   0x6   :  { %v32_v14 = vadd.f32 %v31_v10, %v16_v4  ;;  %v71_v16 = vadd.f32 %v70_v12, %v56_v8  ;;  %v66_v47 = vmul.f32 %v25_v41, %v25_v41  ;;  %v67_v51 = vmul.f32 %v26_v45, %v26_v45  ;;  %v28_v53 = vld [vmem:[%s173_s0 + $0x78] sm:$0xff] }
   0x7   :  { %v68_v55 = vmul.f32 %v27_v49, %v27_v49  ;;  %v69_v58 = vmul.f32 %v28_v53, %v28_v53 }
   0x8   :  { %v33_v18 = vadd.f32 %v32_v14, %v17_v9  ;;  %v72_v20 = vadd.f32 %v71_v16, %v57_v11  ;;  %v29_v7 = vld [vmem:[%s172_s1] sm:$0x1]  ;;  %v53_v12 = vld [vmem:[%s172_s1 + $0x1] sm:$0x1] }
   0xa   :  { %v34_v22 = vadd.f32 %v33_v18, %v18_v13  ;;  %v73_v24 = vadd.f32 %v72_v20, %v58_v15 }
   0xc   :  { %v35_v26 = vadd.f32 %v34_v22, %v19_v17  ;;  %v74_v28 = vadd.f32 %v73_v24, %v59_v19 }
   0xe   :  { %v36_v30 = vadd.f32 %v35_v26, %v20_v21  ;;  %v75_v32 = vadd.f32 %v74_v28, %v60_v23 }
  0x10   :  { %v37_v34 = vadd.f32 %v36_v30, %v21_v25  ;;  %v76_v36 = vadd.f32 %v75_v32, %v61_v27 }
  0x12   :  { %v38_v38 = vadd.f32 %v37_v34, %v22_v29  ;;  %v77_v40 = vadd.f32 %v76_v36, %v62_v31 }
  0x14   :  { %v39_v42 = vadd.f32 %v38_v38, %v23_v33  ;;  %v78_v44 = vadd.f32 %v77_v40, %v63_v35 }
  0x16   :  { %v40_v46 = vadd.f32 %v39_v42, %v24_v37  ;;  %v79_v48 = vadd.f32 %v78_v44, %v64_v39 }
  0x18   :  { %v41_v50 = vadd.f32 %v40_v46, %v25_v41  ;;  %v80_v52 = vadd.f32 %v79_v48, %v65_v43 }
  0x1a   :  { %v42_v54 = vadd.f32 %v41_v50, %v26_v45  ;;  %v81_v56 = vadd.f32 %v80_v52, %v66_v47 }
  0x1c   :  { %v43_v57 = vadd.f32 %v42_v54, %v27_v49  ;;  %v82_v59 = vadd.f32 %v81_v56, %v67_v51 }
  0x1e   :  { %v44_v60 = vadd.f32 %v43_v57, %v28_v53  ;;  %v83_v61 = vadd.f32 %v82_v59, %v68_v55 }
  0x20   :  { %v45_v62 = vrot.slane %v44_v60, 4  ;;  %v84_v63 = vadd.f32 %v83_v61, %v69_v58 }
  0x22   :  { %v46_v0 = vadd.f32 %v45_v62, %v44_v60  ;;  %v85_v1 = vrot.slane %v84_v63, 4 }
  0x24   :  { %v47_v2 = vrot.slane %v46_v0, 2  ;;  %v86_v3 = vadd.f32 %v85_v1, %v84_v63 }
  0x26   :  { %v48_v4 = vadd.f32 %v47_v2, %v46_v0  ;;  %v87_v5 = vrot.slane %v86_v3, 2 }
  0x28   :  { %v49_v6 = vrot.slane %v48_v4, 1  ;;  %v88_v8 = vadd.f32 %v87_v5, %v86_v3 }
  0x2a   :  { %v50_v9 = vadd.f32 %v49_v6, %v48_v4  ;;  %v89_v10 = vrot.slane %v88_v8, 1 }
  0x2c   :  { %v51_v11 = vadd.f32 %v50_v9, %v29_v7  ;;  %v90_v13 = vadd.f32 %v89_v10, %v88_v8 }
  0x2e   :  { %52 = vst [vmem:[%s172_s1] sm:$0x1] %v51_v11  ;;  %v91_v14 = vadd.f32 %v90_v13, %v53_v12 }
  0x30   :  { %92 = vst [vmem:[%s172_s1 + $0x1] sm:$0x1] %v91_v14 }

// kernel: preact_block_forward.12
= control target key start
LH: loop header
LB: loop body
LE: loop exit
PB: predicated region body
PF: predicated region fallthrough
CT: control target
= control target key end

     0   :  { %v47_v7 = vlaneseq  ;;  %s398_s1 = inlined_call_operand.vmem [shape: f32[8,128], index: 1, kind: input, shape index: {}]   ;;  %s399_s2 = inlined_call_operand.vmem [shape: f32[1,128], index: 2, kind: input, shape index: {}]   ;;  %s400_s0 = inlined_call_operand.vmem [shape: f32[128,128], index: 0, kind: input, shape index: {}]   ;;  %s401_s3 = inlined_call_operand.vmem [shape: f32[1,128], index: 3, kind: input, shape index: {}]   ;;  %s402_s4 = inlined_call_operand.vmem [shape: bf16[128,128], index: 4, kind: output, shape index: {}]  }
   0x1   :  { %v33_v0 = vld [vmem:[%s398_s1] sm:$0x1]  ;;  %v35_v2 = vld [vmem:[%s398_s1 + $0x1] sm:$0x1]  ;;  %v18_v13 = vld [vmem:[%s400_s0 + $0x8] sm:$0xff] }
   0x2   :  { %v34_v1 = vmul.f32 0.0078125, %v33_v0  ;;  %v36_v3 = vmul.f32 0.0078125, %v35_v2  ;;  %v48_v8 = vshrl.u32 %v47_v7, 7  ;;  %v39_v9 = vld [vmem:[%s399_s2] sm:$0x1]  ;;  %v19_v16 = vld [vmem:[%s400_s0 + $0x10] sm:$0xff] }
   0x3   :  { %v17_v12 = vld [vmem:[%s400_s0] sm:$0xff]  ;;  %v20_v17 = vld [vmem:[%s400_s0 + $0x18] sm:$0xff]  ;;  %v22_v21 = vld [vmem:[%s400_s0 + $0x28] sm:$0xff] }
   0x4   :  { %v37_v4 = vmul.f32 %v34_v1, %v34_v1  ;;  %v49_v10 = vsub.s32 0, %v48_v8  ;;  %v43_v15 = vld [vmem:[%s401_s3] sm:$0x1]  ;;  %v23_v22 = vld [vmem:[%s400_s0 + $0x30] sm:$0xff]  ;;  %v24_v23 = vld [vmem:[%s400_s0 + $0x38] sm:$0xff] }
   0x5   :  { %v21_v18 = vld [vmem:[%s400_s0 + $0x20] sm:$0xff]  ;;  %v26_v25 = vld [vmem:[%s400_s0 + $0x48] sm:$0xff]  ;;  %v27_v26 = vld [vmem:[%s400_s0 + $0x50] sm:$0xff] }
   0x6   :  { %v38_v5 = vsub.f32 %v36_v3, %v37_v4  ;;  %v25_v24 = vld [vmem:[%s400_s0 + $0x40] sm:$0xff]  ;;  %v28_v31 = vld [vmem:[%s400_s0 + $0x58] sm:$0xff]  ;;  %v30_v33 = vld [vmem:[%s400_s0 + $0x68] sm:$0xff] }
   0x7   :  { %v29_v32 = vld [vmem:[%s400_s0 + $0x60] sm:$0xff]  ;;  %v31_v2 = vld [vmem:[%s400_s0 + $0x70] sm:$0xff]  ;;  %v32_v3 = vld [vmem:[%s400_s0 + $0x78] sm:$0xff] }
   0x8   :  { %v40_v6 = vadd.f32 1e-05, %v38_v5 }
   0xa   :  { %269 = vrsqrt.f32 %v40_v6 }
  0x14   :  { %v270_v11 = vpop.eup %269 }
  0x15   :  { %v42_v14 = vmul.f32 %v270_v11, %v39_v9 }
  0x17   :  { %v44_v19 = vmul.f32 %v42_v14, %v34_v1  ;;  %v323_v20 = vrot.slane %v42_v14, %v49_v10 }
  0x19   :  { %v45_v27 = vsub.f32 %v43_v15, %v44_v19  ;;  %v52_v28 = vmul.f32 %v323_v20, %v17_v12  ;;  %v53_v29 = vmul.f32 %v323_v20, %v18_v13  ;;  %v54_v30 = vmul.f32 %v323_v20, %v19_v16 }
  0x1a   :  { %v55_v34 = vmul.f32 %v323_v20, %v20_v17  ;;  %v56_v35 = vmul.f32 %v323_v20, %v21_v18  ;;  %v57_v36 = vmul.f32 %v323_v20, %v22_v21  ;;  %v58_v37 = vmul.f32 %v323_v20, %v23_v22 }
  0x1b   :  { %v72_v38 = vrot.slane %v45_v27, %v49_v10  ;;  %v59_v39 = vmul.f32 %v323_v20, %v24_v23  ;;  %v60_v40 = vmul.f32 %v323_v20, %v25_v24  ;;  %v61_v41 = vmul.f32 %v323_v20, %v26_v25 }
  0x1c   :  { %v62_v42 = vmul.f32 %v323_v20, %v27_v26  ;;  %v63_v43 = vmul.f32 %v323_v20, %v28_v31  ;;  %v64_v44 = vmul.f32 %v323_v20, %v29_v32  ;;  %v65_v45 = vmul.f32 %v323_v20, %v30_v33 }
  0x1d   :  { %v74_v46 = vadd.f32 %v72_v38, %v52_v28  ;;  %v75_v47 = vadd.f32 %v72_v38, %v53_v29  ;;  %v76_v48 = vadd.f32 %v72_v38, %v54_v30  ;;  %v77_v49 = vadd.f32 %v72_v38, %v55_v34 }
  0x1e   :  { %v78_v50 = vadd.f32 %v72_v38, %v56_v35  ;;  %v79_v51 = vadd.f32 %v72_v38, %v57_v36  ;;  %v80_v52 = vadd.f32 %v72_v38, %v58_v37  ;;  %v81_v53 = vadd.f32 %v72_v38, %v59_v39 }
  0x1f   :  { %v90_v54 = vmax.f32 %v74_v46, 0.0  ;;  %v91_v55 = vmax.f32 %v75_v47, 0.0  ;;  %v92_v56 = vmax.f32 %v76_v48, 0.0  ;;  %v93_v57 = vmax.f32 %v77_v49, 0.0 }
  0x20   :  { %v94_v58 = vmax.f32 %v78_v50, 0.0  ;;  %v95_v59 = vmax.f32 %v79_v51, 0.0  ;;  %v96_v60 = vmax.f32 %v80_v52, 0.0  ;;  %v97_v61 = vmax.f32 %v81_v53, 0.0 }
  0x21   :  { %v225_v62 = vpack.c.bf16 %v91_v55, %v90_v54  ;;  %v230_v63 = vpack.c.bf16 %v93_v57, %v92_v56  ;;  %v82_v0 = vadd.f32 %v72_v38, %v60_v40  ;;  %v83_v1 = vadd.f32 %v72_v38, %v61_v41 }
  0x22   :  { %v235_v4 = vpack.c.bf16 %v95_v59, %v94_v58  ;;  %v240_v5 = vpack.c.bf16 %v97_v61, %v96_v60  ;;  %v84_v6 = vadd.f32 %v72_v38, %v62_v42  ;;  %v85_v7 = vadd.f32 %v72_v38, %v63_v43 }
  0x23   :  { %226 = vst [vmem:[%s402_s4] sm:$0xff] %v225_v62   ;;  %262 = vst [vmem:[%s402_s4 + $0x8] sm:$0xff] %v230_v63   ;;  %v98_v8 = vmax.f32 %v82_v0, 0.0  ;;  %v99_v9 = vmax.f32 %v83_v1, 0.0  ;;  %v86_v10 = vadd.f32 %v72_v38, %v64_v44  ;;  %v87_v11 = vadd.f32 %v72_v38, %v65_v45 }
  0x24   :  { %263 = vst [vmem:[%s402_s4 + $0x10] sm:$0xff] %v235_v4   ;;  %264 = vst [vmem:[%s402_s4 + $0x18] sm:$0xff] %v240_v5   ;;  %v100_v12 = vmax.f32 %v84_v6, 0.0  ;;  %v101_v13 = vmax.f32 %v85_v7, 0.0  ;;  %v66_v14 = vmul.f32 %v323_v20, %v31_v2  ;;  %v67_v15 = vmul.f32 %v323_v20, %v32_v3 }
  0x25   :  { %v245_v16 = vpack.c.bf16 %v99_v9, %v98_v8  ;;  %v102_v17 = vmax.f32 %v86_v10, 0.0  ;;  %v103_v18 = vmax.f32 %v87_v11, 0.0 }
  0x26   :  { %v250_v19 = vpack.c.bf16 %v101_v13, %v100_v12  ;;  %v88_v21 = vadd.f32 %v72_v38, %v66_v14  ;;  %v89_v22 = vadd.f32 %v72_v38, %v67_v15 }
  0x27   :  { %265 = vst [vmem:[%s402_s4 + $0x20] sm:$0xff] %v245_v16   ;;  %v255_v23 = vpack.c.bf16 %v103_v18, %v102_v17 }
  0x28   :  { %266 = vst [vmem:[%s402_s4 + $0x28] sm:$0xff] %v250_v19   ;;  %v104_v24 = vmax.f32 %v88_v21, 0.0  ;;  %v105_v25 = vmax.f32 %v89_v22, 0.0 }
  0x29   :  { %267 = vst [vmem:[%s402_s4 + $0x30] sm:$0xff] %v255_v23  }
  0x2a   :  { %v260_v20 = vpack.c.bf16 %v105_v25, %v104_v24 }
  0x2c   :  { %268 = vst [vmem:[%s402_s4 + $0x38] sm:$0xff] %v260_v20  }

// kernel: preact_block_forward.10
= control target key start
LH: loop header
LB: loop body
LE: loop exit
PB: predicated region body
PF: predicated region fallthrough
CT: control target
= control target key end

     0   :  { %s3201_s9 = smov 0   ;;  %s3203_s10 = smov 0   ;;  %s3744_s0 = inlined_call_operand.vmem [shape: bf16[8,81,128], index: 0, kind: input, shape index: {}]   ;;  %s3745_s1 = inlined_call_operand.vmem [shape: bf16[9,128,128], index: 1, kind: input, shape index: {}]   ;;  %s3746_s2 = inlined_call_operand.vmem [shape: f32[2,71,128], index: 2, kind: output, shape index: {}]  }
   0x1   :  { %s3205_s11 = smov 0  }
   0x2 LB: > { %s31_s12 = sadd.s32 1, %s3178_s10  ;;  %p2138_p0 = scmp.ge.s32.totalorder %s3182_s11, 1  ;;  %s3182_s11 = sphi %s3205_s11, %s12_s11   ;;  %s3178_s10 = sphi %s3203_s10, %s3748_s10   ;;  %s3174_s9 = sphi %s3201_s9, %s3747_s9  }
   0x3   : > { %p33_p1 = scmp.ge.s32.totalorder %s31_s12, 2  ;;  %p156_p2 = scmp.lt.s32.totalorder %s3182_s11, 3 }
   0x5   : > { %s3750_s12 = smov (%p33_p1, %s31_s12), 0  ;;  %p157_p3 = pnand %p2138_p0, %p156_p2 }
   0x6   : > { %v3053_v0 = vld [vmem:[%s3745_s1] sm:$0xff] (!%p157_p3)   ;;  %v3184_v1 = vmov (!%p157_p3), 0.0   ;;  %v3055_v3 = vld [vmem:[%s3745_s1 + $0x8] sm:$0xff] (!%p157_p3)   ;;  %vm3185_vm0 = vmmov (!%p157_p3), 0   ;;  %s2139_s19 = sshll.u32 (!%p157_p3), %s3174_s9, 2  ;;  %v3057_v5 = vld [vmem:[%s3745_s1 + $0x10] sm:$0xff] (!%p157_p3)  }
   0x7   : > { %160 = sbr.rel (%p157_p3) target bundleno = 433 (0x1b1), region = 28  ;;  %2532 = vmatprep.subr.bf16.mxu1 (!%p157_p3), %v3184_v1  ;;  %233 = vst [vmem:[#allocation2 + $0x40] sm:$0x7f] (!%p157_p3), %v3184_v1  ;;  %2676 = vmatprep.subr.bf16.mxu0 (!%p157_p3), %v3184_v1  ;;  %v3054_v2 = vld [vmem:[%s3745_s1 + $0x100] sm:$0xff] (!%p157_p3)   ;;  %v3056_v4 = vld [vmem:[%s3745_s1 + $0x108] sm:$0xff] (!%p157_p3)   ;;  %p194_p4 = scmp.lt.s32.totalorder (!%p157_p3), %s2139_s19, 7 }
   0x8   : > { %2533 = vmatpush3.bf16.msra.mxu1 (!%p157_p3), %v3053_v0  ;;  %2548 = vmatprep.mubr.msk.bf16.mxu1 (!%p157_p3), %vm3185_vm0, %v3184_v1  ;;  %v3058_v6 = vld [vmem:[%s3745_s1 + $0x110] sm:$0xff] (!%p157_p3)   ;;  %v3059_v7 = vld [vmem:[%s3745_s1 + $0x18] sm:$0xff] (!%p157_p3)   ;;  %v3061_v9 = vld [vmem:[%s3745_s1 + $0x20] sm:$0xff] (!%p157_p3)   ;;  %vm626_vm1 = vsmask.f32 (!%p157_p3), 7424  ;;  %vm1854_vm2 = vcmask (!%p157_p3), 1046528  }
   0x9   : > { %2677 = vmatpush3.bf16.msra.mxu0 (!%p157_p3), %v3054_v2  ;;  %2534 = vmatprep.subr.bf16.mxu1 (!%p157_p3), %v3184_v1  ;;  %v3060_v8 = vld [vmem:[%s3745_s1 + $0x118] sm:$0xff] (!%p157_p3)   ;;  %v3062_v10 = vld [vmem:[%s3745_s1 + $0x120] sm:$0xff] (!%p157_p3)   ;;  %v3063_v11 = vld [vmem:[%s3745_s1 + $0x28] sm:$0xff] (!%p157_p3)   ;;  %p212_p5 = scmp.lt.s32.totalorder (!%p157_p3), %s3174_s9, 1 }
   0xa   : > { %2678 = vmatprep.subr.bf16.mxu0 (!%p157_p3), %v3184_v1  ;;  %2692 = vmatprep.mubr.msk.bf16.mxu0 (!%p157_p3), %vm3185_vm0, %v3184_v1  ;;  %v3064_v12 = vld [vmem:[%s3745_s1 + $0x128] sm:$0xff] (!%p157_p3)   ;;  %v3065_v13 = vld [vmem:[%s3745_s1 + $0x30] sm:$0xff] (!%p157_p3)   ;;  %v3067_v15 = vld [vmem:[%s3745_s1 + $0x38] sm:$0xff] (!%p157_p3)  }
   0xb   : > { %v3066_v14 = vld [vmem:[%s3745_s1 + $0x130] sm:$0xff] (!%p157_p3)   ;;  %v3068_v17 = vld [vmem:[%s3745_s1 + $0x138] sm:$0xff] (!%p157_p3)   ;;  %v3071_v20 = vld [vmem:[%s3745_s1 + $0x140] sm:$0xff] (!%p157_p3)  }
   0xc   : > { %2535 = vmatpush3.bf16.msra.mxu1 (!%p157_p3), %v3055_v3  ;;  %v3075_v22 = vld [vmem:[%s3745_s1 + $0x40] sm:$0xff] (!%p157_p3)   ;;  %v3072_v29 = vld [vmem:[%s3745_s1 + $0x148] sm:$0xff] (!%p157_p3)   ;;  %v3076_v40 = vld [vmem:[%s3745_s1 + $0x150] sm:$0xff] (!%p157_p3)  }
   0xd   : > { %2679 = vmatpush3.bf16.msra.mxu0 (!%p157_p3), %v3056_v4  ;;  %2536 = vmatprep.subr.bf16.mxu1 (!%p157_p3), %v3184_v1  ;;  %v3077_v33 = vld [vmem:[%s3745_s1 + $0x48] sm:$0xff] (!%p157_p3)   ;;  %v3081_v45 = vld [vmem:[%s3745_s1 + $0x50] sm:$0xff] (!%p157_p3)   ;;  %v3080_v48 = vld [vmem:[%s3745_s1 + $0x158] sm:$0xff] (!%p157_p3)  }
   0xe   : > { %s3752_s19 = smov (!%p194_p4, %s2139_s19), 7  ;;  %2680 = vmatprep.subr.bf16.mxu0 %v3184_v1  ;;  %v3082_v52 = vld [vmem:[%s3745_s1 + $0x58] sm:$0xff]   ;;  %v3083_v55 = vld [vmem:[%s3745_s1 + $0x160] sm:$0xff]   ;;  %v3087_v57 = vld [vmem:[%s3745_s1 + $0x168] sm:$0xff]   ;;  %s3754_s9 = smov (!%p212_p5, %s3174_s9), 1 }
   0xf   : > { %s3025_s30 = smul.u32 44, %s3752_s19  ;;  %v3086_v56 = vld [vmem:[%s3745_s1 + $0x60] sm:$0xff]   ;;  %v3088_v58 = vld [vmem:[%s3745_s1 + $0x68] sm:$0xff]   ;;  %v3089_v60 = vld [vmem:[%s3745_s1 + $0x170] sm:$0xff]  }
  0x10   : > { %2537 = vmatpush3.bf16.msra.mxu1 %v3057_v5  ;;  %v3092_v62 = vld [vmem:[%s3745_s1 + $0x70] sm:$0xff]   ;;  %v3093_v0 = vld [vmem:[%s3745_s1 + $0x178] sm:$0xff]  }
  0x11   : > { %2681 = vmatpush3.bf16.msra.mxu0 %v3058_v6  ;;  %2538 = vmatprep.subr.bf16.mxu1 %v3184_v1  ;;  %s3269_s13 = scalar_lea.vmem %s3744_s0, %s3025_s30  ;;  %v3094_v3 = vld [vmem:[%s3745_s1 + $0x78] sm:$0xff]  }
  0x12   : > { %2682 = vmatprep.subr.bf16.mxu0 %v3184_v1  ;;  %v3069_v16 = vld [vmem:[%s3269_s13] sm:$0xff]   ;;  %v3073_v21 = vld [vmem:[%s3269_s13 + $0x8] sm:$0xff]   ;;  %v3078_v24 = vld [vmem:[%s3269_s13 + $0x10] sm:$0xff]  }
  0x13   : > { %v630_v18 = vshll.u32 %v3069_v16, 16  ;;  %v3070_v19 = vld [vmem:[%s3269_s13 + $0x84] sm:$0xff]   ;;  %v628_v23 = vshrl.u32 %v3069_v16, 16  ;;  %v3309_v26 = vld [vmem:[%s3269_s13 + $0x18] sm:$0xff]   ;;  %v635_v27 = vshll.u32 %v3073_v21, 16  ;;  %v643_v28 = vshll.u32 %v3078_v24, 16 }
  0x14   : > { %2539 = vmatpush3.bf16.msra.mxu1 %v3059_v7  ;;  %v651_v30 = vshll.u32 %v3309_v26, 16  ;;  %v639_v31 = vshrl.u32 %v3073_v21, 16  ;;  %v647_v32 = vshrl.u32 %v3078_v24, 16  ;;  %v655_v34 = vshrl.u32 %v3309_v26, 16  ;;  %v3326_v36 = vld [vmem:[%s3269_s13 + $0x20] ss:$0 sps:$4 sm:$0xff]  }
  0x15   : > { %2683 = vmatpush3.bf16.msra.mxu0 %v3060_v8  ;;  %2540 = vmatprep.subr.bf16.mxu1 %v3184_v1  ;;  %v632_v25 = vrot.slane %v630_v18, 1  ;;  %v637_v35 = vrot.slane %v635_v27, 1  ;;  %v645_v37 = vrot.slane %v643_v28, 1  ;;  %v3074_v38 = vld [vmem:[%s3269_s13 + $0x8c] sm:$0xff]   ;;  %v659_v44 = vshll.u32 %v3326_v36, 16  ;;  %v3079_v54 = vld [vmem:[%s3269_s13 + $0x94] sm:$0xff]  }
  0x16   : > { %2684 = vmatprep.subr.bf16.mxu0 %v3184_v1  ;;  %v653_v39 = vrot.slane %v651_v30, 1  ;;  %v3085_v59 = vld [vmem:[%s3269_s13 + $0x9c] sm:$0xff]   ;;  %v3091_v4 = vld [vmem:[%s3269_s13 + $0xa4] ss:$0 sps:$4 sm:$0xff]   ;;  %v3099_v18 = vld [vmem:[%s3745_s1 + $0x188] sm:$0xff]  }
  0x17   : > { %v633_v41 = vor.u32 %v632_v25, %v628_v23  ;;  %v641_v42 = vor.u32 %v639_v31, %v637_v35  ;;  %v649_v43 = vor.u32 %v647_v32, %v645_v37  ;;  %v3338_v47 = vrot.slane %v659_v44, 1  ;;  %v3391_v61 = vld [vmem:[%s3269_s13 + $0x58] sm:$0xff]   ;;  %v3402_v63 = vld [vmem:[%s3269_s13 + $0x60] sm:$0xff]   ;;  %v3103_v25 = vld [vmem:[%s3745_s1 + $0x190] sm:$0xff]  }
  0x18   : > { %2541 = vmatpush3.bf16.msra.mxu1 %v3061_v9  ;;  %v657_v46 = vor.u32 %v655_v34, %v653_v39  ;;  %v1188_v2 = vshll.u32 %v3391_v61, 16  ;;  %v1193_v5 = vshll.u32 %v3402_v63, 16  ;;  %v1186_v6 = vshrl.u32 %v3391_v61, 16  ;;  %v3424_v9 = vld [vmem:[%s3269_s13 + $0x68] sm:$0xff]   ;;  %v3108_v27 = vld [vmem:[%s3745_s1 + $0x90] sm:$0xff]   ;;  %v3109_v32 = vld [vmem:[%s3745_s1 + $0x98] sm:$0xff]  }
  0x19   : > { %2685 = vmatpush3.bf16.msra.mxu0 %v3062_v10  ;;  %2542 = vmatprep.subr.bf16.mxu1 %v3184_v1  ;;  %v3348_v49 = vsel %vm626_vm1, %v633_v41, %v637_v35  ;;  %v3351_v50 = vsel %vm626_vm1, %v641_v42, %v645_v37  ;;  %v3354_v51 = vsel %vm626_vm1, %v649_v43, %v653_v39  ;;  %v3473_v31 = vld [vmem:[%s3269_s13 + $0x78] ss:$0 sps:$4 sm:$0xff]   ;;  %v3110_v37 = vld [vmem:[%s3745_s1 + $0x1a0] sm:$0xff]   ;;  %v3114_v42 = vld [vmem:[%s3745_s1 + $0x1a8] sm:$0xff]  }
  0x1a   : > { %2686 = vmatprep.subr.bf16.mxu0 %v3184_v1  ;;  %v3362_v53 = vsel %vm626_vm1, %v657_v46, %v3338_v47  ;;  %v1190_v7 = vrot.slane %v1188_v2, 1  ;;  %v1195_v8 = vrot.slane %v1193_v5, 1  ;;  %v3113_v39 = vld [vmem:[%s3745_s1 + $0xa0] sm:$0xff]   ;;  %v3115_v43 = vld [vmem:[%s3745_s1 + $0xa8] sm:$0xff]   ;;  %v3125_v5 = vld [vmem:[%s3269_s13 + $0x14] sm:$0xff]  }
  0x1b   : > { %v3111_v44 = vld [vmem:[%s3269_s13 + $0x44] sm:$0xff]  }
  0x1c   : > { %2543 = vmatpush3.bf16.msra.mxu1 %v3063_v11  ;;  %v1191_v10 = vor.u32 %v1190_v7, %v1186_v6  ;;  %v3095_v11 = vld [vmem:[%s3269_s13 + $0x2c] sm:$0xff]   ;;  %v3123_v7 = vld [vmem:[%s3745_s1 + $0x1c0] sm:$0xff]  }
  0x1d   : > { %2687 = vmatpush3.bf16.msra.mxu0 %v3064_v12  ;;  %2544 = vmatprep.subr.bf16.mxu1 %v3184_v1  ;;  %v3098_v12 = vld [vmem:[%s3745_s1 + $0x180] sm:$0xff]  }
  0x1e   : > { %2688 = vmatprep.subr.bf16.mxu0 %v3184_v1 }
  0x20   : > { %2545 = vmatpush3.bf16.msra.mxu1 %v3065_v13  ;;  %v1197_v13 = vshrl.u32 %v3402_v63, 16 }
  0x21   : > { %2689 = vmatpush3.bf16.msra.mxu0 %v3066_v14  ;;  %2546 = vmatprep.subr.bf16.mxu1 %v3184_v1  ;;  %v1201_v14 = vshll.u32 %v3424_v9, 16 }
  0x22   : > { %2690 = vmatprep.subr.bf16.mxu0 %v3184_v1 }
  0x24   : > { %2547 = vmatpush3.bf16.msra.mxu1 %v3067_v15  ;;  %v1196_v15 = vsel %vm626_vm1, %v1191_v10, %v1195_v8  ;;  %v1423_v10 = vshll.u32 %v3125_v5, 16 }
  0x25   : > { %2691 = vmatpush3.bf16.msra.mxu0 %v3068_v17  ;;  %2568 = vmatprep.subr.bf16.mxu1 %v3184_v1  ;;  %v3441_v17 = vld [vmem:[%s3269_s13 + $0x70] sm:$0xff]  }
  0x26   : > { %2712 = vmatprep.subr.bf16.mxu0 %v3184_v1  ;;  %v1209_v23 = vshll.u32 %v3441_v17, 16  ;;  %v1213_v34 = vshrl.u32 %v3441_v17, 16 }
  0x27   : > { %2549 = vmatmul.mubr.bf16.vlgmr.msra.gmra.mrb[0].mxu1 %v3069_v16  ;;  %v3102_v16 = vld [vmem:[%s3745_s1 + $0x80] sm:$0xff]  }
  0x28   : > { %2693 = vmatmul.mubr.bf16.vlgmr.msra.gmra.mrb[0].mxu0 %v3070_v19  ;;  %2552 = vmatprep.mubr.msk.bf16.mxu1 %vm3185_vm0, %v3184_v1  ;;  %v1199_v19 = vor.u32 %v1197_v13, %v1195_v8  ;;  %v1211_v28 = vrot.slane %v1209_v23, 1 }
  0x29   : > { %2713 = vmatpush3.bf16.msra.mxu0 %v3071_v20  ;;  %2696 = vmatprep.mubr.msk.bf16.mxu0 %vm3185_vm0, %v3184_v1  ;;  %v1203_v20 = vrot.slane %v1201_v14, 1  ;;  %v1425_v14 = vrot.slane %v1423_v10, 1  ;;  %v3151_v10 = vld [vmem:[%s3269_s13 + $0x50] ss:$0 sps:$4 sm:$0xff]  }
  0x2a   : > { %2714 = vmatprep.subr.bf16.mxu0 %v3184_v1  ;;  %2569 = vmatpush3.bf16.msra.mxu1 %v3075_v22  ;;  %v3100_v22 = vld [vmem:[%s3269_s13 + $0x34] sm:$0xff]  }
  0x2b   : > { %2570 = vmatprep.subr.bf16.mxu1 %v3184_v1 }
  0x2d   : > { %2715 = vmatpush3.bf16.msra.mxu0 %v3072_v29  ;;  %v3107_v29 = vld [vmem:[%s3745_s1 + $0x198] sm:$0xff]  }
  0x2e   : > { %2716 = vmatprep.subr.bf16.mxu0 %v3184_v1  ;;  %2571 = vmatpush3.bf16.msra.mxu1 %v3077_v33  ;;  %v3105_v33 = vld [vmem:[%s3269_s13 + $0x3c] sm:$0xff]  }
  0x2f   : > { %2553 = vmatmul.mubr.bf16.gmra.mrb[4].mxu1 %v3073_v21  ;;  %2572 = vmatprep.subr.bf16.mxu1 %v3184_v1  ;;  %v3104_v21 = vld [vmem:[%s3745_s1 + $0x88] sm:$0xff]  }
  0x30   : > { %2697 = vmatmul.mubr.bf16.gmra.mrb[4].mxu0 %v3074_v38  ;;  %2556 = vmatprep.mubr.msk.bf16.mxu1 %vm3185_vm0, %v3184_v1  ;;  %v1217_v38 = vshll.u32 %v3473_v31, 16 }
  0x31   : > { %2717 = vmatpush3.bf16.msra.mxu0 %v3076_v40  ;;  %2700 = vmatprep.mubr.msk.bf16.mxu0 %vm3185_vm0, %v3184_v1  ;;  %v1215_v40 = vor.u32 %v1213_v34, %v1211_v28  ;;  %v3136_v34 = vld [vmem:[%s3745_s1 + $0x1e8] sm:$0xff]  }
  0x32   : > { %2718 = vmatprep.subr.bf16.mxu0 %v3184_v1  ;;  %2573 = vmatpush3.bf16.msra.mxu1 %v3081_v45  ;;  %v1219_v41 = vrot.slane %v1217_v38, 1  ;;  %v3121_v45 = vld [vmem:[%s3269_s13 + $0x4] sm:$0xff]   ;;  %v3142_v38 = vld [vmem:[%s3269_s13 + $0x30] sm:$0xff]  }
  0x33   : > { %2574 = vmatprep.subr.bf16.mxu1 %v3184_v1 }
  0x34   : > { %v1220_v46 = vsel %vm626_vm1, %v1215_v40, %v1219_v41  ;;  %v663_v40 = vshrl.u32 %v3326_v36, 16 }
  0x35   : > { %2719 = vmatpush3.bf16.msra.mxu0 %v3080_v48  ;;  %v3116_v48 = vld [vmem:[%s3745_s1 + $0x1b0] sm:$0xff]  }
  0x36   : > { %2720 = vmatprep.subr.bf16.mxu0 %v3184_v1  ;;  %2575 = vmatpush3.bf16.msra.mxu1 %v3082_v52  ;;  %v3118_v52 = vld [vmem:[%s3745_s1 + $0xb0] sm:$0xff]  }
  0x37   : > { %2557 = vmatmul.mubr.bf16.gmra.mrb[8].mxu1 %v3078_v24  ;;  %2576 = vmatprep.subr.bf16.mxu1 %v3184_v1  ;;  %v1204_v24 = vsel %vm626_vm1, %v1199_v19, %v1203_v20  ;;  %v1427_v19 = vshrl.u32 %v3125_v5, 16 }
  0x38   : > { %2701 = vmatmul.mubr.bf16.gmra.mrb[8].mxu0 %v3079_v54  ;;  %2560 = vmatprep.mubr.msk.bf16.mxu1 %vm3185_vm0, %v3184_v1  ;;  %v1221_v54 = vshrl.u32 %v3473_v31, 16 }
  0x39   : > { %2721 = vmatpush3.bf16.msra.mxu0 %v3083_v55  ;;  %2704 = vmatprep.mubr.msk.bf16.mxu0 %vm3185_vm0, %v3184_v1  ;;  %v3119_v55 = vld [vmem:[%s3745_s1 + $0x1b8] sm:$0xff]  }
  0x3a   : > { %2577 = vmatpush3.bf16.msra.mxu1 %v3086_v56  ;;  %2722 = vmatprep.subr.bf16.mxu0 %v3184_v1  ;;  %v3122_v56 = vld [vmem:[%s3269_s13 + $0xc] sm:$0xff]  }
  0x3b   : > { %2578 = vmatprep.subr.bf16.mxu1 %v3184_v1  ;;  %v1415_v2 = vshll.u32 %v3122_v56, 16  ;;  %v1419_v8 = vshrl.u32 %v3122_v56, 16 }
  0x3d   : > { %2723 = vmatpush3.bf16.msra.mxu0 %v3087_v57  ;;  %v1410_v57 = vshll.u32 %v3121_v45, 16 }
  0x3e   : > { %2579 = vmatpush3.bf16.msra.mxu1 %v3088_v58  ;;  %2724 = vmatprep.subr.bf16.mxu0 %v3184_v1  ;;  %v3117_v58 = vld [vmem:[%s3269_s13 + $0x4c] ss:$0 sps:$4 sm:$0xff]  }
  0x3f   : > { %2561 = vmatmul.mubr.bf16.gmra.mrb[12].mxu1 %v3309_v26  ;;  %2580 = vmatprep.subr.bf16.mxu1 %v3184_v1  ;;  %v1205_v26 = vshrl.u32 %v3424_v9, 16 }
  0x40   : > { %2705 = vmatmul.mubr.bf16.gmra.mrb[12].mxu0 %v3085_v59  ;;  %2564 = vmatprep.mubr.msk.bf16.mxu1 %vm3185_vm0, %v3184_v1  ;;  %v3120_v59 = vld [vmem:[%s3745_s1 + $0xb8] sm:$0xff]  }
  0x41   : > { %2708 = vmatprep.mubr.msk.bf16.mxu0 %vm3185_vm0, %v3184_v1  ;;  %2725 = vmatpush3.bf16.msra.mxu0 %v3089_v60  ;;  %v1207_v30 = vor.u32 %v1205_v26, %v1203_v20  ;;  %v1223_v60 = vor.u32 %v1221_v54, %v1219_v41 }
  0x42   : > { %2581 = vmatpush3.bf16.msra.mxu1 %v3092_v62  ;;  %2726 = vmatprep.subr.bf16.mxu0 %v3184_v1  ;;  %v1408_v62 = vshrl.u32 %v3121_v45, 16 }
  0x43   : > { %2582 = vmatprep.subr.bf16.mxu1 %v3184_v1  ;;  %v1212_v35 = vsel %vm626_vm1, %v1207_v30, %v1211_v28  ;;  %v3135_v30 = vld [vmem:[%s3745_s1 + $0xe0] sm:$0xff]  }
  0x45   : > { %2727 = vmatpush3.bf16.msra.mxu0 %v3093_v0  ;;  %v1412_v0 = vrot.slane %v1410_v57, 1  ;;  %v3144_v57 = vld [vmem:[%s3745_s1 + $0x200] sm:$0xff]  }
  0x46   : > { %2583 = vmatpush3.bf16.msra.mxu1 %v3094_v3  ;;  %2748 = vmatprep.subr.bf16.mxu0 %v3184_v1 }
  0x47   : > { %2565 = vmatmul.mubr.bf16.gmra.mrb[16].mxu1 %v3326_v36  ;;  %2604 = vmatprep.subr.bf16.mxu1 %v3184_v1  ;;  %v1413_v3 = vor.u32 %v1412_v0, %v1408_v62  ;;  %v3141_v36 = vld [vmem:[%s3745_s1 + $0xf8] sm:$0xff]  }
  0x48   : > { %2709 = vmatmul.mubr.bf16.gmra.mrb[16].mxu0 %v3091_v4  ;;  %2584 = vmatprep.mubr.msk.bf16.mxu1 %vm3185_vm0, %v3184_v1  ;;  %v1417_v4 = vrot.slane %v1415_v2, 1  ;;  %v3148_v2 = vld [vmem:[%s3269_s13 + $0x48] sm:$0xff]  }
  0x49   : > { %2728 = vmatprep.mubr.msk.bf16.mxu0 %vm3185_vm0, %v3184_v1  ;;  %v1653_v5 = vshll.u32 %v3148_v2, 16 }
  0x4a   : > { %v1418_v6 = vsel %vm626_vm1, %v1413_v3, %v1417_v4  ;;  %v1421_v13 = vor.u32 %v1419_v8, %v1417_v4  ;;  %v3147_v3 = vld [vmem:[%s3745_s1 + $0x210] sm:$0xff]   ;;  %v3149_v8 = vld [vmem:[%s3745_s1 + $0x218] sm:$0xff]  }
  0x4f   : > { %2585 = vmatmul.mubr.bf16.vlgmr.msra.gmra.mrb[0].mxu1 %v3095_v11  ;;  %v3126_v11 = vld [vmem:[%s3745_s1 + $0xc0] sm:$0xff]  }
  0x50   : > { %2729 = vmatmul.mubr.bf16.vlgmr.msra.gmra.mrb[0].mxu0 %v1196_v15  ;;  %2588 = vmatprep.mubr.msk.bf16.mxu1 %vm3185_vm0, %v3184_v1  ;;  %v3129_v15 = vld [vmem:[%s3269_s13 + $0x1c] sm:$0xff]  }
  0x51   : > { %2749 = vmatpush3.bf16.msra.mxu0 %v3098_v12  ;;  %2732 = vmatprep.mubr.msk.bf16.mxu0 %vm3185_vm0, %v3184_v1  ;;  %v3124_v12 = vld [vmem:[%s3745_s1 + $0x1c8] sm:$0xff]   ;;  %v1431_v20 = vshll.u32 %v3129_v15, 16  ;;  %v1435_v28 = vshrl.u32 %v3129_v15, 16 }
  0x52   : > { %2750 = vmatprep.subr.bf16.mxu0 %v3184_v1  ;;  %2605 = vmatpush3.bf16.msra.mxu1 %v3102_v16  ;;  %v1426_v16 = vsel %vm626_vm1, %v1421_v13, %v1425_v14  ;;  %v1661_v13 = vshll.u32 %v3151_v10, 16 }
  0x53   : > { %2606 = vmatprep.subr.bf16.mxu1 %v3184_v1  ;;  %v1433_v23 = vrot.slane %v1431_v20, 1  ;;  %v3157_v20 = vld [vmem:[%s3269_s13 + $0x1c] sm:$0xff]  }
  0x54   : > { %v1663_v15 = vrot.slane %v1661_v13, 1 }
  0x55   : > { %2751 = vmatpush3.bf16.msra.mxu0 %v3099_v18  ;;  %v3127_v18 = vld [vmem:[%s3745_s1 + $0x1d0] sm:$0xff]  }
  0x56   : > { %2752 = vmatprep.subr.bf16.mxu0 %v3184_v1  ;;  %2607 = vmatpush3.bf16.msra.mxu1 %v3104_v21  ;;  %v3131_v21 = vld [vmem:[%s3745_s1 + $0xd0] sm:$0xff]  }
  0x57   : > { %2589 = vmatmul.mubr.bf16.gmra.mrb[4].mxu1 %v3100_v22  ;;  %2608 = vmatprep.subr.bf16.mxu1 %v3184_v1  ;;  %v1429_v22 = vor.u32 %v1427_v19, %v1425_v14  ;;  %v3154_v19 = vld [vmem:[%s3745_s1 + $0x238] sm:$0xff]  }
  0x58   : > { %2733 = vmatmul.mubr.bf16.gmra.mrb[4].mxu0 %v1204_v24  ;;  %2592 = vmatprep.mubr.msk.bf16.mxu1 %vm3185_vm0, %v3184_v1  ;;  %v3130_v24 = vld [vmem:[%s3745_s1 + $0x1d8] sm:$0xff]  }
  0x59   : > { %2753 = vmatpush3.bf16.msra.mxu0 %v3103_v25  ;;  %2736 = vmatprep.mubr.msk.bf16.mxu0 %vm3185_vm0, %v3184_v1  ;;  %v3134_v25 = vld [vmem:[%s3269_s13 + $0x24] ss:$0 sps:$4 sm:$0xff]   ;;  %v1434_v26 = vsel %vm626_vm1, %v1429_v22, %v1433_v23  ;;  %v3155_v22 = vld [vmem:[%s3269_s13 + $0x4] sm:$0xfe]  }
  0x5a   : > { %2754 = vmatprep.subr.bf16.mxu0 %v3184_v1  ;;  %2609 = vmatpush3.bf16.msra.mxu1 %v3108_v27  ;;  %v3133_v27 = vld [vmem:[%s3745_s1 + $0x1e0] sm:$0xff]   ;;  %v1443_v41 = vshrl.u32 %v3134_v25, 16 }
  0x5b   : > { %2610 = vmatprep.subr.bf16.mxu1 %v3184_v1 }
  0x5d   : > { %2755 = vmatpush3.bf16.msra.mxu0 %v3107_v29  ;;  %v1439_v29 = vshll.u32 %v3134_v25, 16 }
  0x5e   : > { %2756 = vmatprep.subr.bf16.mxu0 %v3184_v1  ;;  %2611 = vmatpush3.bf16.msra.mxu1 %v3109_v32  ;;  %v1437_v32 = vor.u32 %v1435_v28, %v1433_v23  ;;  %v3156_v23 = vld [vmem:[%s3269_s13 + $0xc] sm:$0xff]  }
  0x5f   : > { %2593 = vmatmul.mubr.bf16.gmra.mrb[8].mxu1 %v3105_v33  ;;  %2612 = vmatprep.subr.bf16.mxu1 %v3184_v1  ;;  %v1441_v33 = vrot.slane %v1439_v29, 1  ;;  %v3159_v29 = vld [vmem:[%s3269_s13 + $0x14] sm:$0xff]  }
  0x60   : > { %2737 = vmatmul.mubr.bf16.gmra.mrb[8].mxu0 %v1212_v35  ;;  %2596 = vmatprep.mubr.msk.bf16.mxu1 %vm3185_vm0, %v3184_v1 }
  0x61   : > { %2757 = vmatpush3.bf16.msra.mxu0 %v3110_v37  ;;  %2740 = vmatprep.mubr.msk.bf16.mxu0 %vm3185_vm0, %v3184_v1  ;;  %v1442_v35 = vsel %vm626_vm1, %v1437_v32, %v1441_v33  ;;  %v3138_v37 = vld [vmem:[%s3745_s1 + $0x1f0] sm:$0xff]   ;;  %v1445_v45 = vor.u32 %v1443_v41, %v1441_v33 }
  0x62   : > { %2613 = vmatpush3.bf16.msra.mxu1 %v3113_v39  ;;  %2758 = vmatprep.subr.bf16.mxu0 %v3184_v1  ;;  %v3139_v39 = vld [vmem:[%s3745_s1 + $0xf0] sm:$0xff]  }
  0x63   : > { %2614 = vmatprep.subr.bf16.mxu1 %v3184_v1 }
  0x65   : > { %2759 = vmatpush3.bf16.msra.mxu0 %v3114_v42  ;;  %v3140_v42 = vld [vmem:[%s3745_s1 + $0x1f8] sm:$0xff]  }
  0x66   : > { %2615 = vmatpush3.bf16.msra.mxu1 %v3115_v43  ;;  %2760 = vmatprep.subr.bf16.mxu0 %v3184_v1  ;;  %v3143_v43 = vld [vmem:[%s3269_s13 + $0x38] sm:$0xff]  }
  0x67   : > { %2597 = vmatmul.mubr.bf16.gmra.mrb[12].mxu1 %v3111_v44  ;;  %2616 = vmatprep.subr.bf16.mxu1 %v3184_v1  ;;  %v1632_v44 = vshll.u32 %v3142_v38, 16 }
  0x68   : > { %2741 = vmatmul.mubr.bf16.gmra.mrb[12].mxu0 %v1220_v46  ;;  %2600 = vmatprep.mubr.msk.bf16.mxu1 %vm3185_vm0, %v3184_v1  ;;  %v1630_v46 = vshrl.u32 %v3142_v38, 16 }
  0x69   : > { %2744 = vmatprep.mubr.msk.bf16.mxu0 %vm3185_vm0, %v3184_v1  ;;  %2761 = vmatpush3.bf16.msra.mxu0 %v3116_v48  ;;  %v1634_v48 = vrot.slane %v1632_v44, 1 }
  0x6a   : > { %2617 = vmatpush3.bf16.msra.mxu1 %v3118_v52  ;;  %2762 = vmatprep.subr.bf16.mxu0 %v3184_v1  ;;  %v1637_v52 = vshll.u32 %v3143_v43, 16 }
  0x6b   : > { %2618 = vmatprep.subr.bf16.mxu1 %v3184_v1 }
  0x6c   : > { %v1639_v54 = vrot.slane %v1637_v52, 1 }
  0x6d   : > { %2763 = vmatpush3.bf16.msra.mxu0 %v3119_v55  ;;  %v3146_v55 = vld [vmem:[%s3269_s13 + $0x40] sm:$0xff]  }
  0x6e   : > { %2619 = vmatpush3.bf16.msra.mxu1 %v3120_v59  ;;  %2784 = vmatprep.subr.bf16.mxu0 %v3184_v1  ;;  %v1645_v59 = vshll.u32 %v3146_v55, 16  ;;  %v1649_v4 = vshrl.u32 %v3146_v55, 16 }
  0x6f   : > { %2601 = vmatmul.mubr.bf16.gmra.mrb[16].mxu1 %v3117_v58  ;;  %2640 = vmatprep.subr.bf16.mxu1 %v3184_v1  ;;  %v1641_v58 = vshrl.u32 %v3143_v43, 16 }
  0x70   : > { %2745 = vmatmul.mubr.bf16.gmra.mrb[16].mxu0 %v1223_v60  ;;  %2620 = vmatprep.mubr.msk.bf16.mxu1 %vm3185_vm0, %v3184_v1  ;;  %v3145_v60 = vld [vmem:[%s3745_s1 + $0x208] sm:$0xff]   ;;  %v1647_v0 = vrot.slane %v1645_v59, 1 }
  0x71   : > { %2764 = vmatprep.mubr.msk.bf16.mxu0 %vm3185_vm0, %v3184_v1  ;;  %v1643_v62 = vor.u32 %v1641_v58, %v1639_v54 }
  0x77   : > { %2621 = vmatmul.mubr.bf16.vlgmr.msra.gmra.mrb[0].mxu1 %v3348_v49  ;;  %v3128_v49 = vld [vmem:[%s3745_s1 + $0xc8] sm:$0xff]  }
  0x78   : > { %2765 = vmatmul.mubr.bf16.vlgmr.msra.gmra.mrb[0].mxu0 %v1418_v6  ;;  %2624 = vmatprep.mubr.msk.bf16.mxu1 %vm3185_vm0, %v3184_v1  ;;  %v1651_v6 = vor.u32 %v1649_v4, %v1647_v0 }
  0x79   : > { %2785 = vmatpush3.bf16.msra.mxu0 %v3123_v7  ;;  %2768 = vmatprep.mubr.msk.bf16.mxu0 %vm3185_vm0, %v3184_v1  ;;  %v1655_v7 = vrot.slane %v1653_v5, 1 }
  0x7a   : > { %2786 = vmatprep.subr.bf16.mxu0 %v3184_v1  ;;  %2641 = vmatpush3.bf16.msra.mxu1 %v3126_v11  ;;  %v3150_v11 = vld [vmem:[%s3745_s1 + $0x220] sm:$0xff]  }
  0x7b   : > { %2642 = vmatprep.subr.bf16.mxu1 %v3184_v1 }
  0x7d   : > { %2787 = vmatpush3.bf16.msra.mxu0 %v3124_v12  ;;  %v1657_v12 = vshrl.u32 %v3148_v2, 16 }
  0x7e   : > { %2788 = vmatprep.subr.bf16.mxu0 %v3184_v1  ;;  %2643 = vmatpush3.bf16.msra.mxu1 %v3128_v49  ;;  %v3152_v49 = vld [vmem:[%s3745_s1 + $0x228] sm:$0xff]  }
  0x7f   : > { %2625 = vmatmul.mubr.bf16.gmra.mrb[4].mxu1 %v3351_v50  ;;  %2644 = vmatprep.subr.bf16.mxu1 %v3184_v1  ;;  %v3132_v50 = vld [vmem:[%s3745_s1 + $0xd8] sm:$0xff]   ;;  %v1659_v14 = vor.u32 %v1657_v12, %v1655_v7 }
  0x80   : > { %2769 = vmatmul.mubr.bf16.gmra.mrb[4].mxu0 %v1426_v16  ;;  %2628 = vmatprep.mubr.msk.bf16.mxu1 %vm3185_vm0, %v3184_v1  ;;  %v3153_v16 = vld [vmem:[%s3745_s1 + $0x230] sm:$0xff]  }
  0x81   : > { %2789 = vmatpush3.bf16.msra.mxu0 %v3127_v18  ;;  %2772 = vmatprep.mubr.msk.bf16.mxu0 %vm3185_vm0, %v3184_v1  ;;  %v1665_v18 = vshrl.u32 %v3151_v10, 16 }
  0x82   : > { %2790 = vmatprep.subr.bf16.mxu0 %v3184_v1  ;;  %2645 = vmatpush3.bf16.msra.mxu1 %v3131_v21  ;;  %v3158_v21 = vld [vmem:[%s3269_s13 + $0x24] sm:$0x1f]   ;;  %s3026_s13 = smul.u32 72, %s3754_s9 }
  0x83   : > { %2646 = vmatprep.subr.bf16.mxu1 %v3184_v1  ;;  %v1862_v25 = vrot.slane %v3158_v21, 1 }
  0x84   : > { %s3723_s25 = scalar_lea.vmem %s3746_s2, %s3026_s13 }
  0x85   : > { %2791 = vmatpush3.bf16.msra.mxu0 %v3130_v24  ;;  %v1860_v24 = vrot.slane %v3157_v20, 1 }
  0x86   : > { %2792 = vmatprep.subr.bf16.mxu0 %v3184_v1  ;;  %2647 = vmatpush3.bf16.msra.mxu1 %v3132_v50  ;;  %v1855_v50 = vrot.slane %v3155_v22, 1 }
  0x87   : > { %2629 = vmatmul.mubr.bf16.gmra.mrb[8].mxu1 %v3354_v51  ;;  %2648 = vmatprep.subr.bf16.mxu1 %v3184_v1  ;;  %v3137_v51 = vld [vmem:[%s3745_s1 + $0xe8] sm:$0xff]  }
  0x88   : > { %2773 = vmatmul.mubr.bf16.gmra.mrb[8].mxu0 %v1434_v26  ;;  %2632 = vmatprep.mubr.msk.bf16.mxu1 %vm3185_vm0, %v3184_v1  ;;  %v1856_v26 = vrot.slane %v3156_v23, 1 }
  0x89   : > { %2793 = vmatpush3.bf16.msra.mxu0 %v3133_v27  ;;  %2776 = vmatprep.mubr.msk.bf16.mxu0 %vm3185_vm0, %v3184_v1  ;;  %v1863_v27 = vsel %vm1854_vm2, %v1860_v24, %v1862_v25 }
  0x8a   : > { %2649 = vmatpush3.bf16.msra.mxu1 %v3135_v30  ;;  %2794 = vmatprep.subr.bf16.mxu0 %v3184_v1  ;;  %v1857_v28 = vsel %vm1854_vm2, %v1855_v50, %v1856_v26 }
  0x8b   : > { %2650 = vmatprep.subr.bf16.mxu1 %v3184_v1 }
  0x8d   : > { %2795 = vmatpush3.bf16.msra.mxu0 %v3136_v34 }
  0x8e   : > { %2651 = vmatpush3.bf16.msra.mxu1 %v3137_v51  ;;  %2796 = vmatprep.subr.bf16.mxu0 %v3184_v1 }
  0x8f   : > { %2633 = vmatmul.mubr.bf16.gmra.mrb[12].mxu1 %v3362_v53  ;;  %2652 = vmatprep.subr.bf16.mxu1 %v3184_v1  ;;  %v665_v53 = vor.u32 %v663_v40, %v3338_v47  ;;  %v1635_v47 = vor.u32 %v1634_v48, %v1630_v46 }
  0x90   : > { %2777 = vmatmul.mubr.bf16.gmra.mrb[12].mxu0 %v1442_v35  ;;  %2636 = vmatprep.mubr.msk.bf16.mxu1 %vm3185_vm0, %v3184_v1 }
  0x91   : > { %2780 = vmatprep.mubr.msk.bf16.mxu0 %vm3185_vm0, %v3184_v1  ;;  %2797 = vmatpush3.bf16.msra.mxu0 %v3138_v37  ;;  %v1640_v56 = vsel %vm626_vm1, %v1635_v47, %v1639_v54 }
  0x92   : > { %2653 = vmatpush3.bf16.msra.mxu1 %v3139_v39  ;;  %2798 = vmatprep.subr.bf16.mxu0 %v3184_v1 }
  0x93   : > { %2654 = vmatprep.subr.bf16.mxu1 %v3184_v1 }
  0x95   : > { %2799 = vmatpush3.bf16.msra.mxu0 %v3140_v42 }
  0x96   : > { %2655 = vmatpush3.bf16.msra.mxu1 %v3141_v36  ;;  %2820 = vmatprep.subr.bf16.mxu0 %v3184_v1 }
  0x97   : > { %2637 = vmatmul.mubr.bf16.gmra.mrb[16].mxu1 %v665_v53  ;;  %2856 = vmatprep.subr.bf16.mxu1 %v3184_v1 }
  0x98   : > { %2781 = vmatmul.mubr.bf16.gmra.mrb[16].mxu0 %v1445_v45  ;;  %2656 = vmatprep.mubr.msk.bf16.mxu1 %vm3185_vm0, %v3184_v1 }
  0x99   : > { %2800 = vmatprep.mubr.msk.bf16.mxu0 %vm3185_vm0, %v3184_v1 }
  0x9f   : > { %2657 = vmatmul.mubr.bf16.vlgmr.msra.gmra.mrb[0].mxu1 %v3391_v61  ;;  %v1648_v61 = vsel %vm626_vm1, %v1643_v62, %v1647_v0 }
  0xa0   : > { %2801 = vmatmul.mubr.bf16.vlgmr.msra.gmra.mrb[0].mxu0 %v1640_v56  ;;  %2660 = vmatprep.mubr.msk.bf16.mxu1 %vm3185_vm0, %v3184_v1  ;;  %v242_v56 = vld [vmem:[#allocation2 + $0x40] sm:$0x7f] }
  0xa1   : > { %2821 = vmatpush3.bf16.msra.mxu0 %v3144_v57  ;;  %2804 = vmatprep.mubr.msk.bf16.mxu0 %vm3185_vm0, %v3184_v1 }
  0xa2   : > { %2822 = vmatprep.subr.bf16.mxu0 %v3184_v1  ;;  %2864 = vmatpush3.bf16.msra.mxu1 %v3144_v57 }
  0xa3   : > { %2857 = vmatprep.subr.bf16.mxu1 %v3184_v1 }
  0xa5   : > { %2823 = vmatpush3.bf16.msra.mxu0 %v3145_v60 }
  0xa6   : > { %2824 = vmatprep.subr.bf16.mxu0 %v3184_v1  ;;  %2865 = vmatpush3.bf16.msra.mxu1 %v3145_v60 }
  0xa7   : > { %2661 = vmatmul.mubr.bf16.gmra.mrb[4].mxu1 %v3402_v63  ;;  %2858 = vmatprep.subr.bf16.mxu1 %v3184_v1  ;;  %v1656_v63 = vsel %vm626_vm1, %v1651_v6, %v1655_v7 }
  0xa8   : > { %2805 = vmatmul.mubr.bf16.gmra.mrb[4].mxu0 %v1648_v61  ;;  %2664 = vmatprep.mubr.msk.bf16.mxu1 %vm3185_vm0, %v3184_v1 }
  0xa9   : > { %2825 = vmatpush3.bf16.msra.mxu0 %v3147_v3  ;;  %2808 = vmatprep.mubr.msk.bf16.mxu0 %vm3185_vm0, %v3184_v1 }
  0xaa   : > { %2826 = vmatprep.subr.bf16.mxu0 %v3184_v1  ;;  %2866 = vmatpush3.bf16.msra.mxu1 %v3147_v3 }
  0xab   : > { %2859 = vmatprep.subr.bf16.mxu1 %v3184_v1 }
  0xad   : > { %2827 = vmatpush3.bf16.msra.mxu0 %v3149_v8 }
  0xae   : > { %2828 = vmatprep.subr.bf16.mxu0 %v3184_v1  ;;  %2867 = vmatpush3.bf16.msra.mxu1 %v3149_v8 }
  0xaf   : > { %2665 = vmatmul.mubr.bf16.gmra.mrb[8].mxu1 %v3424_v9  ;;  %2860 = vmatprep.subr.bf16.mxu1 %v3184_v1  ;;  %v1664_v9 = vsel %vm626_vm1, %v1659_v14, %v1663_v15 }
  0xb0   : > { %2809 = vmatmul.mubr.bf16.gmra.mrb[8].mxu0 %v1656_v63  ;;  %2668 = vmatprep.mubr.msk.bf16.mxu1 %vm3185_vm0, %v3184_v1 }
  0xb1   : > { %2829 = vmatpush3.bf16.msra.mxu0 %v3150_v11  ;;  %2812 = vmatprep.mubr.msk.bf16.mxu0 %vm3185_vm0, %v3184_v1 }
  0xb2   : > { %2868 = vmatpush3.bf16.msra.mxu1 %v3150_v11  ;;  %2830 = vmatprep.subr.bf16.mxu0 %v3184_v1 }
  0xb3   : > { %2861 = vmatprep.subr.bf16.mxu1 %v3184_v1 }
  0xb5   : > { %2831 = vmatpush3.bf16.msra.mxu0 %v3152_v49 }
  0xb6   : > { %2869 = vmatpush3.bf16.msra.mxu1 %v3152_v49  ;;  %2832 = vmatprep.subr.bf16.mxu0 %v3184_v1 }
  0xb7   : > { %2669 = vmatmul.mubr.bf16.gmra.mrb[12].mxu1 %v3441_v17  ;;  %2862 = vmatprep.subr.bf16.mxu1 %v3184_v1  ;;  %v1667_v17 = vor.u32 %v1665_v18, %v1663_v15 }
  0xb8   : > { %2813 = vmatmul.mubr.bf16.gmra.mrb[12].mxu0 %v1664_v9  ;;  %2672 = vmatprep.mubr.msk.bf16.mxu1 %vm3185_vm0, %v3184_v1 }
  0xb9   : > { %2816 = vmatprep.mubr.msk.bf16.mxu0 %vm3185_vm0, %v3184_v1  ;;  %2833 = vmatpush3.bf16.msra.mxu0 %v3153_v16 }
  0xba   : > { %2870 = vmatpush3.bf16.msra.mxu1 %v3153_v16  ;;  %2834 = vmatprep.subr.bf16.mxu0 %v3184_v1 }
  0xbb   : > { %2863 = vmatprep.subr.bf16.mxu1 %v3184_v1 }
  0xbd   : > { %2835 = vmatpush3.bf16.msra.mxu0 %v3154_v19 }
  0xbe   : > { %2871 = vmatpush3.bf16.msra.mxu1 %v3154_v19 }
  0xbf   : > { %2673 = vmatmul.mubr.bf16.gmra.mrb[16].mxu1 %v3473_v31  ;;  %v1858_v31 = vrot.slane %v3159_v29, 1 }
  0xc0   : > { %2817 = vmatmul.mubr.bf16.gmra.mrb[16].mxu0 %v1667_v17  ;;  %2848 = vmatprep.mubr.msk.bf16.mxu1 %vm3185_vm0, %v3184_v1 }
  0xc1   : > { %2836 = vmatprep.mubr.msk.bf16.mxu0 %vm3185_vm0, %v3184_v1  ;;  %v1859_v30 = vsel %vm1854_vm2, %v1856_v26, %v1858_v31  ;;  %v1861_v32 = vsel %vm1854_vm2, %v1858_v31, %v1860_v24 }
  0xc7   : > { %2849 = vmatmul.mubr.bf16.vlgmr.msra.gmra.mrb[20].mxu1 %v1863_v27 }
  0xc8   : > { %2837 = vmatmul.mubr.bf16.vlgmr.msra.gmra.mrb[0].mxu0 %v1857_v28  ;;  %2852 = vmatprep.mubr.msk.bf16.mxu1 %vm3185_vm0, %v3184_v1 }
  0xc9   : > { %2840 = vmatprep.mubr.msk.bf16.mxu0 %vm3185_vm0, %v3184_v1 }
  0xcf   : > { %2853 = vmatmul.mubr.bf16.gmra.mrb[24].mxu1 %v1862_v25 }
  0xd0   : > { %2841 = vmatmul.mubr.bf16.gmra.mrb[4].mxu0 %v1859_v30 }
  0xd1   : > { %2844 = vmatprep.mubr.msk.bf16.mxu0 %vm3185_vm0, %v3184_v1 }
  0xd8   : > { %2845 = vmatmul.mubr.bf16.gmra.mrb[8].mxu0 %v1861_v32 }
 0x172   : > { %v937_v33 = vpop.f32.mrb[0].mxu1 }
 0x173   : > { %v2658_v34 = vpop.f32.mrb[1].mxu1 }
 0x174   : > { %v940_v51 = vpop.f32.mrb[2].mxu1 }
 0x175   : > { %v2659_v35 = vpop.f32.mrb[3].mxu1 }
 0x17a   : > { %v945_v37 = vpop.f32.mrb[4].mxu1 }
 0x17b   : > { %v2662_v38 = vpop.f32.mrb[5].mxu1 }
 0x17c   : > { %v948_v39 = vpop.f32.mrb[6].mxu1 }
 0x17d   : > { %v2663_v40 = vpop.f32.mrb[7].mxu1 }
 0x182   : > { %v953_v41 = vpop.f32.mrb[8].mxu1 }
 0x183   : > { %v2666_v42 = vpop.f32.mrb[9].mxu1 }
 0x184   : > { %v3716_v43 = vpop.f32.mrb[10].mxu1 }
 0x185   : > { %v2667_v44 = vpop.f32.mrb[11].mxu1 }
 0x18a   : > { %v961_v36 = vpop.f32.mrb[12].mxu1 }
 0x18b   : > { %v1779_v53 = vpop.f32.mrb[12].mxu0  ;;  %v2670_v1 = vpop.f32.mrb[13].mxu1 }
 0x18c   : > { %v2814_v45 = vpop.f32.mrb[13].mxu0  ;;  %v964_v46 = vpop.f32.mrb[14].mxu1  ;;  %v2885_v48 = vadd.f32 %v1779_v53, %v961_v36 }
 0x18d   : > { %v1782_v52 = vpop.f32.mrb[14].mxu0  ;;  %v2671_v47 = vpop.f32.mrb[15].mxu1 }
 0x18e   : > { %v2815_v54 = vpop.f32.mrb[15].mxu0  ;;  %v2888_v55 = vadd.f32 %v1782_v52, %v964_v46 }
 0x192   : > { %v969_v57 = vpop.f32.mrb[16].mxu1 }
 0x193   : > { %v2890_v58 = vadd.f32 %v969_v57, %v242_v56  ;;  %v1787_v59 = vpop.f32.mrb[16].mxu0  ;;  %v2674_v60 = vpop.f32.mrb[17].mxu1 }
 0x194   : > { %v2818_v62 = vpop.f32.mrb[17].mxu0  ;;  %v972_v0 = vpop.f32.mrb[18].mxu1 }
 0x195   : > { %v2891_v2 = vadd.f32 %v2890_v58, %v1787_v59  ;;  %v1790_v61 = vpop.f32.mrb[18].mxu0  ;;  %v2675_v3 = vpop.f32.mrb[19].mxu1 }
 0x196   : > { %v2819_v4 = vpop.f32.mrb[19].mxu0 }
 0x19a   : > { %v1975_v5 = vpop.f32.mrb[20].mxu1 }
 0x19b   : > { %v1951_v6 = vpop.f32.mrb[0].mxu0  ;;  %v2886_v7 = vadd.f32 %v2885_v48, %v1975_v5  ;;  %v2850_v8 = vpop.f32.mrb[21].mxu1 }
 0x19c   : > { %v2873_v10 = vadd.f32 %v1951_v6, %v937_v33  ;;  %v2838_v63 = vpop.f32.mrb[1].mxu0  ;;  %v1978_v11 = vpop.f32.mrb[22].mxu1 }
 0x19d   : > { %2025 = vst [vmem:[%s3723_s25 + $0x30] sm:$0xff] %v2886_v7  ;;  %v1954_v12 = vpop.f32.mrb[2].mxu0  ;;  %v2889_v13 = vadd.f32 %v2888_v55, %v1978_v11  ;;  %v2851_v14 = vpop.f32.mrb[23].mxu1 }
 0x19e   : > { %2019 = vst [vmem:[%s3723_s25] sm:$0xff] %v2873_v10  ;;  %v2875_v15 = vadd.f32 %v1954_v12, %v940_v51  ;;  %v2839_v49 = vpop.f32.mrb[3].mxu0 }
 0x19f   : > { %2026 = vst [vmem:[%s3723_s25 + $0x38] sm:$0xff] %v2889_v13 }
 0x1a0   : > { %2020 = vst [vmem:[%s3723_s25 + $0x8] sm:$0xff] %v2875_v15 }
 0x1a2   : > { %v1983_v9 = vpop.f32.mrb[24].mxu1 }
 0x1a3   : > { %v1959_v16 = vpop.f32.mrb[4].mxu0  ;;  %v2892_v18 = vadd.f32 %v2891_v2, %v1983_v9  ;;  %v2854_v19 = vpop.f32.mrb[25].mxu1 }
 0x1a4   : > { %v2877_v17 = vadd.f32 %v1959_v16, %v945_v37  ;;  %v2842_v20 = vpop.f32.mrb[5].mxu0  ;;  %v1986_v21 = vpop.f32.mrb[26].mxu1 }
 0x1a5   : > { %2006 = vst [vmem:[#allocation2 + $0x40] sm:$0x7f] %v2892_v18  ;;  %v1962_v22 = vpop.f32.mrb[6].mxu0  ;;  %v2855_v23 = vpop.f32.mrb[27].mxu1 }
 0x1a6   : > { %2021 = vst [vmem:[%s3723_s25 + $0x10] sm:$0xff] %v2877_v17  ;;  %v2879_v24 = vadd.f32 %v1962_v22, %v948_v39  ;;  %v2843_v25 = vpop.f32.mrb[7].mxu0 }
 0x1a8   : > { %2022 = vst [vmem:[%s3723_s25 + $0x18] sm:$0xff] %v2879_v24 }
 0x1ab   : > { %v1967_v50 = vpop.f32.mrb[8].mxu0 }
 0x1ac   : > { %v2018_v26 = vld [vmem:[#allocation2 + $0x40] sm:$0x7f]  ;;  %v2881_v27 = vadd.f32 %v1967_v50, %v953_v41  ;;  %v2846_v28 = vpop.f32.mrb[9].mxu0 }
 0x1ad   : > { %2027 = vst [vmem:[%s3723_s25 + $0x40] sm:$0x7f] %v2018_v26  ;;  %v1970_v29 = vpop.f32.mrb[10].mxu0 }
 0x1ae   : > { %2023 = vst [vmem:[%s3723_s25 + $0x20] sm:$0xff] %v2881_v27  ;;  %v2883_v31 = vadd.f32 %v1970_v29, %v3716_v43  ;;  %v2847_v30 = vpop.f32.mrb[11].mxu0 }
 0x1b0   : > { %2024 = vst [vmem:[%s3723_s25 + $0x28] sm:$0xff] %v2883_v31 }
 0x1b1 PF: > { %s12_s11 = sadd.s32 1, %s3182_s11   ;;  %s3747_s9 = smov %s3178_s10 }
 0x1b2   : > { %p9_p6 = scmp.ge.s32.totalorder %s12_s11, 4   ;;  %s3748_s10 = smov %s3750_s12 }
 0x1b4   :  { %11 = sbr.rel (!%p9_p6) target bundleno = 2 (0x2), region = 80 }

// kernel: preact_block_forward.9
= control target key start
LH: loop header
LB: loop body
LE: loop exit
PB: predicated region body
PF: predicated region fallthrough
CT: control target
= control target key end

     0   :  { %s551_s1 = inlined_call_operand.vmem [shape: bf16[128,128], index: 1, kind: input, shape index: {}]   ;;  %s552_s0 = inlined_call_operand.vmem [shape: bf16[128,128], index: 0, kind: input, shape index: {}]   ;;  %s553_s2 = inlined_call_operand.vmem [shape: f32[128,128], index: 2, kind: output, shape index: {}]  }
   0x1   :  { %v424_v0 = vld [vmem:[%s551_s1] sm:$0xff]   ;;  %v425_v1 = vld [vmem:[%s551_s1 + $0x8] sm:$0xff]   ;;  %v426_v2 = vld [vmem:[%s551_s1 + $0x10] sm:$0xff]  }
   0x2   :  { %376 = vmatprep.subr.bf16.mxu0 %v424_v0  ;;  %408 = vmatprep.subr.bf16.mxu1 %v424_v0  ;;  %v427_v3 = vld [vmem:[%s551_s1 + $0x18] sm:$0xff]   ;;  %v432_v4 = vld [vmem:[%s552_s0] sm:$0xff]   ;;  %v429_v7 = vld [vmem:[%s551_s1 + $0x28] sm:$0xff]  }
   0x3   :  { %377 = vmatpush3.bf16.msra.mxu0 %v424_v0  ;;  %416 = vmatpush3.bf16.msra.mxu1 %v424_v0  ;;  %v433_v5 = vld [vmem:[%s552_s0 + $0x20] sm:$0xff]   ;;  %v430_v8 = vld [vmem:[%s551_s1 + $0x30] sm:$0xff]   ;;  %v431_v9 = vld [vmem:[%s551_s1 + $0x38] sm:$0xff]  }
   0x4   :  { %378 = vmatprep.subr.bf16.mxu0 %v425_v1  ;;  %409 = vmatprep.subr.bf16.mxu1 %v425_v1  ;;  %v428_v6 = vld [vmem:[%s551_s1 + $0x20] sm:$0xff]   ;;  %v434_v10 = vld [vmem:[%s552_s0 + $0x8] sm:$0xff]   ;;  %v436_v12 = vld [vmem:[%s552_s0 + $0x10] sm:$0xff]  }
   0x5   :  { %392 = vmatprep.mubr.bf16.mxu0 %v432_v4  ;;  %400 = vmatprep.mubr.bf16.mxu1 %v433_v5  ;;  %v435_v11 = vld [vmem:[%s552_s0 + $0x28] sm:$0xff]   ;;  %v437_v13 = vld [vmem:[%s552_s0 + $0x30] sm:$0xff]   ;;  %v438_v14 = vld [vmem:[%s552_s0 + $0x18] sm:$0xff]  }
   0x6   :  { %v439_v15 = vld [vmem:[%s552_s0 + $0x38] sm:$0xff]  }
   0x7   :  { %379 = vmatpush3.bf16.msra.mxu0 %v425_v1  ;;  %417 = vmatpush3.bf16.msra.mxu1 %v425_v1 }
   0x8   :  { %380 = vmatprep.subr.bf16.mxu0 %v426_v2  ;;  %410 = vmatprep.subr.bf16.mxu1 %v426_v2 }
   0xb   :  { %381 = vmatpush3.bf16.msra.mxu0 %v426_v2  ;;  %418 = vmatpush3.bf16.msra.mxu1 %v426_v2 }
   0xc   :  { %382 = vmatprep.subr.bf16.mxu0 %v427_v3  ;;  %411 = vmatprep.subr.bf16.mxu1 %v427_v3 }
   0xf   :  { %383 = vmatpush3.bf16.msra.mxu0 %v427_v3  ;;  %419 = vmatpush3.bf16.msra.mxu1 %v427_v3 }
  0x10   :  { %384 = vmatprep.subr.bf16.mxu0 %v428_v6  ;;  %412 = vmatprep.subr.bf16.mxu1 %v428_v6 }
  0x13   :  { %385 = vmatpush3.bf16.msra.mxu0 %v428_v6  ;;  %420 = vmatpush3.bf16.msra.mxu1 %v428_v6 }
  0x14   :  { %386 = vmatprep.subr.bf16.mxu0 %v429_v7  ;;  %413 = vmatprep.subr.bf16.mxu1 %v429_v7 }
  0x17   :  { %387 = vmatpush3.bf16.msra.mxu0 %v429_v7  ;;  %421 = vmatpush3.bf16.msra.mxu1 %v429_v7 }
  0x18   :  { %388 = vmatprep.subr.bf16.mxu0 %v430_v8  ;;  %414 = vmatprep.subr.bf16.mxu1 %v430_v8 }
  0x1b   :  { %389 = vmatpush3.bf16.msra.mxu0 %v430_v8  ;;  %422 = vmatpush3.bf16.msra.mxu1 %v430_v8 }
  0x1c   :  { %390 = vmatprep.subr.bf16.mxu0 %v431_v9  ;;  %415 = vmatprep.subr.bf16.mxu1 %v431_v9 }
  0x1f   :  { %391 = vmatpush3.bf16.msra.mxu0 %v431_v9  ;;  %423 = vmatpush3.bf16.msra.mxu1 %v431_v9 }
  0x22   :  { %393 = vmatmul.mubr.bf16.vlgmr.msra.gmra.mrb[0].mxu0 %v434_v10  ;;  %401 = vmatmul.mubr.bf16.vlgmr.msra.gmra.mrb[0].mxu1 %v435_v11 }
  0x23   :  { %396 = vmatprep.mubr.bf16.mxu0 %v436_v12  ;;  %404 = vmatprep.mubr.bf16.mxu1 %v437_v13 }
  0x2a   :  { %397 = vmatmul.mubr.bf16.gmra.mrb[4].mxu0 %v438_v14  ;;  %405 = vmatmul.mubr.bf16.gmra.mrb[4].mxu1 %v439_v15 }
  0xf5   :  { %v394_v16 = vpop.f32.mrb[0].mxu0  ;;  %v402_v17 = vpop.f32.mrb[0].mxu1 }
  0xf6   :  { %326 = vst [vmem:[%s553_s2 + $0x10] sm:$0xff] %v394_v16  ;;  %334 = vst [vmem:[%s553_s2 + $0x50] sm:$0xff] %v402_v17  ;;  %v210_v18 = vpop.f32.mrb[1].mxu0  ;;  %v242_v19 = vpop.f32.mrb[1].mxu1 }
  0xf7   :  { %324 = vst [vmem:[%s553_s2] sm:$0xff] %v210_v18  ;;  %332 = vst [vmem:[%s553_s2 + $0x40] sm:$0xff] %v242_v19  ;;  %v395_v20 = vpop.f32.mrb[2].mxu0  ;;  %v403_v21 = vpop.f32.mrb[2].mxu1 }
  0xf8   :  { %327 = vst [vmem:[%s553_s2 + $0x18] sm:$0xff] %v395_v20  ;;  %335 = vst [vmem:[%s553_s2 + $0x58] sm:$0xff] %v403_v21  ;;  %v213_v22 = vpop.f32.mrb[3].mxu0  ;;  %v245_v23 = vpop.f32.mrb[3].mxu1 }
  0xf9   :  { %325 = vst [vmem:[%s553_s2 + $0x8] sm:$0xff] %v213_v22  ;;  %333 = vst [vmem:[%s553_s2 + $0x48] sm:$0xff] %v245_v23 }
  0xfd   :  { %v398_v24 = vpop.f32.mrb[4].mxu0  ;;  %v406_v25 = vpop.f32.mrb[4].mxu1 }
  0xfe   :  { %330 = vst [vmem:[%s553_s2 + $0x30] sm:$0xff] %v398_v24  ;;  %338 = vst [vmem:[%s553_s2 + $0x70] sm:$0xff] %v406_v25  ;;  %v226_v26 = vpop.f32.mrb[5].mxu0  ;;  %v258_v27 = vpop.f32.mrb[5].mxu1 }
  0xff   :  { %328 = vst [vmem:[%s553_s2 + $0x20] sm:$0xff] %v226_v26  ;;  %336 = vst [vmem:[%s553_s2 + $0x60] sm:$0xff] %v258_v27  ;;  %v399_v28 = vpop.f32.mrb[6].mxu0  ;;  %v407_v29 = vpop.f32.mrb[6].mxu1 }
 0x100   :  { %331 = vst [vmem:[%s553_s2 + $0x38] sm:$0xff] %v399_v28  ;;  %339 = vst [vmem:[%s553_s2 + $0x78] sm:$0xff] %v407_v29  ;;  %v229_v30 = vpop.f32.mrb[7].mxu0  ;;  %v261_v31 = vpop.f32.mrb[7].mxu1 }
 0x101   :  { %329 = vst [vmem:[%s553_s2 + $0x28] sm:$0xff] %v229_v30  ;;  %337 = vst [vmem:[%s553_s2 + $0x68] sm:$0xff] %v261_v31 }

// kernel: preact_block_forward.13
= control target key start
LH: loop header
LB: loop body
LE: loop exit
PB: predicated region body
PF: predicated region fallthrough
CT: control target
= control target key end

     0   :  { %s3084_s12 = smov 0   ;;  %s3086_s13 = smov 0   ;;  %s3704_s0 = inlined_call_operand.vmem [shape: bf16[2,100,128], index: 0, kind: input, shape index: {}]   ;;  %s3705_s1 = inlined_call_operand.vmem [shape: bf16[9,128,128], index: 1, kind: input, shape index: {}]   ;;  %s3706_s2 = inlined_call_operand.vmem [shape: f32[2,78,128], index: 2, kind: input, shape index: {}]   ;;  %s3707_s3 = inlined_call_operand.vmem [shape: f32[2,78,128], index: 3, kind: output, shape index: {}]  }
   0x1   :  { %s3088_s14 = smov 0  }
   0x2 LB: > { %s32_s15 = sadd.s32 1, %s3056_s13  ;;  %p2221_p0 = scmp.ge.s32.totalorder %s3060_s14, 1  ;;  %s3060_s14 = sphi %s3088_s14, %s13_s14   ;;  %s3056_s13 = sphi %s3086_s13, %s3709_s13   ;;  %s3052_s12 = sphi %s3084_s12, %s3708_s12  }
   0x3   : > { %p34_p1 = scmp.ge.s32.totalorder %s32_s15, 2  ;;  %p194_p2 = scmp.lt.s32.totalorder %s3060_s14, 3 }
   0x5   : > { %s3711_s15 = smov (%p34_p1, %s32_s15), 0  ;;  %p195_p3 = pnand %p2221_p0, %p194_p2 }
   0x6   : > { %v2939_v0 = vld [vmem:[%s3705_s1] sm:$0xff] (!%p195_p3)   ;;  %v3062_v1 = vmov (!%p195_p3), 0.0   ;;  %v2941_v3 = vld [vmem:[%s3705_s1 + $0x8] sm:$0xff] (!%p195_p3)   ;;  %vm3063_vm0 = vmmov (!%p195_p3), 0   ;;  %p240_p4 = scmp.lt.s32.totalorder (!%p195_p3), %s3052_s12, 1  ;;  %v2943_v5 = vld [vmem:[%s3705_s1 + $0x10] sm:$0xff] (!%p195_p3)  }
   0x7   : > { %198 = sbr.rel (%p195_p3) target bundleno = 435 (0x1b3), region = 32  ;;  %2571 = vmatprep.subr.bf16.mxu0 (!%p195_p3), %v3062_v1  ;;  %287 = vst [vmem:[#allocation2 + $0x48] sm:$0x3f] (!%p195_p3), %v3062_v1  ;;  %2607 = vmatprep.subr.bf16.mxu1 (!%p195_p3), %v3062_v1  ;;  %v2940_v2 = vld [vmem:[%s3705_s1 + $0x40] sm:$0xff] (!%p195_p3)   ;;  %v2942_v4 = vld [vmem:[%s3705_s1 + $0x48] sm:$0xff] (!%p195_p3)   ;;  %v2944_v6 = vld [vmem:[%s3705_s1 + $0x50] sm:$0xff] (!%p195_p3)  }
   0x8   : > { %2572 = vmatpush3.bf16.msra.mxu0 (!%p195_p3), %v2939_v0  ;;  %2587 = vmatprep.mubr.msk.bf16.mxu0 (!%p195_p3), %vm3063_vm0, %v3062_v1  ;;  %v2945_v7 = vld [vmem:[%s3705_s1 + $0x18] sm:$0xff] (!%p195_p3)   ;;  %v2947_v9 = vld [vmem:[%s3705_s1 + $0x20] sm:$0xff] (!%p195_p3)   ;;  %v2949_v14 = vld [vmem:[%s3705_s1 + $0x28] sm:$0xff] (!%p195_p3)   ;;  %vm506_vm1 = vsmask.f32 (!%p195_p3), 7424  ;;  %vm703_vm2 = vcmask (!%p195_p3), 1046528  }
   0x9   : > { %2608 = vmatpush3.bf16.msra.mxu1 (!%p195_p3), %v2940_v2  ;;  %2573 = vmatprep.subr.bf16.mxu0 (!%p195_p3), %v3062_v1  ;;  %v2946_v8 = vld [vmem:[%s3705_s1 + $0x58] sm:$0xff] (!%p195_p3)   ;;  %v2948_v10 = vld [vmem:[%s3705_s1 + $0x60] sm:$0xff] (!%p195_p3)   ;;  %v2950_v15 = vld [vmem:[%s3705_s1 + $0x68] sm:$0xff] (!%p195_p3)   ;;  %vm1102_vm3 = vsmask.f32 (!%p195_p3), 6400  ;;  %vm1309_vm4 = vcmask (!%p195_p3), 1045504  }
   0xa   : > { %2609 = vmatprep.subr.bf16.mxu1 (!%p195_p3), %v3062_v1  ;;  %2623 = vmatprep.mubr.msk.bf16.mxu1 (!%p195_p3), %vm3063_vm0, %v3062_v1  ;;  %v2951_v18 = vld [vmem:[%s3705_s1 + $0x30] sm:$0xff] (!%p195_p3)   ;;  %v2953_v23 = vld [vmem:[%s3705_s1 + $0x38] sm:$0xff] (!%p195_p3)   ;;  %v2958_v28 = vld [vmem:[%s3705_s1 + $0x80] sm:$0xff] (!%p195_p3)   ;;  %vm1681_vm5 = vsmask.f32 (!%p195_p3), 5376  ;;  %vm1892_vm6 = vcmask (!%p195_p3), 1044480  }
   0xb   : > { %v2952_v19 = vld [vmem:[%s3705_s1 + $0x70] sm:$0xff] (!%p195_p3)   ;;  %v2954_v24 = vld [vmem:[%s3705_s1 + $0x78] sm:$0xff] (!%p195_p3)   ;;  %v2961_v32 = vld [vmem:[%s3705_s1 + $0xc0] sm:$0xff] (!%p195_p3)  }
   0xc   : > { %2574 = vmatpush3.bf16.msra.mxu0 (!%p195_p3), %v2941_v3  ;;  %v2959_v33 = vld [vmem:[%s3705_s1 + $0x88] sm:$0xff] (!%p195_p3)   ;;  %v2962_v38 = vld [vmem:[%s3705_s1 + $0x90] sm:$0xff] (!%p195_p3)   ;;  %v2965_v45 = vld [vmem:[%s3705_s1 + $0x98] sm:$0xff] (!%p195_p3)  }
   0xd   : > { %2610 = vmatpush3.bf16.msra.mxu1 (!%p195_p3), %v2942_v4  ;;  %2575 = vmatprep.subr.bf16.mxu0 (!%p195_p3), %v3062_v1  ;;  %v2963_v37 = vld [vmem:[%s3705_s1 + $0xc8] sm:$0xff] (!%p195_p3)   ;;  %v2966_v42 = vld [vmem:[%s3705_s1 + $0xd0] sm:$0xff] (!%p195_p3)   ;;  %v2968_v49 = vld [vmem:[%s3705_s1 + $0xd8] sm:$0xff] (!%p195_p3)  }
   0xe   : > { %s3713_s12 = smov (!%p240_p4, %s3052_s12), 1  ;;  %2611 = vmatprep.subr.bf16.mxu1 %v3062_v1  ;;  %v2967_v50 = vld [vmem:[%s3705_s1 + $0xa0] sm:$0xff]   ;;  %v2971_v55 = vld [vmem:[%s3705_s1 + $0xa8] sm:$0xff]   ;;  %v2973_v60 = vld [vmem:[%s3705_s1 + $0xb0] sm:$0xff]  }
   0xf   : > { %s2911_s28 = smul.u32 52, %s3713_s12  ;;  %v2970_v54 = vld [vmem:[%s3705_s1 + $0xe0] sm:$0xff]   ;;  %v2972_v58 = vld [vmem:[%s3705_s1 + $0xe8] sm:$0xff]   ;;  %v2975_v61 = vld [vmem:[%s3705_s1 + $0xf0] sm:$0xff]  }
  0x10   : > { %2576 = vmatpush3.bf16.msra.mxu0 %v2943_v5  ;;  %v2976_v2 = vld [vmem:[%s3705_s1 + $0xb8] sm:$0xff]  }
  0x11   : > { %2612 = vmatpush3.bf16.msra.mxu1 %v2944_v6  ;;  %2577 = vmatprep.subr.bf16.mxu0 %v3062_v1  ;;  %s3145_s8 = scalar_lea.vmem %s3704_s0, %s2911_s28  ;;  %v2977_v3 = vld [vmem:[%s3705_s1 + $0xf8] sm:$0xff]  }
  0x12   : > { %2613 = vmatprep.subr.bf16.mxu1 %v3062_v1  ;;  %v298_v11 = vld [vmem:[%s3145_s8] sm:$0xf]  ;;  %v3157_v12 = vld [vmem:[%s3145_s8 + $0x4] sm:$0xf]  ;;  %v3168_v17 = vld [vmem:[%s3145_s8 + $0x8] sm:$0xff]  }
  0x13   : > { %v2225_v13 = vcombine.low %v298_v11, %v3157_v12  ;;  %v515_v22 = vshll.u32 %v3168_v17, 16  ;;  %v3188_v27 = vld [vmem:[%s3145_s8 + $0x10] sm:$0xff]   ;;  %v519_v30 = vshrl.u32 %v3168_v17, 16  ;;  %v3209_v36 = vld [vmem:[%s3145_s8 + $0x18] sm:$0xff]   ;;  %v3228_v43 = vld [vmem:[%s3145_s8 + $0x20] sm:$0xf] }
  0x14   : > { %2578 = vmatpush3.bf16.msra.mxu0 %v2945_v7  ;;  %v523_v31 = vshll.u32 %v3188_v27, 16  ;;  %v527_v39 = vshrl.u32 %v3188_v27, 16  ;;  %v531_v41 = vshll.u32 %v3209_v36, 16  ;;  %v485_v44 = vld [vmem:[%s3145_s8 + $0x24] sm:$0xf]  ;;  %v535_v52 = vshrl.u32 %v3209_v36, 16 }
  0x15   : > { %2614 = vmatpush3.bf16.msra.mxu1 %v2946_v8  ;;  %2579 = vmatprep.subr.bf16.mxu0 %v3062_v1  ;;  %v510_v16 = vshll.u32 %v2225_v13, 16  ;;  %v508_v20 = vshrl.u32 %v2225_v13, 16  ;;  %v517_v26 = vrot.slane %v515_v22, 1  ;;  %v3241_v48 = vcombine.low %v3228_v43, %v485_v44  ;;  %v307_v62 = vld [vmem:[%s3145_s8 + $0x24] sm:$0x7]  ;;  %v2979_v8 = vld [vmem:[%s3145_s8 + $0xc] sm:$0xff]  }
  0x16   : > { %2615 = vmatprep.subr.bf16.mxu1 %v3062_v1  ;;  %v525_v35 = vrot.slane %v523_v31, 1  ;;  %v533_v47 = vrot.slane %v531_v41, 1  ;;  %v682_v0 = vld [vmem:[%s3145_s8] sm:$0xe]  ;;  %v2229_v4 = vcombine.low %v3228_v43, %v307_v62  ;;  %v2978_v7 = vld [vmem:[%s3145_s8 + $0x4] sm:$0xfe]  }
  0x17   : > { %v512_v21 = vrot.slane %v510_v16, 1  ;;  %v521_v34 = vor.u32 %v519_v30, %v517_v26  ;;  %v539_v53 = vshll.u32 %v3241_v48, 16  ;;  %v543_v63 = vshrl.u32 %v3241_v48, 16  ;;  %v2990_v30 = vld [vmem:[%s3705_s1 + $0x158] sm:$0xff]   ;;  %v2991_v31 = vld [vmem:[%s3145_s8 + $0x24] sm:$0xff]   ;;  %v3382_v44 = vld [vmem:[%s3145_s8 + $0xc] sm:$0xff]  }
  0x18   : > { %2580 = vmatpush3.bf16.msra.mxu0 %v2947_v9  ;;  %v529_v46 = vor.u32 %v527_v39, %v525_v35  ;;  %v537_v56 = vor.u32 %v535_v52, %v533_v47  ;;  %v2279_v5 = vcombine.low %v682_v0, %v3157_v12  ;;  %v901_v11 = vrot.slane %v2978_v7, 1  ;;  %v1046_v39 = vld [vmem:[%s3145_s8 + $0x4] sm:$0xe]  ;;  %v2994_v41 = vld [vmem:[%s3705_s1 + $0x168] sm:$0xff]   ;;  %v2997_v52 = vld [vmem:[%s3705_s1 + $0x138] sm:$0xff]  }
  0x19   : > { %2616 = vmatpush3.bf16.msra.mxu1 %v2948_v10  ;;  %2581 = vmatprep.subr.bf16.mxu0 %v3062_v1  ;;  %v513_v25 = vor.u32 %v512_v21, %v508_v20  ;;  %v526_v40 = vsel %vm506_vm1, %v521_v34, %v525_v35  ;;  %v541_v57 = vrot.slane %v539_v53, 1  ;;  %v705_v10 = vrot.slane %v3168_v17, 1  ;;  %v2985_v21 = vld [vmem:[%s3705_s1 + $0x148] sm:$0xff]   ;;  %v2998_v53 = vld [vmem:[%s3705_s1 + $0x178] sm:$0xff]  }
  0x1a   : > { %2617 = vmatprep.subr.bf16.mxu1 %v3062_v1  ;;  %v534_v51 = vsel %vm506_vm1, %v529_v46, %v533_v47  ;;  %v704_v9 = vrot.slane %v2279_v5, 1  ;;  %v902_v12 = vrot.slane %v2979_v8, 1  ;;  %v711_v35 = vrot.slane %v3241_v48, 1  ;;  %v2995_v46 = vld [vmem:[%s3705_s1 + $0x130] sm:$0xff]   ;;  %v3002_v5 = vld [vmem:[%s3705_s1 + $0x180] sm:$0xff]  }
  0x1b   : > { %v518_v29 = vsel %vm506_vm1, %v513_v25, %v517_v26  ;;  %v542_v59 = vsel %vm506_vm1, %v537_v56, %v541_v57  ;;  %v545_v6 = vor.u32 %v543_v63, %v541_v57  ;;  %v2986_v25 = vld [vmem:[%s3145_s8 + $0x1c] sm:$0xff]   ;;  %v2988_v26 = vld [vmem:[%s3705_s1 + $0x150] sm:$0xff]  }
  0x1c   : > { %2582 = vmatpush3.bf16.msra.mxu0 %v2949_v14  ;;  %v706_v14 = vsel %vm703_vm2, %v704_v9, %v705_v10  ;;  %v903_v16 = vsel %vm703_vm2, %v901_v11, %v902_v12  ;;  %v2996_v47 = vld [vmem:[%s3705_s1 + $0x170] sm:$0xff]   ;;  %v3425_v8 = vld [vmem:[%s3145_s8 + $0x1c] sm:$0xff]   ;;  %v3003_v11 = vld [vmem:[%s3705_s1 + $0x188] sm:$0xff]  }
  0x1d   : > { %2618 = vmatpush3.bf16.msra.mxu1 %v2950_v15  ;;  %2583 = vmatprep.subr.bf16.mxu0 %v3062_v1  ;;  %v2982_v15 = vld [vmem:[%s3145_s8 + $0x14] sm:$0xff]  }
  0x1e   : > { %2619 = vmatprep.subr.bf16.mxu1 %v3062_v1  ;;  %v904_v20 = vrot.slane %v2982_v15, 1 }
  0x20   : > { %2584 = vmatpush3.bf16.msra.mxu0 %v2951_v18  ;;  %v2983_v18 = vld [vmem:[%s3705_s1 + $0x140] sm:$0xff]  }
  0x21   : > { %2620 = vmatpush3.bf16.msra.mxu1 %v2952_v19  ;;  %2585 = vmatprep.subr.bf16.mxu0 %v3062_v1  ;;  %v707_v19 = vrot.slane %v3188_v27, 1 }
  0x22   : > { %2621 = vmatprep.subr.bf16.mxu1 %v3062_v1 }
  0x23   : > { %v708_v22 = vsel %vm703_vm2, %v705_v10, %v707_v19  ;;  %v3005_v10 = vld [vmem:[%s3705_s1 + $0x1c0] sm:$0xff]  }
  0x24   : > { %2586 = vmatpush3.bf16.msra.mxu0 %v2953_v23  ;;  %v2984_v23 = vld [vmem:[%s3705_s1 + $0x110] sm:$0xff]  }
  0x25   : > { %2622 = vmatpush3.bf16.msra.mxu1 %v2954_v24  ;;  %2643 = vmatprep.subr.bf16.mxu0 %v3062_v1  ;;  %v905_v24 = vsel %vm703_vm2, %v902_v12, %v904_v20 }
  0x26   : > { %2679 = vmatprep.subr.bf16.mxu1 %v3062_v1 }
  0x27   : > { %2588 = vmatmul.mubr.bf16.vlgmr.msra.gmra.mrb[0].mxu0 %v2225_v13  ;;  %v2980_v13 = vld [vmem:[%s3705_s1 + $0x100] sm:$0xff]  }
  0x28   : > { %2624 = vmatmul.mubr.bf16.vlgmr.msra.gmra.mrb[0].mxu1 %v518_v29  ;;  %2644 = vmatpush3.bf16.msra.mxu0 %v2958_v28  ;;  %v2987_v28 = vld [vmem:[%s3705_s1 + $0x118] sm:$0xff]   ;;  %v906_v29 = vrot.slane %v2986_v25, 1 }
  0x29   : > { %2645 = vmatprep.subr.bf16.mxu0 %v3062_v1  ;;  %2591 = vmatprep.mubr.msk.bf16.mxu0 %vm3063_vm0, %v3062_v1  ;;  %v3009_v25 = vld [vmem:[%s3705_s1 + $0x198] sm:$0xff]  }
  0x2a   : > { %2627 = vmatprep.mubr.msk.bf16.mxu1 %vm3063_vm0, %v3062_v1  ;;  %2680 = vmatpush3.bf16.msra.mxu1 %v2961_v32  ;;  %v907_v34 = vsel %vm703_vm2, %v904_v20, %v906_v29 }
  0x2b   : > { %2681 = vmatprep.subr.bf16.mxu1 %v3062_v1 }
  0x2c   : > { %2646 = vmatpush3.bf16.msra.mxu0 %v2959_v33  ;;  %v2989_v33 = vld [vmem:[%s3705_s1 + $0x120] sm:$0xff]  }
  0x2d   : > { %2647 = vmatprep.subr.bf16.mxu0 %v3062_v1 }
  0x2e   : > { %2682 = vmatpush3.bf16.msra.mxu1 %v2963_v37  ;;  %v908_v37 = vrot.slane %v2991_v31, 1  ;;  %v3011_v31 = vld [vmem:[%s3705_s1 + $0x1a0] sm:$0xff]  }
  0x2f   : > { %2592 = vmatmul.mubr.bf16.gmra.mrb[4].mxu0 %v3168_v17  ;;  %2683 = vmatprep.subr.bf16.mxu1 %v3062_v1  ;;  %v2981_v17 = vld [vmem:[%s3705_s1 + $0x108] sm:$0xff]  }
  0x30   : > { %2628 = vmatmul.mubr.bf16.gmra.mrb[4].mxu1 %v526_v40  ;;  %2648 = vmatpush3.bf16.msra.mxu0 %v2962_v38  ;;  %v2993_v38 = vld [vmem:[%s3705_s1 + $0x128] sm:$0xff]  }
  0x31   : > { %2595 = vmatprep.mubr.msk.bf16.mxu0 %vm3063_vm0, %v3062_v1  ;;  %2631 = vmatprep.mubr.msk.bf16.mxu1 %vm3063_vm0, %v3062_v1  ;;  %v1047_v40 = vld [vmem:[%s3145_s8 + $0x8] sm:$0xf] }
  0x32   : > { %2649 = vmatprep.subr.bf16.mxu0 %v3062_v1  ;;  %2684 = vmatpush3.bf16.msra.mxu1 %v2966_v42  ;;  %v2333_v42 = vcombine.low %v1046_v39, %v1047_v40 }
  0x33   : > { %2685 = vmatprep.subr.bf16.mxu1 %v3062_v1 }
  0x34   : > { %2650 = vmatpush3.bf16.msra.mxu0 %v2965_v45  ;;  %v909_v45 = vsel %vm703_vm2, %v906_v29, %v908_v37  ;;  %v1104_v48 = vshrl.u32 %v2333_v42, 16  ;;  %v3012_v29 = vld [vmem:[%s3705_s1 + $0x1d8] sm:$0xff]  }
  0x35   : > { %2651 = vmatprep.subr.bf16.mxu0 %v3062_v1 }
  0x36   : > { %2686 = vmatpush3.bf16.msra.mxu1 %v2968_v49  ;;  %v1107_v49 = vshll.u32 %v2333_v42, 16  ;;  %v3499_v42 = vld [vmem:[%s3145_s8 + $0xc] sm:$0xf] }
  0x37   : > { %2596 = vmatmul.mubr.bf16.gmra.mrb[8].mxu0 %v3188_v27  ;;  %2687 = vmatprep.subr.bf16.mxu1 %v3062_v1  ;;  %v709_v27 = vrot.slane %v3209_v36, 1 }
  0x38   : > { %2632 = vmatmul.mubr.bf16.gmra.mrb[8].mxu1 %v534_v51  ;;  %2652 = vmatpush3.bf16.msra.mxu0 %v2967_v50  ;;  %v1112_v50 = vshrl.u32 %v3382_v44, 16  ;;  %v1115_v51 = vshll.u32 %v3382_v44, 16  ;;  %v1109_v56 = vrot.slane %v1107_v49, 2  ;;  %v3019_v49 = vld [vmem:[%s3705_s1 + $0x1f0] sm:$0xff]  }
  0x39   : > { %2599 = vmatprep.mubr.msk.bf16.mxu0 %vm3063_vm0, %v3062_v1  ;;  %2635 = vmatprep.mubr.msk.bf16.mxu1 %vm3063_vm0, %v3062_v1  ;;  %v710_v32 = vsel %vm703_vm2, %v707_v19, %v709_v27  ;;  %v712_v43 = vsel %vm703_vm2, %v709_v27, %v711_v35 }
  0x3a   : > { %2653 = vmatprep.subr.bf16.mxu0 %v3062_v1  ;;  %2688 = vmatpush3.bf16.msra.mxu1 %v2970_v54  ;;  %v1288_v54 = vld [vmem:[%s3145_s8 + $0x4] sm:$0xc]  ;;  %v1114_v57 = vrot.slane %v1112_v50, 1 }
  0x3b   : > { %2689 = vmatprep.subr.bf16.mxu1 %v3062_v1 }
  0x3c   : > { %2654 = vmatpush3.bf16.msra.mxu0 %v2971_v55  ;;  %v1106_v55 = vrot.slane %v1104_v48, 1  ;;  %v3510_v48 = vld [vmem:[%s3145_s8 + $0x10] sm:$0xff]  }
  0x3d   : > { %2655 = vmatprep.subr.bf16.mxu0 %v3062_v1 }
  0x3e   : > { %2690 = vmatpush3.bf16.msra.mxu1 %v2972_v58  ;;  %v1117_v58 = vrot.slane %v1115_v51, 2 }
  0x3f   : > { %2600 = vmatmul.mubr.bf16.gmra.mrb[12].mxu0 %v3209_v36  ;;  %2691 = vmatprep.subr.bf16.mxu1 %v3062_v1  ;;  %v2992_v36 = vld [vmem:[%s3705_s1 + $0x160] sm:$0xff]  }
  0x40   : > { %2636 = vmatmul.mubr.bf16.gmra.mrb[12].mxu1 %v542_v59  ;;  %2603 = vmatprep.mubr.msk.bf16.mxu0 %vm3063_vm0, %v3062_v1  ;;  %v3409_v59 = vld [vmem:[%s3145_s8 + $0x14] sm:$0xff]   ;;  %v1118_v62 = vor.u32 %v1117_v58, %v1114_v57 }
  0x41   : > { %2639 = vmatprep.mubr.msk.bf16.mxu1 %vm3063_vm0, %v3062_v1  ;;  %2656 = vmatpush3.bf16.msra.mxu0 %v2973_v60  ;;  %v2363_v60 = vcombine.low %v1288_v54, %v1047_v40  ;;  %v1121_v63 = vshrl.u32 %v3409_v59, 16  ;;  %v1124_v0 = vshll.u32 %v3409_v59, 16  ;;  %v1313_v15 = vrot.slane %v3409_v59, 2  ;;  %v3016_v40 = vld [vmem:[%s3705_s1 + $0x1e8] sm:$0xff]   ;;  %v3021_v57 = vld [vmem:[%s3705_s1 + $0x1f8] sm:$0xff]  }
  0x42   : > { %2692 = vmatpush3.bf16.msra.mxu1 %v2975_v61  ;;  %2657 = vmatprep.subr.bf16.mxu0 %v3062_v1  ;;  %v1110_v61 = vor.u32 %v1109_v56, %v1106_v55  ;;  %v1691_v55 = vshrl.u32 %v3510_v48, 16  ;;  %v1694_v56 = vshll.u32 %v3510_v48, 16 }
  0x43   : > { %2693 = vmatprep.subr.bf16.mxu1 %v3062_v1  ;;  %v1126_v7 = vrot.slane %v1124_v0, 2  ;;  %v3533_v0 = vld [vmem:[%s3145_s8 + $0x18] sm:$0xff]  }
  0x45   : > { %2658 = vmatpush3.bf16.msra.mxu0 %v2976_v2  ;;  %v1310_v2 = vrot.slane %v2363_v60, 2 }
  0x46   : > { %2694 = vmatpush3.bf16.msra.mxu1 %v2977_v3  ;;  %2715 = vmatprep.subr.bf16.mxu0 %v3062_v1  ;;  %v1311_v3 = vrot.slane %v3382_v44, 2 }
  0x47   : > { %2604 = vmatmul.mubr.bf16.gmra.mrb[16].mxu0 %v2229_v4  ;;  %2751 = vmatprep.subr.bf16.mxu1 %v3062_v1  ;;  %v1119_v4 = vsel %vm1102_vm3, %v1110_v61, %v1118_v62 }
  0x48   : > { %2640 = vmatmul.mubr.bf16.gmra.mrb[16].mxu1 %v545_v6  ;;  %2659 = vmatprep.mubr.msk.bf16.mxu0 %vm3063_vm0, %v3062_v1  ;;  %v1123_v6 = vrot.slane %v1121_v63, 1  ;;  %v1312_v9 = vsel %vm1309_vm4, %v1310_v2, %v1311_v3  ;;  %v1696_v63 = vrot.slane %v1694_v56, 3 }
  0x49   : > { %2695 = vmatprep.mubr.msk.bf16.mxu1 %vm3063_vm0, %v3062_v1 }
  0x4a   : > { %v1127_v12 = vor.u32 %v1126_v7, %v1123_v6  ;;  %v1700_v6 = vshrl.u32 %v3533_v0, 16  ;;  %v1703_v7 = vshll.u32 %v3533_v0, 16 }
  0x4f   : > { %2660 = vmatmul.mubr.bf16.vlgmr.msra.gmra.mrb[20].mxu0 %v706_v14  ;;  %v1133_v14 = vshll.u32 %v3425_v8, 16 }
  0x50   : > { %2696 = vmatmul.mubr.bf16.vlgmr.msra.gmra.mrb[20].mxu1 %v903_v16  ;;  %2716 = vmatpush3.bf16.msra.mxu0 %v2980_v13  ;;  %v1130_v13 = vshrl.u32 %v3425_v8, 16  ;;  %v3007_v16 = vld [vmem:[%s3705_s1 + $0x1c8] sm:$0xff]  }
  0x51   : > { %2717 = vmatprep.subr.bf16.mxu0 %v3062_v1  ;;  %2663 = vmatprep.mubr.msk.bf16.mxu0 %vm3063_vm0, %v3062_v1  ;;  %v1135_v20 = vrot.slane %v1133_v14, 2  ;;  %v3025_v14 = vld [vmem:[%s3705_s1 + $0x208] sm:$0xff]  }
  0x52   : > { %2699 = vmatprep.mubr.msk.bf16.mxu1 %vm3063_vm0, %v3062_v1  ;;  %2752 = vmatpush3.bf16.msra.mxu1 %v2983_v18  ;;  %v1128_v18 = vsel %vm1102_vm3, %v1118_v62, %v1127_v12  ;;  %v1132_v19 = vrot.slane %v1130_v13, 1  ;;  %v1693_v62 = vrot.slane %v1691_v55, 2  ;;  %v3550_v13 = vld [vmem:[%s3145_s8 + $0x20] sm:$0xff]  }
  0x53   : > { %2753 = vmatprep.subr.bf16.mxu1 %v3062_v1 }
  0x54   : > { %2718 = vmatpush3.bf16.msra.mxu0 %v2981_v17  ;;  %v3006_v17 = vld [vmem:[%s3705_s1 + $0x190] sm:$0xff]  }
  0x55   : > { %2719 = vmatprep.subr.bf16.mxu0 %v3062_v1 }
  0x56   : > { %2754 = vmatpush3.bf16.msra.mxu1 %v2985_v21  ;;  %v3451_v21 = vld [vmem:[%s3145_s8 + $0x24] sm:$0xff]  }
  0x57   : > { %2664 = vmatmul.mubr.bf16.gmra.mrb[24].mxu0 %v708_v22  ;;  %2755 = vmatprep.subr.bf16.mxu1 %v3062_v1  ;;  %v1314_v22 = vsel %vm1309_vm4, %v1311_v3, %v1313_v15  ;;  %v1142_v27 = vshll.u32 %v3451_v21, 16  ;;  %v1317_v39 = vrot.slane %v3451_v21, 2  ;;  %v1514_v3 = vrot.slane %v3510_v48, 2 }
  0x58   : > { %2700 = vmatmul.mubr.bf16.gmra.mrb[24].mxu1 %v905_v24  ;;  %2720 = vmatpush3.bf16.msra.mxu0 %v2984_v23  ;;  %v3010_v23 = vld [vmem:[%s3705_s1 + $0x1d0] sm:$0xff]   ;;  %v1136_v24 = vor.u32 %v1135_v20, %v1132_v19 }
  0x59   : > { %2667 = vmatprep.mubr.msk.bf16.mxu0 %vm3063_vm0, %v3062_v1  ;;  %2703 = vmatprep.mubr.msk.bf16.mxu1 %vm3063_vm0, %v3062_v1  ;;  %v3027_v20 = vld [vmem:[%s3705_s1 + $0x210] sm:$0xff]  }
  0x5a   : > { %2721 = vmatprep.subr.bf16.mxu0 %v3062_v1  ;;  %2756 = vmatpush3.bf16.msra.mxu1 %v2988_v26  ;;  %v1139_v26 = vshrl.u32 %v3451_v21, 16 }
  0x5b   : > { %2757 = vmatprep.subr.bf16.mxu1 %v3062_v1 }
  0x5c   : > { %2722 = vmatpush3.bf16.msra.mxu0 %v2987_v28  ;;  %v1315_v28 = vrot.slane %v3425_v8, 2 }
  0x5d   : > { %2723 = vmatprep.subr.bf16.mxu0 %v3062_v1 }
  0x5e   : > { %2758 = vmatpush3.bf16.msra.mxu1 %v2990_v30  ;;  %v1137_v30 = vsel %vm1102_vm3, %v1127_v12, %v1136_v24  ;;  %v1705_v12 = vrot.slane %v1703_v7, 3 }
  0x5f   : > { %2668 = vmatmul.mubr.bf16.gmra.mrb[28].mxu0 %v710_v32  ;;  %2759 = vmatprep.subr.bf16.mxu1 %v3062_v1  ;;  %v1141_v32 = vrot.slane %v1139_v26, 1  ;;  %v3029_v26 = vld [vmem:[%s3705_s1 + $0x218] sm:$0xff]  }
  0x60   : > { %2704 = vmatmul.mubr.bf16.gmra.mrb[28].mxu1 %v907_v34  ;;  %2724 = vmatpush3.bf16.msra.mxu0 %v2989_v33  ;;  %v1144_v33 = vrot.slane %v1142_v27, 2  ;;  %v1316_v34 = vsel %vm1309_vm4, %v1313_v15, %v1315_v28  ;;  %v1516_v15 = vrot.slane %v3533_v0, 2 }
  0x61   : > { %2671 = vmatprep.mubr.msk.bf16.mxu0 %vm3063_vm0, %v3062_v1  ;;  %2707 = vmatprep.mubr.msk.bf16.mxu1 %vm3063_vm0, %v3062_v1 }
  0x62   : > { %2725 = vmatprep.subr.bf16.mxu0 %v3062_v1  ;;  %2760 = vmatpush3.bf16.msra.mxu1 %v2992_v36  ;;  %v1145_v36 = vor.u32 %v1144_v33, %v1141_v32  ;;  %v1517_v19 = vsel %vm1309_vm4, %v1514_v3, %v1516_v15 }
  0x63   : > { %2761 = vmatprep.subr.bf16.mxu1 %v3062_v1 }
  0x64   : > { %2726 = vmatpush3.bf16.msra.mxu0 %v2993_v38  ;;  %v3018_v38 = vld [vmem:[%s3145_s8 + $0x2c] ss:$0 sps:$4 sm:$0x11]  }
  0x65   : > { %2727 = vmatprep.subr.bf16.mxu0 %v3062_v1  ;;  %v1148_v44 = vshll.u32 %v3018_v38, 16  ;;  %v1319_v51 = vrot.slane %v3018_v38, 2 }
  0x66   : > { %2762 = vmatpush3.bf16.msra.mxu1 %v2994_v41  ;;  %v1457_v41 = vld [vmem:[%s3145_s8 + $0x8] sm:$0xc] }
  0x67   : > { %2672 = vmatmul.mubr.bf16.gmra.mrb[32].mxu0 %v712_v43  ;;  %2763 = vmatprep.subr.bf16.mxu1 %v3062_v1  ;;  %v1146_v43 = vsel %vm1102_vm3, %v1136_v24, %v1145_v36  ;;  %v1150_v50 = vrot.slane %v1148_v44, 2  ;;  %v1320_v59 = vsel %vm1309_vm4, %v1317_v39, %v1319_v51  ;;  %v3571_v24 = vld [vmem:[%s3145_s8 + $0x28] sm:$0xff]   ;;  %v3036_v51 = vld [vmem:[%s3705_s1 + $0x238] sm:$0xff]  }
  0x68   : > { %2708 = vmatmul.mubr.bf16.gmra.mrb[32].mxu1 %v909_v45  ;;  %2675 = vmatprep.mubr.msk.bf16.mxu0 %vm3063_vm0, %v3062_v1  ;;  %v1318_v45 = vsel %vm1309_vm4, %v1315_v28, %v1317_v39  ;;  %v1718_v28 = vshrl.u32 %v3571_v24, 16 }
  0x69   : > { %2711 = vmatprep.mubr.msk.bf16.mxu1 %vm3063_vm0, %v3062_v1  ;;  %2728 = vmatpush3.bf16.msra.mxu0 %v2995_v46  ;;  %v3017_v46 = vld [vmem:[%s3705_s1 + $0x1b0] sm:$0xff]   ;;  %v1151_v58 = vsel %vm1102_vm3, %v1145_v36, %v1150_v50  ;;  %v1520_v36 = vrot.slane %v3571_v24, 2 }
  0x6a   : > { %2764 = vmatpush3.bf16.msra.mxu1 %v2996_v47  ;;  %2729 = vmatprep.subr.bf16.mxu0 %v3062_v1  ;;  %v2388_v47 = vcombine.low %v1457_v41, %v3499_v42  ;;  %v1720_v33 = vrot.slane %v1718_v28, 2 }
  0x6b   : > { %2765 = vmatprep.subr.bf16.mxu1 %v3062_v1 }
  0x6c   : > { %v1686_v54 = vshll.u32 %v2388_v47, 16  ;;  %v1513_v2 = vrot.slane %v2388_v47, 2 }
  0x6d   : > { %2730 = vmatpush3.bf16.msra.mxu0 %v2997_v52  ;;  %v3020_v52 = vld [vmem:[%s3705_s1 + $0x1b8] sm:$0xff]  }
  0x6e   : > { %2766 = vmatpush3.bf16.msra.mxu1 %v2998_v53  ;;  %2787 = vmatprep.subr.bf16.mxu0 %v3062_v1  ;;  %v1683_v53 = vshrl.u32 %v2388_v47, 16  ;;  %v1688_v61 = vrot.slane %v1686_v54, 3  ;;  %v1515_v8 = vsel %vm1309_vm4, %v1513_v2, %v1514_v3 }
  0x6f   : > { %2676 = vmatmul.mubr.bf16.gmra.mrb[36].mxu0 %v711_v35  ;;  %2823 = vmatprep.subr.bf16.mxu1 %v3062_v1  ;;  %v3014_v35 = vld [vmem:[%s3705_s1 + $0x1e0] sm:$0xff]  }
  0x70   : > { %2712 = vmatmul.mubr.bf16.gmra.mrb[36].mxu1 %v908_v37  ;;  %2731 = vmatprep.mubr.msk.bf16.mxu0 %vm3063_vm0, %v3062_v1  ;;  %v3015_v37 = vld [vmem:[%s3705_s1 + $0x1a8] sm:$0xff]   ;;  %v1685_v60 = vrot.slane %v1683_v53, 2 }
  0x71   : > { %2767 = vmatprep.mubr.msk.bf16.mxu1 %vm3063_vm0, %v3062_v1 }
  0x77   : > { %2732 = vmatmul.mubr.bf16.vlgmr.msra.gmra.mrb[40].mxu0 %v1119_v4  ;;  %v1689_v4 = vor.u32 %v1688_v61, %v1685_v60  ;;  %v1896_v61 = vrot.slane %v3533_v0, 3 }
  0x78   : > { %2768 = vmatmul.mubr.bf16.vlgmr.msra.gmra.mrb[40].mxu1 %v1312_v9  ;;  %2788 = vmatpush3.bf16.msra.mxu0 %v3002_v5  ;;  %v1697_v5 = vor.u32 %v1696_v63, %v1693_v62  ;;  %v3024_v9 = vld [vmem:[%s3705_s1 + $0x200] sm:$0xff]  }
  0x79   : > { %2789 = vmatprep.subr.bf16.mxu0 %v3062_v1  ;;  %2735 = vmatprep.mubr.msk.bf16.mxu0 %vm3063_vm0, %v3062_v1 }
  0x7a   : > { %2771 = vmatprep.mubr.msk.bf16.mxu1 %vm3063_vm0, %v3062_v1  ;;  %2824 = vmatpush3.bf16.msra.mxu1 %v3005_v10  ;;  %v1698_v10 = vsel %vm1681_vm5, %v1689_v4, %v1697_v5 }
  0x7b   : > { %2825 = vmatprep.subr.bf16.mxu1 %v3062_v1 }
  0x7c   : > { %2790 = vmatpush3.bf16.msra.mxu0 %v3003_v11  ;;  %v1702_v11 = vrot.slane %v1700_v6, 2 }
  0x7d   : > { %2791 = vmatprep.subr.bf16.mxu0 %v3062_v1 }
  0x7e   : > { %2826 = vmatpush3.bf16.msra.mxu1 %v3007_v16  ;;  %v1706_v16 = vor.u32 %v1705_v12, %v1702_v11 }
  0x7f   : > { %2736 = vmatmul.mubr.bf16.gmra.mrb[44].mxu0 %v1128_v18  ;;  %2827 = vmatprep.subr.bf16.mxu1 %v3062_v1  ;;  %v1709_v18 = vshrl.u32 %v3550_v13, 16 }
  0x80   : > { %2772 = vmatmul.mubr.bf16.gmra.mrb[44].mxu1 %v1314_v22  ;;  %2792 = vmatpush3.bf16.msra.mxu0 %v3006_v17  ;;  %v1712_v17 = vshll.u32 %v3550_v13, 16  ;;  %v1707_v21 = vsel %vm1681_vm5, %v1697_v5, %v1706_v16 }
  0x81   : > { %2739 = vmatprep.mubr.msk.bf16.mxu0 %vm3063_vm0, %v3062_v1  ;;  %2775 = vmatprep.mubr.msk.bf16.mxu1 %vm3063_vm0, %v3062_v1  ;;  %v1711_v22 = vrot.slane %v1709_v18, 2 }
  0x82   : > { %2793 = vmatprep.subr.bf16.mxu0 %v3062_v1  ;;  %2828 = vmatpush3.bf16.msra.mxu1 %v3010_v23  ;;  %v1714_v23 = vrot.slane %v1712_v17, 3 }
  0x83   : > { %2829 = vmatprep.subr.bf16.mxu1 %v3062_v1 }
  0x84   : > { %2794 = vmatpush3.bf16.msra.mxu0 %v3009_v25  ;;  %v1518_v25 = vrot.slane %v3550_v13, 2  ;;  %v1715_v27 = vor.u32 %v1714_v23, %v1711_v22 }
  0x85   : > { %2795 = vmatprep.subr.bf16.mxu0 %v3062_v1 }
  0x86   : > { %2830 = vmatpush3.bf16.msra.mxu1 %v3012_v29  ;;  %v1721_v29 = vshll.u32 %v3571_v24, 16  ;;  %v1716_v32 = vsel %vm1681_vm5, %v1706_v16, %v1715_v27  ;;  %v1521_v41 = vsel %vm1309_vm4, %v1518_v25, %v1520_v36 }
  0x87   : > { %2740 = vmatmul.mubr.bf16.gmra.mrb[48].mxu0 %v1137_v30  ;;  %2831 = vmatprep.subr.bf16.mxu1 %v3062_v1  ;;  %v1519_v30 = vsel %vm1309_vm4, %v1516_v15, %v1518_v25 }
  0x88   : > { %2776 = vmatmul.mubr.bf16.gmra.mrb[48].mxu1 %v1316_v34  ;;  %2796 = vmatpush3.bf16.msra.mxu0 %v3011_v31  ;;  %v3030_v31 = vld [vmem:[%s3705_s1 + $0x220] sm:$0xff]   ;;  %v1723_v34 = vrot.slane %v1721_v29, 3 }
  0x89   : > { %2743 = vmatprep.mubr.msk.bf16.mxu0 %vm3063_vm0, %v3062_v1  ;;  %2779 = vmatprep.mubr.msk.bf16.mxu1 %vm3063_vm0, %v3062_v1 }
  0x8a   : > { %2797 = vmatprep.subr.bf16.mxu0 %v3062_v1  ;;  %2832 = vmatpush3.bf16.msra.mxu1 %v3014_v35  ;;  %v3593_v35 = vld [vmem:[%s3145_s8 + $0x30] ss:$0 sps:$4 sm:$0x33]   ;;  %v1724_v38 = vor.u32 %v1723_v34, %v1720_v33 }
  0x8b   : > { %2833 = vmatprep.subr.bf16.mxu1 %v3062_v1  ;;  %v1727_v39 = vshrl.u32 %v3593_v35, 16 }
  0x8c   : > { %2798 = vmatpush3.bf16.msra.mxu0 %v3015_v37  ;;  %v3032_v37 = vld [vmem:[%s3705_s1 + $0x228] sm:$0xff]   ;;  %v1725_v44 = vsel %vm1681_vm5, %v1715_v27, %v1724_v38 }
  0x8d   : > { %2799 = vmatprep.subr.bf16.mxu0 %v3062_v1 }
  0x8e   : > { %2834 = vmatpush3.bf16.msra.mxu1 %v3016_v40  ;;  %v1730_v40 = vshll.u32 %v3593_v35, 16 }
  0x8f   : > { %2744 = vmatmul.mubr.bf16.gmra.mrb[52].mxu0 %v1146_v43  ;;  %2835 = vmatprep.subr.bf16.mxu1 %v3062_v1  ;;  %v3034_v43 = vld [vmem:[%s3145_s8 + $0x30] ss:$0 sps:$4 sm:$0x11]  }
  0x90   : > { %2780 = vmatmul.mubr.bf16.gmra.mrb[52].mxu1 %v1318_v45  ;;  %2747 = vmatprep.mubr.msk.bf16.mxu0 %vm3063_vm0, %v3062_v1  ;;  %v3033_v45 = vld [vmem:[%s3705_s1 + $0x230] sm:$0xff]   ;;  %v1732_v47 = vrot.slane %v1730_v40, 3 }
  0x91   : > { %2783 = vmatprep.mubr.msk.bf16.mxu1 %vm3063_vm0, %v3062_v1  ;;  %2800 = vmatpush3.bf16.msra.mxu0 %v3017_v46  ;;  %v1729_v46 = vrot.slane %v1727_v39, 2 }
  0x92   : > { %2836 = vmatpush3.bf16.msra.mxu1 %v3019_v49  ;;  %2801 = vmatprep.subr.bf16.mxu0 %v3062_v1  ;;  %v1522_v49 = vrot.slane %v3034_v43, 2  ;;  %v297_v43 = vld [vmem:[#allocation2 + $0x48] sm:$0x3f] }
  0x93   : > { %2837 = vmatprep.subr.bf16.mxu1 %v3062_v1  ;;  %v1733_v50 = vor.u32 %v1732_v47, %v1729_v46 }
  0x94   : > { %v1523_v53 = vsel %vm1309_vm4, %v1520_v36, %v1522_v49 }
  0x95   : > { %2802 = vmatpush3.bf16.msra.mxu0 %v3020_v52  ;;  %v1871_v52 = vld [vmem:[%s3145_s8 + $0x8] sm:$0x8]  ;;  %v1734_v55 = vsel %vm1681_vm5, %v1724_v38, %v1733_v50  ;;  %s2912_s8 = smul.u32 80, %s3713_s12 }
  0x96   : > { %2838 = vmatpush3.bf16.msra.mxu1 %v3021_v57  ;;  %2859 = vmatprep.subr.bf16.mxu0 %v3062_v1  ;;  %v2443_v54 = vcombine.low %v1871_v52, %v3499_v42  ;;  %v1894_v57 = vrot.slane %v3510_v48, 3  ;;  %v1900_v42 = vrot.slane %v3571_v24, 3  ;;  %v1902_v48 = vrot.slane %v3593_v35, 3 }
  0x97   : > { %2748 = vmatmul.mubr.bf16.gmra.mrb[56].mxu0 %v1151_v58  ;;  %2895 = vmatprep.subr.bf16.mxu1 %v3062_v1  ;;  %v1898_v58 = vrot.slane %v3550_v13, 3  ;;  %s3663_s6 = scalar_lea.vmem %s3706_s2, %s2912_s8  ;;  %s3670_s9 = scalar_lea.vmem %s3707_s3, %s2912_s8 }
  0x98   : > { %2784 = vmatmul.mubr.bf16.gmra.mrb[56].mxu1 %v1320_v59  ;;  %2803 = vmatprep.mubr.msk.bf16.mxu0 %vm3063_vm0, %v3062_v1  ;;  %v1893_v56 = vrot.slane %v2443_v54, 3  ;;  %v1897_v62 = vsel %vm1892_vm6, %v1894_v57, %v1896_v61  ;;  %v1903_v63 = vsel %vm1892_vm6, %v1900_v42, %v1902_v48 }
  0x99   : > { %2839 = vmatprep.mubr.msk.bf16.mxu1 %vm3063_vm0, %v3062_v1  ;;  %v1901_v60 = vsel %vm1892_vm6, %v1898_v58, %v1900_v42  ;;  %v1899_v2 = vsel %vm1892_vm6, %v1896_v61, %v1898_v58 }
  0x9a   : > { %v1895_v59 = vsel %vm1892_vm6, %v1893_v56, %v1894_v57 }
  0x9f   : > { %2804 = vmatmul.mubr.bf16.vlgmr.msra.gmra.mrb[60].mxu0 %v1515_v8 }
  0xa0   : > { %2840 = vmatmul.mubr.bf16.vlgmr.msra.gmra.mrb[60].mxu1 %v1698_v10  ;;  %2860 = vmatpush3.bf16.msra.mxu0 %v3024_v9 }
  0xa1   : > { %2861 = vmatprep.subr.bf16.mxu0 %v3062_v1  ;;  %2807 = vmatprep.mubr.msk.bf16.mxu0 %vm3063_vm0, %v3062_v1 }
  0xa2   : > { %2843 = vmatprep.mubr.msk.bf16.mxu1 %vm3063_vm0, %v3062_v1  ;;  %2903 = vmatpush3.bf16.msra.mxu1 %v3024_v9 }
  0xa3   : > { %2896 = vmatprep.subr.bf16.mxu1 %v3062_v1 }
  0xa4   : > { %2862 = vmatpush3.bf16.msra.mxu0 %v3025_v14 }
  0xa5   : > { %2863 = vmatprep.subr.bf16.mxu0 %v3062_v1 }
  0xa6   : > { %2904 = vmatpush3.bf16.msra.mxu1 %v3025_v14 }
  0xa7   : > { %2808 = vmatmul.mubr.bf16.gmra.mrb[64].mxu0 %v1517_v19  ;;  %2897 = vmatprep.subr.bf16.mxu1 %v3062_v1 }
  0xa8   : > { %2844 = vmatmul.mubr.bf16.gmra.mrb[64].mxu1 %v1707_v21  ;;  %2864 = vmatpush3.bf16.msra.mxu0 %v3027_v20 }
  0xa9   : > { %2811 = vmatprep.mubr.msk.bf16.mxu0 %vm3063_vm0, %v3062_v1  ;;  %2847 = vmatprep.mubr.msk.bf16.mxu1 %vm3063_vm0, %v3062_v1 }
  0xaa   : > { %2865 = vmatprep.subr.bf16.mxu0 %v3062_v1  ;;  %2905 = vmatpush3.bf16.msra.mxu1 %v3027_v20 }
  0xab   : > { %2898 = vmatprep.subr.bf16.mxu1 %v3062_v1 }
  0xac   : > { %2866 = vmatpush3.bf16.msra.mxu0 %v3029_v26 }
  0xad   : > { %2867 = vmatprep.subr.bf16.mxu0 %v3062_v1 }
  0xae   : > { %2906 = vmatpush3.bf16.msra.mxu1 %v3029_v26 }
  0xaf   : > { %2812 = vmatmul.mubr.bf16.gmra.mrb[68].mxu0 %v1519_v30  ;;  %2899 = vmatprep.subr.bf16.mxu1 %v3062_v1 }
  0xb0   : > { %2848 = vmatmul.mubr.bf16.gmra.mrb[68].mxu1 %v1716_v32  ;;  %2868 = vmatpush3.bf16.msra.mxu0 %v3030_v31 }
  0xb1   : > { %2815 = vmatprep.mubr.msk.bf16.mxu0 %vm3063_vm0, %v3062_v1  ;;  %2851 = vmatprep.mubr.msk.bf16.mxu1 %vm3063_vm0, %v3062_v1 }
  0xb2   : > { %2907 = vmatpush3.bf16.msra.mxu1 %v3030_v31  ;;  %2869 = vmatprep.subr.bf16.mxu0 %v3062_v1 }
  0xb3   : > { %2900 = vmatprep.subr.bf16.mxu1 %v3062_v1 }
  0xb4   : > { %2870 = vmatpush3.bf16.msra.mxu0 %v3032_v37 }
  0xb5   : > { %2871 = vmatprep.subr.bf16.mxu0 %v3062_v1 }
  0xb6   : > { %2908 = vmatpush3.bf16.msra.mxu1 %v3032_v37 }
  0xb7   : > { %2816 = vmatmul.mubr.bf16.gmra.mrb[72].mxu0 %v1521_v41  ;;  %2901 = vmatprep.subr.bf16.mxu1 %v3062_v1 }
  0xb8   : > { %2852 = vmatmul.mubr.bf16.gmra.mrb[72].mxu1 %v1725_v44  ;;  %2819 = vmatprep.mubr.msk.bf16.mxu0 %vm3063_vm0, %v3062_v1 }
  0xb9   : > { %2855 = vmatprep.mubr.msk.bf16.mxu1 %vm3063_vm0, %v3062_v1  ;;  %2872 = vmatpush3.bf16.msra.mxu0 %v3033_v45 }
  0xba   : > { %2909 = vmatpush3.bf16.msra.mxu1 %v3033_v45  ;;  %2873 = vmatprep.subr.bf16.mxu0 %v3062_v1 }
  0xbb   : > { %2902 = vmatprep.subr.bf16.mxu1 %v3062_v1 }
  0xbd   : > { %2874 = vmatpush3.bf16.msra.mxu0 %v3036_v51 }
  0xbe   : > { %2910 = vmatpush3.bf16.msra.mxu1 %v3036_v51 }
  0xbf   : > { %2820 = vmatmul.mubr.bf16.gmra.mrb[76].mxu0 %v1523_v53 }
  0xc0   : > { %2856 = vmatmul.mubr.bf16.gmra.mrb[76].mxu1 %v1734_v55  ;;  %2875 = vmatprep.mubr.msk.bf16.mxu0 %vm3063_vm0, %v3062_v1 }
  0xc1   : > { %2887 = vmatprep.mubr.msk.bf16.mxu1 %vm3063_vm0, %v3062_v1 }
  0xc7   : > { %2876 = vmatmul.mubr.bf16.vlgmr.msra.gmra.mrb[80].mxu0 %v1895_v59 }
  0xc8   : > { %2888 = vmatmul.mubr.bf16.vlgmr.msra.gmra.mrb[80].mxu1 %v1901_v60  ;;  %2879 = vmatprep.mubr.msk.bf16.mxu0 %vm3063_vm0, %v3062_v1 }
  0xc9   : > { %2891 = vmatprep.mubr.msk.bf16.mxu1 %vm3063_vm0, %v3062_v1 }
  0xcf   : > { %2880 = vmatmul.mubr.bf16.gmra.mrb[84].mxu0 %v1897_v62 }
  0xd0   : > { %2892 = vmatmul.mubr.bf16.gmra.mrb[84].mxu1 %v1903_v63  ;;  %2883 = vmatprep.mubr.msk.bf16.mxu0 %vm3063_vm0, %v3062_v1 }
  0xd7   : > { %2884 = vmatmul.mubr.bf16.gmra.mrb[88].mxu0 %v1899_v2 }
  0xfa   : > { %v436_v3 = vpop.f32.mrb[0].mxu0 }
  0xfb   : > { %v2589_v4 = vpop.f32.mrb[1].mxu0  ;;  %v633_v0 = vpop.f32.mrb[0].mxu1 }
  0xfc   : > { %v439_v5 = vpop.f32.mrb[2].mxu0  ;;  %v2625_v6 = vpop.f32.mrb[1].mxu1  ;;  %v672_v7 = vadd.f32 %v633_v0, %v436_v3 }
  0xfd   : > { %v2590_v8 = vpop.f32.mrb[3].mxu0  ;;  %v636_v9 = vpop.f32.mrb[2].mxu1 }
  0xfe   : > { %v2626_v10 = vpop.f32.mrb[3].mxu1  ;;  %v673_v11 = vadd.f32 %v636_v9, %v439_v5 }
 0x102   : > { %v444_v12 = vpop.f32.mrb[4].mxu0 }
 0x103   : > { %v2593_v13 = vpop.f32.mrb[5].mxu0  ;;  %v641_v14 = vpop.f32.mrb[4].mxu1 }
 0x104   : > { %v447_v15 = vpop.f32.mrb[6].mxu0  ;;  %v2629_v16 = vpop.f32.mrb[5].mxu1  ;;  %v674_v18 = vadd.f32 %v641_v14, %v444_v12 }
 0x105   : > { %v2594_v1 = vpop.f32.mrb[7].mxu0  ;;  %v644_v17 = vpop.f32.mrb[6].mxu1 }
 0x106   : > { %v2630_v19 = vpop.f32.mrb[7].mxu1  ;;  %v675_v20 = vadd.f32 %v644_v17, %v447_v15 }
 0x10a   : > { %v452_v21 = vpop.f32.mrb[8].mxu0 }
 0x10b   : > { %v2597_v22 = vpop.f32.mrb[9].mxu0  ;;  %v649_v23 = vpop.f32.mrb[8].mxu1 }
 0x10c   : > { %v455_v24 = vpop.f32.mrb[10].mxu0  ;;  %v2633_v25 = vpop.f32.mrb[9].mxu1  ;;  %v676_v26 = vadd.f32 %v649_v23, %v452_v21 }
 0x10d   : > { %v2598_v27 = vpop.f32.mrb[11].mxu0  ;;  %v652_v28 = vpop.f32.mrb[10].mxu1 }
 0x10e   : > { %v2634_v29 = vpop.f32.mrb[11].mxu1  ;;  %v677_v30 = vadd.f32 %v652_v28, %v455_v24 }
 0x112   : > { %v460_v31 = vpop.f32.mrb[12].mxu0 }
 0x113   : > { %v2601_v32 = vpop.f32.mrb[13].mxu0  ;;  %v657_v33 = vpop.f32.mrb[12].mxu1 }
 0x114   : > { %v463_v34 = vpop.f32.mrb[14].mxu0  ;;  %v2637_v35 = vpop.f32.mrb[13].mxu1  ;;  %v678_v36 = vadd.f32 %v657_v33, %v460_v31 }
 0x115   : > { %v2602_v37 = vpop.f32.mrb[15].mxu0  ;;  %v660_v38 = vpop.f32.mrb[14].mxu1 }
 0x116   : > { %v2638_v39 = vpop.f32.mrb[15].mxu1  ;;  %v679_v40 = vadd.f32 %v660_v38, %v463_v34 }
 0x11a   : > { %v468_v41 = vpop.f32.mrb[16].mxu0 }
 0x11b   : > { %v2605_v44 = vpop.f32.mrb[17].mxu0  ;;  %v665_v45 = vpop.f32.mrb[16].mxu1 }
 0x11c   : > { %v471_v46 = vpop.f32.mrb[18].mxu0  ;;  %v2641_v47 = vpop.f32.mrb[17].mxu1  ;;  %v680_v50 = vadd.f32 %v665_v45, %v468_v41 }
 0x11d   : > { %v484_v49 = vadd.f32 %v471_v46, %v297_v43  ;;  %v2606_v51 = vpop.f32.mrb[19].mxu0  ;;  %v668_v52 = vpop.f32.mrb[18].mxu1 }
 0x11e   : > { %v2642_v53 = vpop.f32.mrb[19].mxu1 }
 0x11f   : > { %v681_v54 = vadd.f32 %v668_v52, %v484_v49 }
 0x122   : > { %v800_v55 = vpop.f32.mrb[20].mxu0 }
 0x123   : > { %v839_v56 = vadd.f32 %v800_v55, %v672_v7  ;;  %v2661_v57 = vpop.f32.mrb[21].mxu0  ;;  %v997_v58 = vpop.f32.mrb[20].mxu1 }
 0x124   : > { %v803_v42 = vpop.f32.mrb[22].mxu0  ;;  %v2697_v59 = vpop.f32.mrb[21].mxu1 }
 0x125   : > { %v840_v60 = vadd.f32 %v803_v42, %v673_v11  ;;  %v1036_v61 = vadd.f32 %v997_v58, %v839_v56  ;;  %v2662_v48 = vpop.f32.mrb[23].mxu0  ;;  %v1000_v62 = vpop.f32.mrb[22].mxu1 }
 0x126   : > { %v2698_v63 = vpop.f32.mrb[23].mxu1 }
 0x127   : > { %v1037_v2 = vadd.f32 %v1000_v62, %v840_v60 }
 0x12a   : > { %v808_v3 = vpop.f32.mrb[24].mxu0 }
 0x12b   : > { %v841_v4 = vadd.f32 %v808_v3, %v674_v18  ;;  %v2665_v0 = vpop.f32.mrb[25].mxu0  ;;  %v1005_v5 = vpop.f32.mrb[24].mxu1 }
 0x12c   : > { %v811_v6 = vpop.f32.mrb[26].mxu0  ;;  %v2701_v8 = vpop.f32.mrb[25].mxu1 }
 0x12d   : > { %v842_v9 = vadd.f32 %v811_v6, %v675_v20  ;;  %v1038_v10 = vadd.f32 %v1005_v5, %v841_v4  ;;  %v2666_v12 = vpop.f32.mrb[27].mxu0  ;;  %v1008_v7 = vpop.f32.mrb[26].mxu1 }
 0x12e   : > { %v2702_v13 = vpop.f32.mrb[27].mxu1 }
 0x12f   : > { %v1039_v14 = vadd.f32 %v1008_v7, %v842_v9 }
 0x132   : > { %v816_v15 = vpop.f32.mrb[28].mxu0 }
 0x133   : > { %v843_v16 = vadd.f32 %v816_v15, %v676_v26  ;;  %v2669_v11 = vpop.f32.mrb[29].mxu0  ;;  %v1013_v1 = vpop.f32.mrb[28].mxu1 }
 0x134   : > { %v819_v17 = vpop.f32.mrb[30].mxu0  ;;  %v2705_v19 = vpop.f32.mrb[29].mxu1 }
 0x135   : > { %v844_v21 = vadd.f32 %v819_v17, %v677_v30  ;;  %v1040_v22 = vadd.f32 %v1013_v1, %v843_v16  ;;  %v2670_v23 = vpop.f32.mrb[31].mxu0  ;;  %v1016_v18 = vpop.f32.mrb[30].mxu1 }
 0x136   : > { %v2706_v24 = vpop.f32.mrb[31].mxu1 }
 0x137   : > { %v1041_v25 = vadd.f32 %v1016_v18, %v844_v21 }
 0x13a   : > { %v824_v27 = vpop.f32.mrb[32].mxu0 }
 0x13b   : > { %v845_v28 = vadd.f32 %v824_v27, %v678_v36  ;;  %v2673_v20 = vpop.f32.mrb[33].mxu0  ;;  %v1021_v29 = vpop.f32.mrb[32].mxu1 }
 0x13c   : > { %v827_v31 = vpop.f32.mrb[34].mxu0  ;;  %v2709_v32 = vpop.f32.mrb[33].mxu1 }
 0x13d   : > { %v846_v33 = vadd.f32 %v827_v31, %v679_v40  ;;  %v1042_v34 = vadd.f32 %v1021_v29, %v845_v28  ;;  %v2674_v35 = vpop.f32.mrb[35].mxu0  ;;  %v1024_v26 = vpop.f32.mrb[34].mxu1 }
 0x13e   : > { %v2710_v37 = vpop.f32.mrb[35].mxu1 }
 0x13f   : > { %v1043_v38 = vadd.f32 %v1024_v26, %v846_v33 }
 0x142   : > { %v832_v39 = vpop.f32.mrb[36].mxu0 }
 0x143   : > { %v847_v41 = vadd.f32 %v832_v39, %v680_v50  ;;  %v2677_v30 = vpop.f32.mrb[37].mxu0  ;;  %v1029_v43 = vpop.f32.mrb[36].mxu1 }
 0x144   : > { %v835_v44 = vpop.f32.mrb[38].mxu0  ;;  %v2713_v45 = vpop.f32.mrb[37].mxu1 }
 0x145   : > { %v848_v46 = vadd.f32 %v835_v44, %v681_v54  ;;  %v1044_v47 = vadd.f32 %v1029_v43, %v847_v41  ;;  %v2678_v49 = vpop.f32.mrb[39].mxu0  ;;  %v1032_v36 = vpop.f32.mrb[38].mxu1 }
 0x146   : > { %v2714_v51 = vpop.f32.mrb[39].mxu1 }
 0x147   : > { %v1045_v52 = vadd.f32 %v1032_v36, %v848_v46 }
 0x14a   : > { %v1239_v53 = vpop.f32.mrb[40].mxu0 }
 0x14b   : > { %v1278_v55 = vadd.f32 %v1239_v53, %v1036_v61  ;;  %v2733_v40 = vpop.f32.mrb[41].mxu0  ;;  %v1408_v56 = vpop.f32.mrb[40].mxu1 }
 0x14c   : > { %v1242_v57 = vpop.f32.mrb[42].mxu0  ;;  %v2769_v58 = vpop.f32.mrb[41].mxu1 }
 0x14d   : > { %v1279_v42 = vadd.f32 %v1242_v57, %v1037_v2  ;;  %v1447_v59 = vadd.f32 %v1408_v56, %v1278_v55  ;;  %v2734_v60 = vpop.f32.mrb[43].mxu0  ;;  %v1411_v50 = vpop.f32.mrb[42].mxu1 }
 0x14e   : > { %v2770_v48 = vpop.f32.mrb[43].mxu1 }
 0x14f   : > { %v1448_v62 = vadd.f32 %v1411_v50, %v1279_v42 }
 0x152   : > { %v1247_v63 = vpop.f32.mrb[44].mxu0 }
 0x153   : > { %v1280_v3 = vadd.f32 %v1247_v63, %v1038_v10  ;;  %v2737_v54 = vpop.f32.mrb[45].mxu0  ;;  %v1416_v4 = vpop.f32.mrb[44].mxu1 }
 0x154   : > { %v1250_v0 = vpop.f32.mrb[46].mxu0  ;;  %v2773_v5 = vpop.f32.mrb[45].mxu1 }
 0x155   : > { %v1281_v6 = vadd.f32 %v1250_v0, %v1039_v14  ;;  %v1449_v8 = vadd.f32 %v1416_v4, %v1280_v3  ;;  %v2738_v9 = vpop.f32.mrb[47].mxu0  ;;  %v1419_v61 = vpop.f32.mrb[46].mxu1 }
 0x156   : > { %v2774_v12 = vpop.f32.mrb[47].mxu1 }
 0x157   : > { %v1450_v7 = vadd.f32 %v1419_v61, %v1281_v6 }
 0x15a   : > { %v1255_v13 = vpop.f32.mrb[48].mxu0 }
 0x15b   : > { %v1282_v15 = vadd.f32 %v1255_v13, %v1040_v22  ;;  %v2741_v2 = vpop.f32.mrb[49].mxu0  ;;  %v1424_v16 = vpop.f32.mrb[48].mxu1 }
 0x15c   : > { %v1258_v11 = vpop.f32.mrb[50].mxu0  ;;  %v2777_v1 = vpop.f32.mrb[49].mxu1 }
 0x15d   : > { %v1283_v17 = vadd.f32 %v1258_v11, %v1041_v25  ;;  %v1451_v19 = vadd.f32 %v1424_v16, %v1282_v15  ;;  %v2742_v21 = vpop.f32.mrb[51].mxu0  ;;  %v1427_v10 = vpop.f32.mrb[50].mxu1 }
 0x15e   : > { %v2778_v23 = vpop.f32.mrb[51].mxu1 }
 0x15f   : > { %v1452_v18 = vadd.f32 %v1427_v10, %v1283_v17 }
 0x162   : > { %v1263_v24 = vpop.f32.mrb[52].mxu0 }
 0x163   : > { %v1284_v27 = vadd.f32 %v1263_v24, %v1042_v34  ;;  %v2745_v14 = vpop.f32.mrb[53].mxu0  ;;  %v1432_v28 = vpop.f32.mrb[52].mxu1 }
 0x164   : > { %v1266_v20 = vpop.f32.mrb[54].mxu0  ;;  %v2781_v29 = vpop.f32.mrb[53].mxu1 }
 0x165   : > { %v1285_v31 = vadd.f32 %v1266_v20, %v1043_v38  ;;  %v1453_v32 = vadd.f32 %v1432_v28, %v1284_v27  ;;  %v2746_v33 = vpop.f32.mrb[55].mxu0  ;;  %v1435_v22 = vpop.f32.mrb[54].mxu1 }
 0x166   : > { %v2782_v35 = vpop.f32.mrb[55].mxu1 }
 0x167   : > { %v1454_v26 = vadd.f32 %v1435_v22, %v1285_v31 }
 0x16a   : > { %v1271_v37 = vpop.f32.mrb[56].mxu0 }
 0x16b   : > { %v1286_v39 = vadd.f32 %v1271_v37, %v1044_v47  ;;  %v2749_v25 = vpop.f32.mrb[57].mxu0  ;;  %v1440_v41 = vpop.f32.mrb[56].mxu1 }
 0x16c   : > { %v1274_v30 = vpop.f32.mrb[58].mxu0  ;;  %v2785_v43 = vpop.f32.mrb[57].mxu1 }
 0x16d   : > { %v1287_v44 = vadd.f32 %v1274_v30, %v1045_v52  ;;  %v1455_v45 = vadd.f32 %v1440_v41, %v1286_v39  ;;  %v2750_v46 = vpop.f32.mrb[59].mxu0  ;;  %v1443_v34 = vpop.f32.mrb[58].mxu1 }
 0x16e   : > { %v2786_v49 = vpop.f32.mrb[59].mxu1 }
 0x16f   : > { %v1456_v36 = vadd.f32 %v1443_v34, %v1287_v44 }
 0x172   : > { %v1611_v51 = vpop.f32.mrb[60].mxu0 }
 0x173   : > { %v1650_v53 = vadd.f32 %v1611_v51, %v1447_v59  ;;  %v2805_v38 = vpop.f32.mrb[61].mxu0  ;;  %v1822_v55 = vpop.f32.mrb[60].mxu1 }
 0x174   : > { %v1614_v40 = vpop.f32.mrb[62].mxu0  ;;  %v2841_v56 = vpop.f32.mrb[61].mxu1 }
 0x175   : > { %v1651_v57 = vadd.f32 %v1614_v40, %v1448_v62  ;;  %v1861_v58 = vadd.f32 %v1822_v55, %v1650_v53  ;;  %v2806_v42 = vpop.f32.mrb[63].mxu0  ;;  %v1825_v47 = vpop.f32.mrb[62].mxu1  ;;  %v2069_v53 = vld [vmem:[%s3663_s6 + $0x30] sm:$0xff]  ;;  %v2064_v56 = vld [vmem:[%s3663_s6 + $0x8] sm:$0xff] }
 0x176   : > { %v2842_v60 = vpop.f32.mrb[63].mxu1 }
 0x177   : > { %v3649_v50 = vadd.f32 %v1825_v47, %v1651_v57  ;;  %v2070_v47 = vld [vmem:[%s3663_s6 + $0x38] sm:$0xff] }
 0x17a   : > { %v1619_v48 = vpop.f32.mrb[64].mxu0 }
 0x17b   : > { %v1652_v52 = vadd.f32 %v1619_v48, %v1449_v8  ;;  %v2809_v63 = vpop.f32.mrb[65].mxu0  ;;  %v1830_v3 = vpop.f32.mrb[64].mxu1 }
 0x17c   : > { %v1622_v54 = vpop.f32.mrb[66].mxu0  ;;  %v2845_v4 = vpop.f32.mrb[65].mxu1 }
 0x17d   : > { %v1653_v0 = vadd.f32 %v1622_v54, %v1450_v7  ;;  %v3651_v5 = vadd.f32 %v1830_v3, %v1652_v52  ;;  %v2810_v59 = vpop.f32.mrb[67].mxu0  ;;  %v1833_v6 = vpop.f32.mrb[66].mxu1 }
 0x17e   : > { %v2846_v9 = vpop.f32.mrb[67].mxu1 }
 0x17f   : > { %v3653_v61 = vadd.f32 %v1833_v6, %v1653_v0  ;;  %v2065_v0 = vld [vmem:[%s3663_s6 + $0x10] sm:$0xff]  ;;  %v2071_v6 = vld [vmem:[%s3663_s6 + $0x40] sm:$0xff] }
 0x182   : > { %v1627_v62 = vpop.f32.mrb[68].mxu0 }
 0x183   : > { %v1654_v12 = vadd.f32 %v1627_v62, %v1451_v19  ;;  %v2813_v13 = vpop.f32.mrb[69].mxu0  ;;  %v1838_v15 = vpop.f32.mrb[68].mxu1 }
 0x184   : > { %v1630_v2 = vpop.f32.mrb[70].mxu0  ;;  %v2849_v16 = vpop.f32.mrb[69].mxu1 }
 0x185   : > { %v1655_v11 = vadd.f32 %v1630_v2, %v1452_v18  ;;  %v3655_v8 = vadd.f32 %v1838_v15, %v1654_v12  ;;  %v2814_v1 = vpop.f32.mrb[71].mxu0  ;;  %v1841_v17 = vpop.f32.mrb[70].mxu1  ;;  %v2066_v15 = vld [vmem:[%s3663_s6 + $0x18] sm:$0xff] }
 0x186   : > { %v2850_v21 = vpop.f32.mrb[71].mxu1 }
 0x187   : > { %v3657_v7 = vadd.f32 %v1841_v17, %v1655_v11 }
 0x18a   : > { %v1635_v10 = vpop.f32.mrb[72].mxu0 }
 0x18b   : > { %v1656_v23 = vadd.f32 %v1635_v10, %v1453_v32  ;;  %v2817_v24 = vpop.f32.mrb[73].mxu0  ;;  %v1846_v27 = vpop.f32.mrb[72].mxu1 }
 0x18c   : > { %v1638_v14 = vpop.f32.mrb[74].mxu0  ;;  %v2853_v28 = vpop.f32.mrb[73].mxu1  ;;  %v2067_v24 = vld [vmem:[%s3663_s6 + $0x20] sm:$0xff] }
 0x18d   : > { %v1657_v19 = vadd.f32 %v1638_v14, %v1454_v26  ;;  %v1867_v20 = vadd.f32 %v1846_v27, %v1656_v23  ;;  %v2818_v29 = vpop.f32.mrb[75].mxu0  ;;  %v1849_v31 = vpop.f32.mrb[74].mxu1  ;;  %v2068_v28 = vld [vmem:[%s3663_s6 + $0x28] sm:$0xff] }
 0x18e   : > { %v2854_v33 = vpop.f32.mrb[75].mxu1 }
 0x18f   : > { %v1868_v18 = vadd.f32 %v1849_v31, %v1657_v19  ;;  %v2072_v19 = vld [vmem:[%s3663_s6 + $0x48] sm:$0x3f] }
 0x192   : > { %v1643_v22 = vpop.f32.mrb[76].mxu0 }
 0x193   : > { %v1658_v35 = vadd.f32 %v1643_v22, %v1455_v45  ;;  %v2821_v37 = vpop.f32.mrb[77].mxu0  ;;  %v1854_v39 = vpop.f32.mrb[76].mxu1  ;;  %v2063_v45 = vld [vmem:[%s3663_s6] sm:$0xff] }
 0x194   : > { %v1646_v25 = vpop.f32.mrb[78].mxu0  ;;  %v2857_v41 = vpop.f32.mrb[77].mxu1 }
 0x195   : > { %v1659_v30 = vadd.f32 %v1646_v25, %v1456_v36  ;;  %v1869_v43 = vadd.f32 %v1854_v39, %v1658_v35  ;;  %v2822_v32 = vpop.f32.mrb[79].mxu0  ;;  %v1857_v44 = vpop.f32.mrb[78].mxu1 }
 0x196   : > { %v2858_v46 = vpop.f32.mrb[79].mxu1 }
 0x197   : > { %v1870_v34 = vadd.f32 %v1857_v44, %v1659_v30 }
 0x19a   : > { %v1991_v26 = vpop.f32.mrb[80].mxu0 }
 0x19b   : > { %v2030_v49 = vadd.f32 %v1991_v26, %v1861_v58  ;;  %v2015_v51 = vpop.f32.mrb[80].mxu1  ;;  %v2877_v36 = vpop.f32.mrb[81].mxu0 }
 0x19c   : > { %v2036_v38 = vadd.f32 %v2015_v51, %v1867_v20  ;;  %v2889_v55 = vpop.f32.mrb[81].mxu1  ;;  %v1994_v40 = vpop.f32.mrb[82].mxu0 }
 0x19d   : > { %v2073_v57 = vadd.f32 %v2063_v45, %v2030_v49  ;;  %v2031_v58 = vadd.f32 %v1994_v40, %v3649_v50  ;;  %v2018_v42 = vpop.f32.mrb[82].mxu1  ;;  %v2878_v60 = vpop.f32.mrb[83].mxu0 }
 0x19e   : > { %v2079_v48 = vadd.f32 %v2069_v53, %v2036_v38  ;;  %v2037_v52 = vadd.f32 %v2018_v42, %v1868_v18  ;;  %v2890_v63 = vpop.f32.mrb[83].mxu1 }
 0x19f   : > { %2083 = vst [vmem:[%s3670_s9] sm:$0xff] %v2073_v57  ;;  %v2074_v3 = vadd.f32 %v2064_v56, %v2031_v58 }
 0x1a0   : > { %2089 = vst [vmem:[%s3670_s9 + $0x30] sm:$0xff] %v2079_v48  ;;  %v2080_v54 = vadd.f32 %v2070_v47, %v2037_v52 }
 0x1a1   : > { %2084 = vst [vmem:[%s3670_s9 + $0x8] sm:$0xff] %v2074_v3 }
 0x1a2   : > { %2090 = vst [vmem:[%s3670_s9 + $0x38] sm:$0xff] %v2080_v54  ;;  %v1999_v4 = vpop.f32.mrb[84].mxu0 }
 0x1a3   : > { %v2032_v59 = vadd.f32 %v1999_v4, %v3651_v5  ;;  %v2023_v50 = vpop.f32.mrb[84].mxu1  ;;  %v2881_v9 = vpop.f32.mrb[85].mxu0 }
 0x1a4   : > { %v2038_v62 = vadd.f32 %v2023_v50, %v1869_v43  ;;  %v2893_v12 = vpop.f32.mrb[85].mxu1  ;;  %v2002_v13 = vpop.f32.mrb[86].mxu0 }
 0x1a5   : > { %v2075_v2 = vadd.f32 %v2065_v0, %v2032_v59  ;;  %v2033_v16 = vadd.f32 %v2002_v13, %v3653_v61  ;;  %v2026_v11 = vpop.f32.mrb[86].mxu1  ;;  %v2882_v1 = vpop.f32.mrb[87].mxu0 }
 0x1a6   : > { %v2081_v17 = vadd.f32 %v2071_v6, %v2038_v62  ;;  %v2039_v21 = vadd.f32 %v2026_v11, %v1870_v34  ;;  %v2894_v5 = vpop.f32.mrb[87].mxu1 }
 0x1a7   : > { %2085 = vst [vmem:[%s3670_s9 + $0x10] sm:$0xff] %v2075_v2  ;;  %v2076_v10 = vadd.f32 %v2066_v15, %v2033_v16 }
 0x1a8   : > { %2091 = vst [vmem:[%s3670_s9 + $0x40] sm:$0xff] %v2081_v17  ;;  %2049 = vst [vmem:[#allocation2 + $0x48] sm:$0x3f] %v2039_v21 }
 0x1a9   : > { %2086 = vst [vmem:[%s3670_s9 + $0x18] sm:$0xff] %v2076_v10 }
 0x1aa   : > { %v2007_v23 = vpop.f32.mrb[88].mxu0 }
 0x1ab   : > { %v2034_v27 = vadd.f32 %v2007_v23, %v3655_v8  ;;  %v2885_v61 = vpop.f32.mrb[89].mxu0 }
 0x1ac   : > { %v2010_v14 = vpop.f32.mrb[90].mxu0 }
 0x1ad   : > { %v2077_v20 = vadd.f32 %v2067_v24, %v2034_v27  ;;  %v2035_v29 = vadd.f32 %v2010_v14, %v3657_v7  ;;  %v2886_v31 = vpop.f32.mrb[91].mxu0 }
 0x1af   : > { %v2062_v33 = vld [vmem:[#allocation2 + $0x48] sm:$0x3f]  ;;  %2087 = vst [vmem:[%s3670_s9 + $0x20] sm:$0xff] %v2077_v20  ;;  %v2078_v18 = vadd.f32 %v2068_v28, %v2035_v29 }
 0x1b0   : > { %v2082_v22 = vadd.f32 %v2072_v19, %v2062_v33 }
 0x1b1   : > { %2088 = vst [vmem:[%s3670_s9 + $0x28] sm:$0xff] %v2078_v18 }
 0x1b2   : > { %2092 = vst [vmem:[%s3670_s9 + $0x48] sm:$0x3f] %v2082_v22 }
 0x1b3 PF: > { %s13_s14 = sadd.s32 1, %s3060_s14   ;;  %s3708_s12 = smov %s3056_s13 }
 0x1b4   : > { %p10_p5 = scmp.ge.s32.totalorder %s13_s14, 4   ;;  %s3709_s13 = smov %s3711_s15 }
 0x1b6   :  { %12 = sbr.rel (!%p10_p5) target bundleno = 2 (0x2), region = 84 }

</bundles_post_ra>
